<compile_context>
chip_gen: v7x
topology: tpu7x:2x2x1
jax: 0.10.0
libtpu: 0.0.40
codegen_flags: <defaults>
</compile_context>

<pallas_src>
import jax
import jax.numpy as jnp
from jax.experimental import pallas as pl
from jax.experimental.pallas import tpu as pltpu

_TRANS_B = (((1,), (1,)), ((), ()))  # contract minor dims: A @ B^T


def _mlp_kernel(x_ref, w1_ref, b1_ref, wf8_ref, bf_ref, o_ref):
    """One batch tile of fc1 -> ReLU -> fcf.

    x_ref  : (block_m, 2048) f32   (per-step stream; cast to bf16 in-kernel)
    w1_ref : (2048, size)    bf16  (resident, single-buffered)
    b1_ref : (1, size)       f32   (resident)
    wf8_ref: (8, size)       f32   (row 0 = fcf weights, rows 1..7 zero)
    bf_ref : (1, 1)          f32
    o_ref  : (8, block_m)    f32   (row 0 holds the outputs, batch on lanes)
    """
    # fc1 on the MXU: bf16 inputs (cast here, not in the wrapper), f32 acc.
    x_bf = x_ref[...].astype(jnp.bfloat16)
    h = jnp.dot(x_bf, w1_ref[...], preferred_element_type=jnp.float32)
    # Bias + ReLU in f32 on the VPU.
    h = jnp.maximum(h + b1_ref[...], 0.0)
    # fcf: (8, size) @ h^T -> (8, block_m).  The transposed contraction puts
    # the batch axis on the lane axis, so the store below is lane-dense.
    out8 = jax.lax.dot_general(
        wf8_ref[...], h, dimension_numbers=_TRANS_B,
        preferred_element_type=jnp.float32)
    o_ref[...] = out8 + bf_ref[...]


def _select_block_m(batch, cap=1024, unit=256):
    """Adaptive batch tile: pad at most ~one tile, keep >=2 grid steps."""
    b_pad_min = ((batch + unit - 1) // unit) * unit
    if b_pad_min <= unit:
        return unit
    # >= 2 grid steps so the single 'parallel' axis can shard across the
    # 2 TensorCores on v7x; cap the tile to bound VMEM.
    return min(cap, max(unit, (b_pad_min // 2) // unit * unit))


@jax.jit
def deeplearn_forward(x, w1, b1, wf, bf):
    """DeepLearn(layers=1) forward.

    x : (B, 2048) f32;  w1: (2048, size);  b1: (size,) or (1, size)
    wf: (size, 1) (or (1, size));  bf: scalar-like.
    Returns (B, 1) f32.
    """
    B, K = x.shape
    size = w1.shape[1]

    block_m = _select_block_m(B)          # static at trace time
    n_blocks = pl.cdiv(B, block_m)
    B_pad = n_blocks * block_m
    if B_pad != B:
        x = jnp.pad(x, ((0, B_pad - B), (0, 0)))

    # Small/resident operands prepped once in the wrapper.
    w1_bf = w1.astype(jnp.bfloat16)
    b1_2d = jnp.reshape(b1, (1, size)).astype(jnp.float32)
    wf_row = jnp.reshape(wf, (1, size)).astype(jnp.float32)
    wf8 = jnp.pad(wf_row, ((0, 7), (0, 0)))   # 8-row, sublane-aligned block
    bf_2d = jnp.reshape(bf, (1, 1)).astype(jnp.float32)

    cost = pl.CostEstimate(
        flops=2 * B_pad * K * size + 2 * B_pad * size * 8,
        transcendentals=0,
        bytes_accessed=(B_pad * K * 4          # x (f32 stream)
                        + K * size * 2          # w1 (bf16, resident)
                        + size * 4 + 8 * size * 4 + 4
                        + 8 * B_pad * 4),       # lane-dense output
    )

    out = pl.pallas_call(
        _mlp_kernel,
        out_shape=jax.ShapeDtypeStruct((8, B_pad), jnp.float32),
        grid_spec=pltpu.PrefetchScalarGridSpec(
            num_scalar_prefetch=0,
            grid=(n_blocks,),
            in_specs=[
                # x tile: streamed f32, double-buffered by default.
                pl.BlockSpec((block_m, K), lambda i: (i, 0)),
                # Resident operands: same block every step, single buffer.
                pl.BlockSpec((K, size), lambda i: (0, 0),
                             pipeline_mode=pl.Buffered(1)),
                pl.BlockSpec((1, size), lambda i: (0, 0),
                             pipeline_mode=pl.Buffered(1)),
                pl.BlockSpec((8, size), lambda i: (0, 0),
                             pipeline_mode=pl.Buffered(1)),
                pl.BlockSpec((1, 1), lambda i: (0, 0),
                             pipeline_mode=pl.Buffered(1)),
            ],
            out_specs=pl.BlockSpec((8, block_m), lambda i: (0, i)),
        ),
        compiler_params=pltpu.CompilerParams(
            dimension_semantics=("parallel",),
            vmem_limit_bytes=32 * 1024 * 1024,
        ),
        cost_estimate=cost,
    )(x, w1_bf, b1_2d, wf8, bf_2d)

    # Row 0 holds the real per-example outputs (lane axis = batch).
    return out[0, :B].reshape(B, 1)


def init_params(key, in_features=2048, size=256):
    """PyTorch-style uniform init, weights returned in (in, out) layout."""
    k1, k2, k3, k4 = jax.random.split(key, 4)
    bound1 = 1.0 / jnp.sqrt(in_features)
    boundf = 1.0 / jnp.sqrt(size)
    w1 = jax.random.uniform(k1, (in_features, size), jnp.float32, -bound1, bound1)
    b1 = jax.random.uniform(k2, (size,), jnp.float32, -bound1, bound1)
    wf = jax.random.uniform(k3, (size, 1), jnp.float32, -boundf, boundf)
    bf = jax.random.uniform(k4, (1,), jnp.float32, -boundf, boundf)
    return w1, b1, wf, bf


if __name__ == "__main__":
    key = jax.random.PRNGKey(0)
    kx, kp = jax.random.split(key)

    IN_FEATURES, SIZE = 2048, 256
    w1, b1, wf, bf = init_params(kp, IN_FEATURES, SIZE)

    def reference(x):
        # Same math as DeepLearn(layers=1).forward; fc1 inputs rounded to bf16
        # to mirror the kernel's bf16 MXU inputs (f32 accumulation).
        x16 = x.astype(jnp.bfloat16).astype(jnp.float32)
        w116 = w1.astype(jnp.bfloat16).astype(jnp.float32)
        h = jnp.maximum(x16 @ w116 + b1[None, :], 0.0)
        return h @ wf + jnp.reshape(bf, (1, 1))

    # Small batch (one padded tile), a 2-grid-step batch, and a ragged batch.
    for batch in (8, 512, 700):
        x = jax.random.normal(jax.random.fold_in(kx, batch),
                              (batch, IN_FEATURES), jnp.float32)
        out = jax.block_until_ready(deeplearn_forward(x, w1, b1, wf, bf))
        ref = reference(x)
        assert out.shape == (batch, 1)
        assert jnp.allclose(out, ref, atol=1e-2, rtol=1e-2), (
            batch, float(jnp.max(jnp.abs(out - ref))))

    print("KERNEL_OK")
</pallas_src>

<mosaic_0001>
module attributes {stable_mosaic.version = 11 : i64} {
  func.func @_mlp_kernel(%arg0: i32, %arg1: memref<256x2048xf32, #tpu.memory_space<vmem>>, %arg2: memref<2048x256xbf16, #tpu.memory_space<vmem>>, %arg3: memref<1x256xf32, #tpu.memory_space<vmem>>, %arg4: memref<8x256xf32, #tpu.memory_space<vmem>>, %arg5: memref<1x1xf32, #tpu.memory_space<vmem>>, %arg6: memref<8x256xf32, #tpu.memory_space<vmem>>) attributes {dimension_semantics = [#tpu.dimension_semantics<parallel>], iteration_bounds = array<i64: 1>, scalar_prefetch = 0 : i64, scratch_operands = 0 : i64, tpu.core_type = #tpu.core_type<tc>, window_params = [{transform_indices = @transform_0, window_bounds = array<i64: 256, 2048>}, {pipeline_mode = #tpu.pipeline_mode<synchronous>, transform_indices = @transform_1, window_bounds = array<i64: 2048, 256>}, {pipeline_mode = #tpu.pipeline_mode<synchronous>, transform_indices = @transform_2, window_bounds = array<i64: 1, 256>}, {pipeline_mode = #tpu.pipeline_mode<synchronous>, transform_indices = @transform_3, window_bounds = array<i64: 8, 256>}, {pipeline_mode = #tpu.pipeline_mode<synchronous>, transform_indices = @transform_4, window_bounds = array<i64: 1, 1>}, {transform_indices = @transform_5, window_bounds = array<i64: 8, 256>}]} {
    %c0 = arith.constant 0 : index
    %c0_0 = arith.constant 0 : index
    %0 = vector.load %arg1[%c0, %c0_0] : memref<256x2048xf32, #tpu.memory_space<vmem>>, vector<256x2048xf32>
    %1 = arith.truncf %0 : vector<256x2048xf32> to vector<256x2048xbf16>
    %c0_1 = arith.constant 0 : index
    %c0_2 = arith.constant 0 : index
    %2 = vector.load %arg2[%c0_1, %c0_2] : memref<2048x256xbf16, #tpu.memory_space<vmem>>, vector<2048x256xbf16>
    %cst = arith.constant dense<0.000000e+00> : vector<256x256xf32>
    %3 = tpu.matmul %1, %2, %cst {dimension_numbers = #tpu.dot_dimension_numbers<[1], [0], [0], [1], [0, 0, 1, 1], [], []>} : vector<256x2048xbf16>, vector<2048x256xbf16>, vector<256x256xf32> -> vector<256x256xf32>
    %c0_3 = arith.constant 0 : index
    %c0_4 = arith.constant 0 : index
    %4 = vector.load %arg3[%c0_3, %c0_4] : memref<1x256xf32, #tpu.memory_space<vmem>>, vector<1x256xf32>
    %5 = vector.broadcast %4 : vector<1x256xf32> to vector<256x256xf32>
    %6 = arith.addf %3, %5 : vector<256x256xf32>
    %cst_5 = arith.constant 0.000000e+00 : f32
    %7 = vector.broadcast %cst_5 : f32 to vector<256x256xf32>
    %8 = arith.maximumf %6, %7 : vector<256x256xf32>
    %c0_6 = arith.constant 0 : index
    %c0_7 = arith.constant 0 : index
    %9 = vector.load %arg4[%c0_6, %c0_7] : memref<8x256xf32, #tpu.memory_space<vmem>>, vector<8x256xf32>
    %cst_8 = arith.constant dense<0.000000e+00> : vector<8x256xf32>
    %10 = tpu.matmul %9, %8, %cst_8 {dimension_numbers = #tpu.dot_dimension_numbers<[1], [1], [0], [0], [0, 0, 1, 0], [], []>} : vector<8x256xf32>, vector<256x256xf32>, vector<8x256xf32> -> vector<8x256xf32>
    %c0_9 = arith.constant 0 : index
    %c0_10 = arith.constant 0 : index
    %11 = vector.load %arg5[%c0_9, %c0_10] : memref<1x1xf32, #tpu.memory_space<vmem>>, vector<1x1xf32>
    %12 = vector.broadcast %11 : vector<1x1xf32> to vector<8x256xf32>
    %13 = arith.addf %10, %12 : vector<8x256xf32>
    %c0_11 = arith.constant 0 : index
    %c0_12 = arith.constant 0 : index
    %14 = vector.load %arg6[%c0_11, %c0_12] : memref<8x256xf32, #tpu.memory_space<vmem>>, vector<8x256xf32>
    tpu.vector_store %arg6[%c0_11, %c0_12], %13 {strides = array<i32>} : memref<8x256xf32, #tpu.memory_space<vmem>>, vector<8x256xf32>,
    return
  }
  func.func @transform_0(%arg0: i32) -> (i32, i32) {
    %c0_i32 = arith.constant 0 : i32
    %c0_i32_0 = arith.constant 0 : i32
    return %arg0, %c0_i32 : i32, i32
  }
  func.func @transform_1(%arg0: i32) -> (i32, i32) {
    %c0_i32 = arith.constant 0 : i32
    %c0_i32_0 = arith.constant 0 : i32
    %c0_i32_1 = arith.constant 0 : i32
    return %c0_i32, %c0_i32_0 : i32, i32
  }
  func.func @transform_2(%arg0: i32) -> (i32, i32) {
    %c0_i32 = arith.constant 0 : i32
    %c0_i32_0 = arith.constant 0 : i32
    %c0_i32_1 = arith.constant 0 : i32
    return %c0_i32, %c0_i32_0 : i32, i32
  }
  func.func @transform_3(%arg0: i32) -> (i32, i32) {
    %c0_i32 = arith.constant 0 : i32
    %c0_i32_0 = arith.constant 0 : i32
    %c0_i32_1 = arith.constant 0 : i32
    return %c0_i32, %c0_i32_0 : i32, i32
  }
  func.func @transform_4(%arg0: i32) -> (i32, i32) {
    %c0_i32 = arith.constant 0 : i32
    %c0_i32_0 = arith.constant 0 : i32
    %c0_i32_1 = arith.constant 0 : i32
    return %c0_i32, %c0_i32_0 : i32, i32
  }
  func.func @transform_5(%arg0: i32) -> (i32, i32) {
    %c0_i32 = arith.constant 0 : i32
    %c0_i32_0 = arith.constant 0 : i32
    return %c0_i32, %arg0 : i32, i32
  }
}

</mosaic_0001>

<bundles_post_ra>
// kernel: deeplearn_forward.1
= control target key start
LH: loop header
LB: loop body
LE: loop exit
PB: predicated region body
PF: predicated region fallthrough
CT: control target
= control target key end

     0   :  { %s7675_s1 = inlined_call_operand.vmem [shape: bf16[2048,256], index: 1, kind: input, shape index: {}]   ;;  %s7676_s0 = inlined_call_operand.vmem [shape: f32[256,2048], index: 0, kind: input, shape index: {}]   ;;  %s7677_s2 = inlined_call_operand.vmem [shape: f32[1,256], index: 2, kind: input, shape index: {}]   ;;  %s7678_s3 = inlined_call_operand.vmem [shape: f32[8,256], index: 3, kind: input, shape index: {}]   ;;  %s7679_s4 = inlined_call_operand.<no memory space> [shape: f32[1,1], index: 4, kind: input, shape index: {}]   ;;  %s7680_s5 = inlined_call_operand.vmem [shape: f32[8,256], index: 5, kind: output, shape index: {}]  }
   0x1   :  { %v4870_v0 = vld [vmem:[%s7675_s1 + $0x4] ss:$8 sps:$4 sm:$0xff]   ;;  %v4874_v2 = vld [vmem:[%s7675_s1] ss:$8 sps:$4 sm:$0xff]   ;;  %v4876_v4 = vld [vmem:[%s7675_s1 + $0x14] ss:$8 sps:$4 sm:$0xff]  }
   0x2   :  { %v4872_v1 = vld [vmem:[%s7675_s1 + $0x404] ss:$8 sps:$4 sm:$0xff]   ;;  %2338 = vmatprep.subr.bf16.mxu1 %v4870_v0  ;;  %v4875_v3 = vld [vmem:[%s7675_s1 + $0x400] ss:$8 sps:$4 sm:$0xff]   ;;  %v4878_v5 = vld [vmem:[%s7675_s1 + $0x414] ss:$8 sps:$4 sm:$0xff]  }
   0x3   :  { %3110 = vmatprep.subr.bf16.mxu0 %v4872_v1  ;;  %2339 = vmatpush1.bf16.msra.mxu1 %v4874_v2  ;;  %v4880_v6 = vld [vmem:[%s7675_s1 + $0x10] ss:$8 sps:$4 sm:$0xff]   ;;  %v4882_v8 = vld [vmem:[%s7675_s1 + $0x24] ss:$8 sps:$4 sm:$0xff]   ;;  %v4886_v10 = vld [vmem:[%s7675_s1 + $0x20] ss:$8 sps:$4 sm:$0xff]  }
   0x4   :  { %3111 = vmatpush1.bf16.msra.mxu0 %v4875_v3  ;;  %2340 = vmatprep.subr.bf16.mxu1 %v4876_v4  ;;  %v4881_v7 = vld [vmem:[%s7675_s1 + $0x410] ss:$8 sps:$4 sm:$0xff]   ;;  %v4884_v9 = vld [vmem:[%s7675_s1 + $0x424] ss:$8 sps:$4 sm:$0xff]   ;;  %v4887_v11 = vld [vmem:[%s7675_s1 + $0x420] ss:$8 sps:$4 sm:$0xff]  }
   0x5   :  { %3112 = vmatprep.subr.bf16.mxu0 %v4878_v5  ;;  %v4888_v12 = vld [vmem:[%s7675_s1 + $0x34] ss:$8 sps:$4 sm:$0xff]   ;;  %v4892_v14 = vld [vmem:[%s7675_s1 + $0x30] ss:$8 sps:$4 sm:$0xff]   ;;  %v4894_v16 = vld [vmem:[%s7675_s1 + $0x44] ss:$8 sps:$4 sm:$0xff]  }
   0x6   :  { %v4890_v13 = vld [vmem:[%s7675_s1 + $0x434] ss:$8 sps:$4 sm:$0xff]   ;;  %v4893_v15 = vld [vmem:[%s7675_s1 + $0x430] ss:$8 sps:$4 sm:$0xff]   ;;  %v4896_v17 = vld [vmem:[%s7675_s1 + $0x444] ss:$8 sps:$4 sm:$0xff]  }
   0x7   :  { %2341 = vmatpush1.bf16.msra.mxu1 %v4880_v6  ;;  %v4898_v18 = vld [vmem:[%s7675_s1 + $0x40] ss:$8 sps:$4 sm:$0xff]   ;;  %v4900_v20 = vld [vmem:[%s7675_s1 + $0x54] ss:$8 sps:$4 sm:$0xff]   ;;  %v4904_v22 = vld [vmem:[%s7675_s1 + $0x50] ss:$8 sps:$4 sm:$0xff]  }
   0x8   :  { %3113 = vmatpush1.bf16.msra.mxu0 %v4881_v7  ;;  %2342 = vmatprep.subr.bf16.mxu1 %v4882_v8  ;;  %v4899_v19 = vld [vmem:[%s7675_s1 + $0x440] ss:$8 sps:$4 sm:$0xff]   ;;  %v4902_v21 = vld [vmem:[%s7675_s1 + $0x454] ss:$8 sps:$4 sm:$0xff]   ;;  %v4905_v23 = vld [vmem:[%s7675_s1 + $0x450] ss:$8 sps:$4 sm:$0xff]  }
   0x9   :  { %3114 = vmatprep.subr.bf16.mxu0 %v4884_v9  ;;  %v4906_v24 = vld [vmem:[%s7675_s1 + $0x64] ss:$8 sps:$4 sm:$0xff]   ;;  %v4910_v26 = vld [vmem:[%s7675_s1 + $0x60] ss:$8 sps:$4 sm:$0xff]   ;;  %v4912_v28 = vld [vmem:[%s7675_s1 + $0x74] ss:$8 sps:$4 sm:$0xff]  }
   0xa   :  { %v4908_v25 = vld [vmem:[%s7675_s1 + $0x464] ss:$8 sps:$4 sm:$0xff]   ;;  %v4911_v27 = vld [vmem:[%s7675_s1 + $0x460] ss:$8 sps:$4 sm:$0xff]   ;;  %v4914_v29 = vld [vmem:[%s7675_s1 + $0x474] ss:$8 sps:$4 sm:$0xff]  }
   0xb   :  { %2343 = vmatpush1.bf16.msra.mxu1 %v4886_v10  ;;  %v4916_v30 = vld [vmem:[%s7675_s1 + $0x70] ss:$8 sps:$4 sm:$0xff]   ;;  %v4918_v32 = vld [vmem:[%s7675_s1 + $0x84] ss:$8 sps:$4 sm:$0xff]   ;;  %v4922_v34 = vld [vmem:[%s7675_s1 + $0x80] ss:$8 sps:$4 sm:$0xff]  }
   0xc   :  { %3115 = vmatpush1.bf16.msra.mxu0 %v4887_v11  ;;  %2344 = vmatprep.subr.bf16.mxu1 %v4888_v12  ;;  %v4917_v31 = vld [vmem:[%s7675_s1 + $0x470] ss:$8 sps:$4 sm:$0xff]   ;;  %v4920_v33 = vld [vmem:[%s7675_s1 + $0x484] ss:$8 sps:$4 sm:$0xff]   ;;  %v4923_v35 = vld [vmem:[%s7675_s1 + $0x480] ss:$8 sps:$4 sm:$0xff]  }
   0xd   :  { %3116 = vmatprep.subr.bf16.mxu0 %v4890_v13  ;;  %v4924_v36 = vld [vmem:[%s7675_s1 + $0x94] ss:$8 sps:$4 sm:$0xff]   ;;  %v4928_v38 = vld [vmem:[%s7675_s1 + $0x90] ss:$8 sps:$4 sm:$0xff]   ;;  %v4930_v40 = vld [vmem:[%s7675_s1 + $0xa4] ss:$8 sps:$4 sm:$0xff]  }
   0xe   :  { %v4926_v37 = vld [vmem:[%s7675_s1 + $0x494] ss:$8 sps:$4 sm:$0xff]   ;;  %v4929_v39 = vld [vmem:[%s7675_s1 + $0x490] ss:$8 sps:$4 sm:$0xff]   ;;  %v4932_v41 = vld [vmem:[%s7675_s1 + $0x4a4] ss:$8 sps:$4 sm:$0xff]  }
   0xf   :  { %2345 = vmatpush1.bf16.msra.mxu1 %v4892_v14  ;;  %v4934_v42 = vld [vmem:[%s7675_s1 + $0xa0] ss:$8 sps:$4 sm:$0xff]   ;;  %v4936_v44 = vld [vmem:[%s7675_s1 + $0xb4] ss:$8 sps:$4 sm:$0xff]   ;;  %v4940_v50 = vld [vmem:[%s7675_s1 + $0xb0] ss:$8 sps:$4 sm:$0xff]  }
  0x10   :  { %3117 = vmatpush1.bf16.msra.mxu0 %v4893_v15  ;;  %2346 = vmatprep.subr.bf16.mxu1 %v4894_v16  ;;  %v4935_v43 = vld [vmem:[%s7675_s1 + $0x4a0] ss:$8 sps:$4 sm:$0xff]   ;;  %v4938_v45 = vld [vmem:[%s7675_s1 + $0x4b4] ss:$8 sps:$4 sm:$0xff]   ;;  %v4941_v51 = vld [vmem:[%s7675_s1 + $0x4b0] ss:$8 sps:$4 sm:$0xff]  }
  0x11   :  { %3118 = vmatprep.subr.bf16.mxu0 %v4896_v17  ;;  %v23_v46 = vld [vmem:[%s7676_s0 + $0x8] sm:$0xff]  ;;  %v4948_v58 = vld [vmem:[%s7675_s1 + $0xd4] ss:$8 sps:$4 sm:$0xff]   ;;  %v4952_v60 = vld [vmem:[%s7675_s1 + $0xd0] ss:$8 sps:$4 sm:$0xff]  }
  0x12   :  { %v39_v47 = vld [vmem:[%s7676_s0 + $0x88] sm:$0xff]  ;;  %v4950_v59 = vld [vmem:[%s7675_s1 + $0x4d4] ss:$8 sps:$4 sm:$0xff]   ;;  %v4953_v61 = vld [vmem:[%s7675_s1 + $0x4d0] ss:$8 sps:$4 sm:$0xff]  }
  0x13   :  { %2347 = vmatpush1.bf16.msra.mxu1 %v4898_v18  ;;  %v31_v48 = vld [vmem:[%s7676_s0 + $0x48] sm:$0xff]  ;;  %v535_v52 = vpack.c.bf16 %v39_v47, %v23_v46  ;;  %v4960_v2 = vld [vmem:[%s7675_s1 + $0xf4] ss:$8 sps:$4 sm:$0xff]   ;;  %v4964_v4 = vld [vmem:[%s7675_s1 + $0xf0] ss:$8 sps:$4 sm:$0xff]  }
  0x14   :  { %3119 = vmatpush1.bf16.msra.mxu0 %v4899_v19  ;;  %2348 = vmatprep.subr.bf16.mxu1 %v4900_v20  ;;  %v47_v49 = vld [vmem:[%s7676_s0 + $0xc8] sm:$0xff]  ;;  %v4962_v3 = vld [vmem:[%s7675_s1 + $0x4f4] ss:$8 sps:$4 sm:$0xff]   ;;  %v4965_v5 = vld [vmem:[%s7675_s1 + $0x4f0] ss:$8 sps:$4 sm:$0xff]  }
  0x15   :  { %3120 = vmatprep.subr.bf16.mxu0 %v4902_v21  ;;  %v543_v53 = vpack.c.bf16 %v47_v49, %v31_v48  ;;  %v4942_v54 = vld [vmem:[%s7675_s1 + $0xc4] ss:$8 sps:$4 sm:$0xff]   ;;  %2370 = vmatprep.mubr.bf16.mxu1 %v535_v52  ;;  %v4946_v56 = vld [vmem:[%s7675_s1 + $0xc0] ss:$8 sps:$4 sm:$0xff]   ;;  %v4989_v46 = vld [vmem:[%s7675_s1 + $0x534] ss:$8 sps:$4 sm:$0xff]  }
  0x16   :  { %v4944_v55 = vld [vmem:[%s7675_s1 + $0x4c4] ss:$8 sps:$4 sm:$0xff]   ;;  %v4947_v57 = vld [vmem:[%s7675_s1 + $0x4c0] ss:$8 sps:$4 sm:$0xff]   ;;  %v4984_v52 = vld [vmem:[%s7675_s1 + $0x130] ss:$8 sps:$4 sm:$0xff]  }
  0x17   :  { %2349 = vmatpush1.bf16.msra.mxu1 %v4904_v22  ;;  %3142 = vmatprep.mubr.bf16.mxu0 %v543_v53  ;;  %v4954_v62 = vld [vmem:[%s7675_s1 + $0xe4] ss:$8 sps:$4 sm:$0xff]   ;;  %v4958_v0 = vld [vmem:[%s7675_s1 + $0xe0] ss:$8 sps:$4 sm:$0xff]   ;;  %v4974_v22 = vld [vmem:[%s7675_s1 + $0x114] ss:$8 sps:$4 sm:$0xff]  }
  0x18   :  { %3121 = vmatpush1.bf16.msra.mxu0 %v4905_v23  ;;  %2350 = vmatprep.subr.bf16.mxu1 %v4906_v24  ;;  %v4956_v63 = vld [vmem:[%s7675_s1 + $0x4e4] ss:$8 sps:$4 sm:$0xff]   ;;  %v4959_v1 = vld [vmem:[%s7675_s1 + $0x4e0] ss:$8 sps:$4 sm:$0xff]   ;;  %v4987_v53 = vld [vmem:[%s7675_s1 + $0x530] ss:$8 sps:$4 sm:$0xff]  }
  0x19   :  { %3122 = vmatprep.subr.bf16.mxu0 %v4908_v25  ;;  %v22_v6 = vld [vmem:[%s7676_s0] sm:$0xff]  ;;  %v55_v12 = vld [vmem:[%s7676_s0 + $0x108] sm:$0xff]  ;;  %v4972_v25 = vld [vmem:[%s7675_s1 + $0x110] ss:$8 sps:$4 sm:$0xff]  }
  0x1a   :  { %v38_v7 = vld [vmem:[%s7676_s0 + $0x80] sm:$0xff]  ;;  %v71_v13 = vld [vmem:[%s7676_s0 + $0x188] sm:$0xff] }
  0x1b   :  { %2351 = vmatpush1.bf16.msra.mxu1 %v4910_v26  ;;  %v4968_v8 = vld [vmem:[%s7675_s1 + $0x104] ss:$8 sps:$4 sm:$0xff]   ;;  %v534_v16 = vpack.c.bf16 %v38_v7, %v22_v6  ;;  %v4966_v18 = vld [vmem:[%s7675_s1 + $0x100] ss:$8 sps:$4 sm:$0xff]   ;;  %v551_v20 = vpack.c.bf16 %v71_v13, %v55_v12 }
  0x1c   :  { %3123 = vmatpush1.bf16.msra.mxu0 %v4911_v27  ;;  %2352 = vmatprep.subr.bf16.mxu1 %v4912_v28  ;;  %v30_v9 = vld [vmem:[%s7676_s0 + $0x40] sm:$0xff]  ;;  %v63_v14 = vld [vmem:[%s7676_s0 + $0x148] sm:$0xff]  ;;  %v4977_v28 = vld [vmem:[%s7675_s1 + $0x514] ss:$8 sps:$4 sm:$0xff]  }
  0x1d   :  { %3124 = vmatprep.subr.bf16.mxu0 %v4914_v29  ;;  %v46_v10 = vld [vmem:[%s7676_s0 + $0xc0] sm:$0xff]  ;;  %v79_v15 = vld [vmem:[%s7676_s0 + $0x1c8] sm:$0xff]  ;;  %v4975_v29 = vld [vmem:[%s7675_s1 + $0x510] ss:$8 sps:$4 sm:$0xff]  }
  0x1e   :  { %v4971_v11 = vld [vmem:[%s7675_s1 + $0x504] ss:$8 sps:$4 sm:$0xff]   ;;  %v542_v17 = vpack.c.bf16 %v46_v10, %v30_v9  ;;  %v4969_v19 = vld [vmem:[%s7675_s1 + $0x500] ss:$8 sps:$4 sm:$0xff]   ;;  %v559_v21 = vpack.c.bf16 %v79_v15, %v63_v14  ;;  %v4999_v9 = vld [vmem:[%s7675_s1 + $0x550] ss:$8 sps:$4 sm:$0xff]  }
  0x1f   :  { %2353 = vmatpush1.bf16.msra.mxu1 %v4916_v30  ;;  %v54_v23 = vld [vmem:[%s7676_s0 + $0x100] sm:$0xff]  ;;  %v87_v30 = vld [vmem:[%s7676_s0 + $0x208] sm:$0xff] }
  0x20   :  { %3125 = vmatpush1.bf16.msra.mxu0 %v4917_v31  ;;  %2354 = vmatprep.subr.bf16.mxu1 %v4918_v32  ;;  %v70_v24 = vld [vmem:[%s7676_s0 + $0x180] sm:$0xff]  ;;  %v103_v31 = vld [vmem:[%s7676_s0 + $0x288] sm:$0xff] }
  0x21   :  { %3126 = vmatprep.subr.bf16.mxu0 %v4920_v33  ;;  %v62_v26 = vld [vmem:[%s7676_s0 + $0x140] sm:$0xff]  ;;  %v95_v32 = vld [vmem:[%s7676_s0 + $0x248] sm:$0xff] }
  0x22   :  { %v78_v27 = vld [vmem:[%s7676_s0 + $0x1c0] sm:$0xff]  ;;  %v111_v33 = vld [vmem:[%s7676_s0 + $0x2c8] sm:$0xff] }
  0x23   :  { %2355 = vmatpush1.bf16.msra.mxu1 %v4922_v34  ;;  %v4980_v34 = vld [vmem:[%s7675_s1 + $0x124] ss:$8 sps:$4 sm:$0xff]  }
  0x24   :  { %3127 = vmatpush1.bf16.msra.mxu0 %v4923_v35  ;;  %2356 = vmatprep.subr.bf16.mxu1 %v4924_v36  ;;  %v4983_v35 = vld [vmem:[%s7675_s1 + $0x524] ss:$8 sps:$4 sm:$0xff]   ;;  %v550_v36 = vpack.c.bf16 %v70_v24, %v54_v23 }
  0x25   :  { %3128 = vmatprep.subr.bf16.mxu0 %v4926_v37  ;;  %v558_v37 = vpack.c.bf16 %v78_v27, %v62_v26  ;;  %v110_v47 = vld [vmem:[%s7676_s0 + $0x2c0] sm:$0xff]  ;;  %v119_v48 = vld [vmem:[%s7676_s0 + $0x308] sm:$0xff] }
  0x26   :  { %v135_v49 = vld [vmem:[%s7676_s0 + $0x388] sm:$0xff]  ;;  %v174_v23 = vld [vmem:[%s7676_s0 + $0x4c0] sm:$0xff] }
  0x27   :  { %2357 = vmatpush1.bf16.msra.mxu1 %v4928_v38  ;;  %v567_v38 = vpack.c.bf16 %v103_v31, %v87_v30  ;;  %v159_v6 = vld [vmem:[%s7676_s0 + $0x448] sm:$0xff] }
  0x28   :  { %3129 = vmatpush1.bf16.msra.mxu0 %v4929_v39  ;;  %2358 = vmatprep.subr.bf16.mxu1 %v4930_v40  ;;  %v575_v39 = vpack.c.bf16 %v111_v33, %v95_v32  ;;  %v4978_v40 = vld [vmem:[%s7675_s1 + $0x120] ss:$8 sps:$4 sm:$0xff]   ;;  %v5004_v10 = vld [vmem:[%s7675_s1 + $0x164] ss:$8 sps:$4 sm:$0xff]  }
  0x29   :  { %3130 = vmatprep.subr.bf16.mxu0 %v4932_v41  ;;  %v4981_v41 = vld [vmem:[%s7675_s1 + $0x520] ss:$8 sps:$4 sm:$0xff]   ;;  %v5016_v30 = vld [vmem:[%s7675_s1 + $0x184] ss:$8 sps:$4 sm:$0xff]  }
  0x2a   :  { %v175_v7 = vld [vmem:[%s7676_s0 + $0x4c8] sm:$0xff] }
  0x2b   :  { %2359 = vmatpush1.bf16.msra.mxu1 %v4934_v42  ;;  %v86_v42 = vld [vmem:[%s7676_s0 + $0x200] sm:$0xff]  ;;  %v607_v15 = vpack.c.bf16 %v175_v7, %v159_v6  ;;  %v183_v24 = vld [vmem:[%s7676_s0 + $0x508] sm:$0xff] }
  0x2c   :  { %3131 = vmatpush1.bf16.msra.mxu0 %v4935_v43  ;;  %2360 = vmatprep.subr.bf16.mxu1 %v4936_v44  ;;  %v102_v43 = vld [vmem:[%s7676_s0 + $0x280] sm:$0xff]  ;;  %v191_v26 = vld [vmem:[%s7676_s0 + $0x548] sm:$0xff] }
  0x2d   :  { %3132 = vmatprep.subr.bf16.mxu0 %v4938_v45  ;;  %v94_v44 = vld [vmem:[%s7676_s0 + $0x240] sm:$0xff]  ;;  %v4986_v45 = vld [vmem:[%s7675_s1 + $0x134] ss:$8 sps:$4 sm:$0xff]   ;;  %v207_v27 = vld [vmem:[%s7676_s0 + $0x5c8] sm:$0xff] }
  0x2e   :  { %v5019_v31 = vld [vmem:[%s7675_s1 + $0x584] ss:$8 sps:$4 sm:$0xff]  }
  0x2f   :  { %2361 = vmatpush1.bf16.msra.mxu1 %v4940_v50  ;;  %v127_v50 = vld [vmem:[%s7676_s0 + $0x348] sm:$0xff] }
  0x30   :  { %3133 = vmatpush1.bf16.msra.mxu0 %v4941_v51  ;;  %2362 = vmatprep.subr.bf16.mxu1 %v4942_v54  ;;  %v143_v51 = vld [vmem:[%s7676_s0 + $0x3c8] sm:$0xff] }
  0x31   :  { %3134 = vmatprep.subr.bf16.mxu0 %v4944_v55  ;;  %v4992_v54 = vld [vmem:[%s7675_s1 + $0x144] ss:$8 sps:$4 sm:$0xff]  }
  0x32   :  { %v4995_v55 = vld [vmem:[%s7675_s1 + $0x544] ss:$8 sps:$4 sm:$0xff]  }
  0x33   :  { %2363 = vmatpush1.bf16.msra.mxu1 %v4946_v56  ;;  %v566_v56 = vpack.c.bf16 %v102_v43, %v86_v42  ;;  %v5025_v42 = vld [vmem:[%s7675_s1 + $0x594] ss:$8 sps:$4 sm:$0xff]   ;;  %v206_v43 = vld [vmem:[%s7676_s0 + $0x5c0] sm:$0xff] }
  0x34   :  { %3135 = vmatpush1.bf16.msra.mxu0 %v4947_v57  ;;  %2364 = vmatprep.subr.bf16.mxu1 %v4948_v58  ;;  %v574_v57 = vpack.c.bf16 %v110_v47, %v94_v44  ;;  %v583_v58 = vpack.c.bf16 %v135_v49, %v119_v48  ;;  %v215_v44 = vld [vmem:[%s7676_s0 + $0x608] sm:$0xff]  ;;  %v5020_v48 = vld [vmem:[%s7675_s1 + $0x190] ss:$8 sps:$4 sm:$0xff]  }
  0x35   :  { %3136 = vmatprep.subr.bf16.mxu0 %v4950_v59  ;;  %v591_v59 = vpack.c.bf16 %v143_v51, %v127_v50  ;;  %v239_v47 = vld [vmem:[%s7676_s0 + $0x6c8] sm:$0xff]  ;;  %v5023_v49 = vld [vmem:[%s7675_s1 + $0x590] ss:$8 sps:$4 sm:$0xff]  }
  0x36   :  { %v5028_v50 = vld [vmem:[%s7675_s1 + $0x1a4] ss:$8 sps:$4 sm:$0xff]  }
  0x37   :  { %2365 = vmatpush1.bf16.msra.mxu1 %v4952_v60  ;;  %v4990_v60 = vld [vmem:[%s7675_s1 + $0x140] ss:$8 sps:$4 sm:$0xff]   ;;  %v5031_v51 = vld [vmem:[%s7675_s1 + $0x5a4] ss:$8 sps:$4 sm:$0xff]  }
  0x38   :  { %3137 = vmatpush1.bf16.msra.mxu0 %v4953_v61  ;;  %2366 = vmatprep.subr.bf16.mxu1 %v4954_v62  ;;  %v4993_v61 = vld [vmem:[%s7675_s1 + $0x540] ss:$8 sps:$4 sm:$0xff]   ;;  %v4998_v62 = vld [vmem:[%s7675_s1 + $0x154] ss:$8 sps:$4 sm:$0xff]   ;;  %v5040_v6 = vld [vmem:[%s7675_s1 + $0x1c4] ss:$8 sps:$4 sm:$0xff]  }
  0x39   :  { %3138 = vmatprep.subr.bf16.mxu0 %v4956_v63  ;;  %v118_v63 = vld [vmem:[%s7676_s0 + $0x300] sm:$0xff] }
  0x3b   :  { %2367 = vmatpush1.bf16.msra.mxu1 %v4958_v0  ;;  %v134_v0 = vld [vmem:[%s7676_s0 + $0x380] sm:$0xff] }
  0x3c   :  { %3139 = vmatpush1.bf16.msra.mxu0 %v4959_v1  ;;  %2368 = vmatprep.subr.bf16.mxu1 %v4960_v2  ;;  %v126_v1 = vld [vmem:[%s7676_s0 + $0x340] sm:$0xff]  ;;  %v5001_v2 = vld [vmem:[%s7675_s1 + $0x554] ss:$8 sps:$4 sm:$0xff]   ;;  %v582_v12 = vpack.c.bf16 %v134_v0, %v118_v63  ;;  %v247_v0 = vld [vmem:[%s7676_s0 + $0x708] sm:$0xff] }
  0x3d   :  { %3140 = vmatprep.subr.bf16.mxu0 %v4962_v3  ;;  %v142_v3 = vld [vmem:[%s7676_s0 + $0x3c0] sm:$0xff] }
  0x3e   :  { %v590_v13 = vpack.c.bf16 %v142_v3, %v126_v1  ;;  %v238_v63 = vld [vmem:[%s7676_s0 + $0x6c0] sm:$0xff]  ;;  %v263_v1 = vld [vmem:[%s7676_s0 + $0x788] sm:$0xff] }
  0x3f   :  { %2369 = vmatpush1.bf16.msra.mxu1 %v4964_v4  ;;  %v151_v4 = vld [vmem:[%s7676_s0 + $0x408] sm:$0xff] }
  0x40   :  { %3141 = vmatpush1.bf16.msra.mxu0 %v4965_v5  ;;  %2531 = vmatprep.subr.bf16.mxu1 %v4968_v8  ;;  %v167_v5 = vld [vmem:[%s7676_s0 + $0x488] sm:$0xff]  ;;  %v4996_v8 = vld [vmem:[%s7675_s1 + $0x150] ss:$8 sps:$4 sm:$0xff]  }
  0x41   :  { %3303 = vmatprep.subr.bf16.mxu0 %v4971_v11  ;;  %v5007_v11 = vld [vmem:[%s7675_s1 + $0x564] ss:$8 sps:$4 sm:$0xff]   ;;  %v599_v14 = vpack.c.bf16 %v167_v5, %v151_v4  ;;  %v5032_v4 = vld [vmem:[%s7675_s1 + $0x1b0] ss:$8 sps:$4 sm:$0xff]  }
  0x42   :  { %2371 = vmatmul.mubr.bf16.vlgmr.msra.gmra.mrb[0].mxu1 %v534_v16  ;;  %v5002_v16 = vld [vmem:[%s7675_s1 + $0x160] ss:$8 sps:$4 sm:$0xff]   ;;  %v5035_v5 = vld [vmem:[%s7675_s1 + $0x5b0] ss:$8 sps:$4 sm:$0xff]  }
  0x43   :  { %3143 = vmatmul.mubr.bf16.vlgmr.msra.gmra.mrb[0].mxu0 %v542_v17  ;;  %2532 = vmatpush1.bf16.msra.mxu1 %v4966_v18  ;;  %v5005_v17 = vld [vmem:[%s7675_s1 + $0x560] ss:$8 sps:$4 sm:$0xff]  }
  0x44   :  { %3304 = vmatpush1.bf16.msra.mxu0 %v4969_v19  ;;  %2380 = vmatprep.mubr.bf16.mxu1 %v551_v20  ;;  %v150_v18 = vld [vmem:[%s7676_s0 + $0x400] sm:$0xff]  ;;  %v271_v3 = vld [vmem:[%s7676_s0 + $0x7c8] sm:$0xff] }
  0x45   :  { %3152 = vmatprep.mubr.bf16.mxu0 %v559_v21  ;;  %2533 = vmatprep.subr.bf16.mxu1 %v4974_v22  ;;  %v166_v19 = vld [vmem:[%s7676_s0 + $0x480] sm:$0xff]  ;;  %v5010_v21 = vld [vmem:[%s7675_s1 + $0x174] ss:$8 sps:$4 sm:$0xff]  }
  0x46   :  { %3305 = vmatprep.subr.bf16.mxu0 %v4977_v28  ;;  %v158_v20 = vld [vmem:[%s7676_s0 + $0x440] sm:$0xff]  ;;  %v5013_v22 = vld [vmem:[%s7675_s1 + $0x574] ss:$8 sps:$4 sm:$0xff]   ;;  %v5008_v28 = vld [vmem:[%s7675_s1 + $0x170] ss:$8 sps:$4 sm:$0xff]   ;;  %v598_v32 = vpack.c.bf16 %v166_v19, %v150_v18 }
  0x47   :  { %2534 = vmatpush1.bf16.msra.mxu1 %v4972_v25  ;;  %v199_v25 = vld [vmem:[%s7676_s0 + $0x588] sm:$0xff]  ;;  %v606_v33 = vpack.c.bf16 %v174_v23, %v158_v20  ;;  %v5044_v23 = vld [vmem:[%s7675_s1 + $0x1d0] ss:$8 sps:$4 sm:$0xff]  }
  0x48   :  { %3306 = vmatpush1.bf16.msra.mxu0 %v4975_v29  ;;  %2535 = vmatprep.subr.bf16.mxu1 %v4980_v34  ;;  %v5011_v29 = vld [vmem:[%s7675_s1 + $0x570] ss:$8 sps:$4 sm:$0xff]   ;;  %v615_v34 = vpack.c.bf16 %v199_v25, %v183_v24  ;;  %v279_v18 = vld [vmem:[%s7676_s0 + $0x808] sm:$0xff]  ;;  %v5049_v25 = vld [vmem:[%s7675_s1 + $0x5d4] ss:$8 sps:$4 sm:$0xff]  }
  0x49   :  { %3307 = vmatprep.subr.bf16.mxu0 %v4983_v35  ;;  %v623_v35 = vpack.c.bf16 %v207_v27, %v191_v26  ;;  %v295_v19 = vld [vmem:[%s7676_s0 + $0x888] sm:$0xff]  ;;  %v5047_v24 = vld [vmem:[%s7675_s1 + $0x5d0] ss:$8 sps:$4 sm:$0xff]  }
  0x4a   :  { %2381 = vmatmul.mubr.bf16.gmra.mrb[4].mxu1 %v550_v36  ;;  %v5014_v36 = vld [vmem:[%s7675_s1 + $0x180] ss:$8 sps:$4 sm:$0xff]  }
  0x4b   :  { %3153 = vmatmul.mubr.bf16.gmra.mrb[4].mxu0 %v558_v37  ;;  %2390 = vmatprep.mubr.bf16.mxu1 %v567_v38  ;;  %v5017_v37 = vld [vmem:[%s7675_s1 + $0x580] ss:$8 sps:$4 sm:$0xff]   ;;  %v5022_v38 = vld [vmem:[%s7675_s1 + $0x194] ss:$8 sps:$4 sm:$0xff]  }
  0x4c   :  { %3162 = vmatprep.mubr.bf16.mxu0 %v575_v39  ;;  %2536 = vmatpush1.bf16.msra.mxu1 %v4978_v40  ;;  %v182_v39 = vld [vmem:[%s7676_s0 + $0x500] sm:$0xff]  ;;  %v287_v20 = vld [vmem:[%s7676_s0 + $0x848] sm:$0xff] }
  0x4d   :  { %3308 = vmatpush1.bf16.msra.mxu0 %v4981_v41  ;;  %2537 = vmatprep.subr.bf16.mxu1 %v4986_v45  ;;  %v198_v40 = vld [vmem:[%s7676_s0 + $0x580] sm:$0xff]  ;;  %v231_v45 = vld [vmem:[%s7676_s0 + $0x688] sm:$0xff] }
  0x4e   :  { %3309 = vmatprep.subr.bf16.mxu0 %v4989_v46  ;;  %v190_v41 = vld [vmem:[%s7676_s0 + $0x540] sm:$0xff]  ;;  %v223_v46 = vld [vmem:[%s7676_s0 + $0x648] sm:$0xff] }
  0x50   :  { %2538 = vmatpush1.bf16.msra.mxu1 %v4984_v52  ;;  %v614_v52 = vpack.c.bf16 %v198_v40, %v182_v39  ;;  %v327_v39 = vld [vmem:[%s7676_s0 + $0x988] sm:$0xff] }
  0x51   :  { %3310 = vmatpush1.bf16.msra.mxu0 %v4987_v53  ;;  %2539 = vmatprep.subr.bf16.mxu1 %v4992_v54  ;;  %v622_v53 = vpack.c.bf16 %v206_v43, %v190_v41  ;;  %v631_v54 = vpack.c.bf16 %v231_v45, %v215_v44  ;;  %v319_v40 = vld [vmem:[%s7676_s0 + $0x948] sm:$0xff]  ;;  %v5058_v43 = vld [vmem:[%s7675_s1 + $0x1f4] ss:$8 sps:$4 sm:$0xff]  }
  0x52   :  { %3311 = vmatprep.subr.bf16.mxu0 %v4995_v55  ;;  %2391 = vmatmul.mubr.bf16.gmra.mrb[8].mxu1 %v566_v56  ;;  %v639_v55 = vpack.c.bf16 %v239_v47, %v223_v46  ;;  %v5026_v56 = vld [vmem:[%s7675_s1 + $0x1a0] ss:$8 sps:$4 sm:$0xff]   ;;  %v5059_v46 = vld [vmem:[%s7675_s1 + $0x5f0] ss:$8 sps:$4 sm:$0xff]   ;;  %v5061_v47 = vld [vmem:[%s7675_s1 + $0x5f4] ss:$8 sps:$4 sm:$0xff]  }
  0x53   :  { %3163 = vmatmul.mubr.bf16.gmra.mrb[8].mxu0 %v574_v57  ;;  %2400 = vmatprep.mubr.bf16.mxu1 %v583_v58  ;;  %v5029_v57 = vld [vmem:[%s7675_s1 + $0x5a0] ss:$8 sps:$4 sm:$0xff]  }
  0x54   :  { %3172 = vmatprep.mubr.bf16.mxu0 %v591_v59  ;;  %2540 = vmatpush1.bf16.msra.mxu1 %v4990_v60  ;;  %v214_v58 = vld [vmem:[%s7676_s0 + $0x600] sm:$0xff]  ;;  %v335_v41 = vld [vmem:[%s7676_s0 + $0x9c8] sm:$0xff] }
  0x55   :  { %3312 = vmatpush1.bf16.msra.mxu0 %v4993_v61  ;;  %2541 = vmatprep.subr.bf16.mxu1 %v4998_v62  ;;  %v230_v59 = vld [vmem:[%s7676_s0 + $0x680] sm:$0xff]  ;;  %v5034_v61 = vld [vmem:[%s7675_s1 + $0x1b4] ss:$8 sps:$4 sm:$0xff]  }
  0x56   :  { %3313 = vmatprep.subr.bf16.mxu0 %v5001_v2  ;;  %v222_v60 = vld [vmem:[%s7676_s0 + $0x640] sm:$0xff]  ;;  %v5037_v62 = vld [vmem:[%s7675_s1 + $0x5b4] ss:$8 sps:$4 sm:$0xff]   ;;  %v255_v2 = vld [vmem:[%s7676_s0 + $0x748] sm:$0xff]  ;;  %v630_v7 = vpack.c.bf16 %v230_v59, %v214_v58 }
  0x57   :  { %v367_v58 = vld [vmem:[%s7676_s0 + $0xac8] sm:$0xff] }
  0x58   :  { %2542 = vmatpush1.bf16.msra.mxu1 %v4996_v8  ;;  %v638_v8 = vpack.c.bf16 %v238_v63, %v222_v60  ;;  %v5067_v59 = vld [vmem:[%s7675_s1 + $0x604] ss:$8 sps:$4 sm:$0xff]  }
  0x59   :  { %3314 = vmatpush1.bf16.msra.mxu0 %v4999_v9  ;;  %2543 = vmatprep.subr.bf16.mxu1 %v5004_v10  ;;  %v5043_v9 = vld [vmem:[%s7675_s1 + $0x5c4] ss:$8 sps:$4 sm:$0xff]   ;;  %v647_v10 = vpack.c.bf16 %v263_v1, %v247_v0 }
  0x5a   :  { %3315 = vmatprep.subr.bf16.mxu0 %v5007_v11  ;;  %2401 = vmatmul.mubr.bf16.gmra.mrb[12].mxu1 %v582_v12  ;;  %v655_v11 = vpack.c.bf16 %v271_v3, %v255_v2  ;;  %v5038_v12 = vld [vmem:[%s7675_s1 + $0x1c0] ss:$8 sps:$4 sm:$0xff]  }
  0x5b   :  { %3173 = vmatmul.mubr.bf16.gmra.mrb[12].mxu0 %v590_v13  ;;  %2410 = vmatprep.mubr.bf16.mxu1 %v599_v14  ;;  %v5041_v13 = vld [vmem:[%s7675_s1 + $0x5c0] ss:$8 sps:$4 sm:$0xff]  }
  0x5c   :  { %3182 = vmatprep.mubr.bf16.mxu0 %v607_v15  ;;  %2544 = vmatpush1.bf16.msra.mxu1 %v5002_v16  ;;  %v246_v14 = vld [vmem:[%s7676_s0 + $0x700] sm:$0xff] }
  0x5d   :  { %3316 = vmatpush1.bf16.msra.mxu0 %v5005_v17  ;;  %2545 = vmatprep.subr.bf16.mxu1 %v5010_v21  ;;  %v262_v15 = vld [vmem:[%s7676_s0 + $0x780] sm:$0xff]  ;;  %v5046_v21 = vld [vmem:[%s7675_s1 + $0x1d4] ss:$8 sps:$4 sm:$0xff]  }
  0x5e   :  { %3317 = vmatprep.subr.bf16.mxu0 %v5013_v22  ;;  %v254_v16 = vld [vmem:[%s7676_s0 + $0x740] sm:$0xff]  ;;  %v303_v22 = vld [vmem:[%s7676_s0 + $0x8c8] sm:$0xff]  ;;  %v646_v26 = vpack.c.bf16 %v262_v15, %v246_v14 }
  0x5f   :  { %v270_v17 = vld [vmem:[%s7676_s0 + $0x7c0] sm:$0xff] }
  0x60   :  { %2546 = vmatpush1.bf16.msra.mxu1 %v5008_v28  ;;  %v654_v27 = vpack.c.bf16 %v270_v17, %v254_v16  ;;  %v663_v28 = vpack.c.bf16 %v295_v19, %v279_v18  ;;  %v342_v0 = vld [vmem:[%s7676_s0 + $0xa00] sm:$0xff]  ;;  %v407_v16 = vld [vmem:[%s7676_s0 + $0xc08] sm:$0xff] }
  0x61   :  { %3318 = vmatpush1.bf16.msra.mxu0 %v5011_v29  ;;  %2547 = vmatprep.subr.bf16.mxu1 %v5016_v30  ;;  %v671_v29 = vpack.c.bf16 %v303_v22, %v287_v20  ;;  %v5052_v30 = vld [vmem:[%s7675_s1 + $0x1e4] ss:$8 sps:$4 sm:$0xff]  }
  0x62   :  { %3319 = vmatprep.subr.bf16.mxu0 %v5019_v31  ;;  %2411 = vmatmul.mubr.bf16.gmra.mrb[16].mxu1 %v598_v32  ;;  %v5050_v31 = vld [vmem:[%s7675_s1 + $0x1e0] ss:$8 sps:$4 sm:$0xff]  }
  0x63   :  { %3183 = vmatmul.mubr.bf16.gmra.mrb[16].mxu0 %v606_v33  ;;  %2420 = vmatprep.mubr.bf16.mxu1 %v615_v34  ;;  %v278_v32 = vld [vmem:[%s7676_s0 + $0x800] sm:$0xff]  ;;  %v423_v17 = vld [vmem:[%s7676_s0 + $0xc88] sm:$0xff] }
  0x64   :  { %3192 = vmatprep.mubr.bf16.mxu0 %v623_v35  ;;  %2548 = vmatpush1.bf16.msra.mxu1 %v5014_v36  ;;  %v294_v33 = vld [vmem:[%s7676_s0 + $0x880] sm:$0xff]  ;;  %v415_v18 = vld [vmem:[%s7676_s0 + $0xc48] sm:$0xff]  ;;  %v727_v22 = vpack.c.bf16 %v423_v17, %v407_v16 }
  0x65   :  { %3320 = vmatpush1.bf16.msra.mxu0 %v5017_v37  ;;  %2549 = vmatprep.subr.bf16.mxu1 %v5022_v38  ;;  %v286_v34 = vld [vmem:[%s7676_s0 + $0x840] sm:$0xff]  ;;  %v311_v38 = vld [vmem:[%s7676_s0 + $0x908] sm:$0xff]  ;;  %v662_v44 = vpack.c.bf16 %v294_v33, %v278_v32 }
  0x66   :  { %3321 = vmatprep.subr.bf16.mxu0 %v5025_v42  ;;  %v5053_v35 = vld [vmem:[%s7675_s1 + $0x5e0] ss:$8 sps:$4 sm:$0xff]   ;;  %v5055_v36 = vld [vmem:[%s7675_s1 + $0x5e4] ss:$8 sps:$4 sm:$0xff]   ;;  %v5056_v42 = vld [vmem:[%s7675_s1 + $0x1f0] ss:$8 sps:$4 sm:$0xff]  }
  0x67   :  { %v302_v37 = vld [vmem:[%s7676_s0 + $0x8c0] sm:$0xff]  ;;  %v431_v19 = vld [vmem:[%s7676_s0 + $0xcc8] sm:$0xff] }
  0x68   :  { %2550 = vmatpush1.bf16.msra.mxu1 %v5020_v48  ;;  %v670_v45 = vpack.c.bf16 %v302_v37, %v286_v34  ;;  %v679_v48 = vpack.c.bf16 %v327_v39, %v311_v38  ;;  %v358_v1 = vld [vmem:[%s7676_s0 + $0xa80] sm:$0xff] }
  0x69   :  { %3322 = vmatpush1.bf16.msra.mxu0 %v5023_v49  ;;  %2551 = vmatprep.subr.bf16.mxu1 %v5028_v50  ;;  %v687_v49 = vpack.c.bf16 %v335_v41, %v319_v40  ;;  %v310_v50 = vld [vmem:[%s7676_s0 + $0x900] sm:$0xff]  ;;  %v471_v40 = vld [vmem:[%s7676_s0 + $0xe08] sm:$0xff] }
  0x6a   :  { %3323 = vmatprep.subr.bf16.mxu0 %v5031_v51  ;;  %2421 = vmatmul.mubr.bf16.gmra.mrb[20].mxu1 %v614_v52  ;;  %v326_v51 = vld [vmem:[%s7676_s0 + $0x980] sm:$0xff]  ;;  %v487_v41 = vld [vmem:[%s7676_s0 + $0xe88] sm:$0xff] }
  0x6b   :  { %3193 = vmatmul.mubr.bf16.gmra.mrb[20].mxu0 %v622_v53  ;;  %2430 = vmatprep.mubr.bf16.mxu1 %v631_v54  ;;  %v318_v52 = vld [vmem:[%s7676_s0 + $0x940] sm:$0xff]  ;;  %v343_v54 = vld [vmem:[%s7676_s0 + $0xa08] sm:$0xff]  ;;  %v678_v60 = vpack.c.bf16 %v326_v51, %v310_v50 }
  0x6c   :  { %3202 = vmatprep.mubr.bf16.mxu0 %v639_v55  ;;  %2552 = vmatpush1.bf16.msra.mxu1 %v5026_v56  ;;  %v334_v53 = vld [vmem:[%s7676_s0 + $0x9c0] sm:$0xff]  ;;  %v359_v56 = vld [vmem:[%s7676_s0 + $0xa88] sm:$0xff] }
  0x6d   :  { %3324 = vmatpush1.bf16.msra.mxu0 %v5029_v57  ;;  %2553 = vmatprep.subr.bf16.mxu1 %v5034_v61  ;;  %v5064_v55 = vld [vmem:[%s7675_s1 + $0x204] ss:$8 sps:$4 sm:$0xff]   ;;  %v686_v61 = vpack.c.bf16 %v334_v53, %v318_v52 }
  0x6e   :  { %3325 = vmatprep.subr.bf16.mxu0 %v5037_v62  ;;  %v351_v57 = vld [vmem:[%s7676_s0 + $0xa48] sm:$0xff]  ;;  %v695_v62 = vpack.c.bf16 %v359_v56, %v343_v54  ;;  %v350_v2 = vld [vmem:[%s7676_s0 + $0xa40] sm:$0xff] }
  0x6f   :  { %v703_v63 = vpack.c.bf16 %v367_v58, %v351_v57  ;;  %v366_v3 = vld [vmem:[%s7676_s0 + $0xac0] sm:$0xff]  ;;  %v503_v52 = vld [vmem:[%s7676_s0 + $0xf08] sm:$0xff] }
  0x70   :  { %2554 = vmatpush1.bf16.msra.mxu1 %v5032_v4  ;;  %v375_v4 = vld [vmem:[%s7676_s0 + $0xb08] sm:$0xff]  ;;  %v382_v14 = vld [vmem:[%s7676_s0 + $0xb40] sm:$0xff] }
  0x71   :  { %3326 = vmatpush1.bf16.msra.mxu0 %v5035_v5  ;;  %2555 = vmatprep.subr.bf16.mxu1 %v5040_v6  ;;  %v391_v5 = vld [vmem:[%s7676_s0 + $0xb88] sm:$0xff]  ;;  %v398_v15 = vld [vmem:[%s7676_s0 + $0xbc0] sm:$0xff] }
  0x72   :  { %3327 = vmatprep.subr.bf16.mxu0 %v5043_v9  ;;  %2431 = vmatmul.mubr.bf16.gmra.mrb[24].mxu1 %v630_v7  ;;  %v383_v6 = vld [vmem:[%s7676_s0 + $0xb48] sm:$0xff]  ;;  %v702_v9 = vpack.c.bf16 %v366_v3, %v350_v2  ;;  %v454_v37 = vld [vmem:[%s7676_s0 + $0xd80] sm:$0xff]  ;;  %v33_v2 = vld [vmem:[%s7676_s0 + $0x58] sm:$0xff] }
  0x73   :  { %3203 = vmatmul.mubr.bf16.gmra.mrb[24].mxu0 %v638_v8  ;;  %2440 = vmatprep.mubr.bf16.mxu1 %v647_v10  ;;  %v399_v7 = vld [vmem:[%s7676_s0 + $0xbc8] sm:$0xff]  ;;  %v694_v8 = vpack.c.bf16 %v358_v1, %v342_v0  ;;  %v711_v10 = vpack.c.bf16 %v391_v5, %v375_v4  ;;  %v446_v38 = vld [vmem:[%s7676_s0 + $0xd40] sm:$0xff]  ;;  %v25_v0 = vld [vmem:[%s7676_s0 + $0x18] sm:$0xff] }
  0x74   :  { %3212 = vmatprep.mubr.bf16.mxu0 %v655_v11  ;;  %2556 = vmatpush1.bf16.msra.mxu1 %v5038_v12  ;;  %v719_v11 = vpack.c.bf16 %v399_v7, %v383_v6  ;;  %v374_v12 = vld [vmem:[%s7676_s0 + $0xb00] sm:$0xff]  ;;  %v519_v53 = vld [vmem:[%s7676_s0 + $0xf88] sm:$0xff]  ;;  %v41_v1 = vld [vmem:[%s7676_s0 + $0x98] sm:$0xff] }
  0x75   :  { %3328 = vmatpush1.bf16.msra.mxu0 %v5041_v13  ;;  %2557 = vmatprep.subr.bf16.mxu1 %v5046_v21  ;;  %v390_v13 = vld [vmem:[%s7676_s0 + $0xb80] sm:$0xff]  ;;  %v718_v21 = vpack.c.bf16 %v398_v15, %v382_v14  ;;  %v511_v54 = vld [vmem:[%s7676_s0 + $0xf48] sm:$0xff]  ;;  %v775_v58 = vpack.c.bf16 %v519_v53, %v503_v52  ;;  %v49_v3 = vld [vmem:[%s7676_s0 + $0xd8] sm:$0xff]  ;;  %v537_v6 = vpack.c.bf16 %v41_v1, %v25_v0 }
  0x76   :  { %3329 = vmatprep.subr.bf16.mxu0 %v5049_v25  ;;  %v710_v20 = vpack.c.bf16 %v390_v13, %v374_v12  ;;  %v422_v25 = vld [vmem:[%s7676_s0 + $0xc80] sm:$0xff]  ;;  %v545_v7 = vpack.c.bf16 %v49_v3, %v33_v2  ;;  %v57_v12 = vld [vmem:[%s7676_s0 + $0x118] sm:$0xff]  ;;  %v136_v0 = vld [vmem:[%s7676_s0 + $0x390] sm:$0xff] }
  0x77   :  { %v462_v39 = vld [vmem:[%s7676_s0 + $0xdc0] sm:$0xff]  ;;  %v73_v13 = vld [vmem:[%s7676_s0 + $0x198] sm:$0xff]  ;;  %v128_v1 = vld [vmem:[%s7676_s0 + $0x350] sm:$0xff] }
  0x78   :  { %2558 = vmatpush1.bf16.msra.mxu1 %v5044_v23  ;;  %v735_v23 = vpack.c.bf16 %v431_v19, %v415_v18  ;;  %v478_v50 = vld [vmem:[%s7676_s0 + $0xe40] sm:$0xff]  ;;  %v65_v14 = vld [vmem:[%s7676_s0 + $0x158] sm:$0xff]  ;;  %v144_v3 = vld [vmem:[%s7676_s0 + $0x3d0] sm:$0xff] }
  0x79   :  { %3330 = vmatpush1.bf16.msra.mxu0 %v5047_v24  ;;  %2559 = vmatprep.subr.bf16.mxu1 %v5052_v30  ;;  %v406_v24 = vld [vmem:[%s7676_s0 + $0xc00] sm:$0xff]  ;;  %v447_v30 = vld [vmem:[%s7676_s0 + $0xd48] sm:$0xff]  ;;  %v81_v15 = vld [vmem:[%s7676_s0 + $0x1d8] sm:$0xff] }
  0x7a   :  { %2441 = vmatmul.mubr.bf16.gmra.mrb[28].mxu1 %v646_v26  ;;  %3331 = vmatprep.subr.bf16.mxu0 %v5055_v36  ;;  %v414_v26 = vld [vmem:[%s7676_s0 + $0xc40] sm:$0xff]  ;;  %v726_v32 = vpack.c.bf16 %v422_v25, %v406_v24  ;;  %v72_v24 = vld [vmem:[%s7676_s0 + $0x190] sm:$0xff] }
  0x7b   :  { %3213 = vmatmul.mubr.bf16.gmra.mrb[28].mxu0 %v654_v27  ;;  %2450 = vmatprep.mubr.bf16.mxu1 %v663_v28  ;;  %v430_v27 = vld [vmem:[%s7676_s0 + $0xcc0] sm:$0xff]  ;;  %v439_v28 = vld [vmem:[%s7676_s0 + $0xd08] sm:$0xff]  ;;  %v5068_v25 = vld [vmem:[%s7675_s1 + $0x210] ss:$8 sps:$4 sm:$0xff]  }
  0x7c   :  { %3222 = vmatprep.mubr.bf16.mxu0 %v671_v29  ;;  %2560 = vmatpush1.bf16.msra.mxu1 %v5050_v31  ;;  %v455_v29 = vld [vmem:[%s7676_s0 + $0xd88] sm:$0xff]  ;;  %v734_v33 = vpack.c.bf16 %v430_v27, %v414_v26  ;;  %v438_v36 = vld [vmem:[%s7676_s0 + $0xd00] sm:$0xff]  ;;  %v64_v26 = vld [vmem:[%s7676_s0 + $0x150] sm:$0xff] }
  0x7d   :  { %3332 = vmatpush1.bf16.msra.mxu0 %v5053_v35  ;;  %2561 = vmatprep.subr.bf16.mxu1 %v5058_v43  ;;  %v463_v31 = vld [vmem:[%s7676_s0 + $0xdc8] sm:$0xff]  ;;  %v743_v34 = vpack.c.bf16 %v455_v29, %v439_v28  ;;  %v494_v51 = vld [vmem:[%s7676_s0 + $0xec0] sm:$0xff]  ;;  %v80_v27 = vld [vmem:[%s7676_s0 + $0x1d0] sm:$0xff] }
  0x7e   :  { %3333 = vmatprep.subr.bf16.mxu0 %v5061_v47  ;;  %v751_v35 = vpack.c.bf16 %v463_v31, %v447_v30  ;;  %v495_v43 = vld [vmem:[%s7676_s0 + $0xec8] sm:$0xff]  ;;  %v766_v57 = vpack.c.bf16 %v494_v51, %v478_v50  ;;  %v5073_v28 = vld [vmem:[%s7675_s1 + $0x614] ss:$8 sps:$4 sm:$0xff]   ;;  %v5071_v29 = vld [vmem:[%s7675_s1 + $0x610] ss:$8 sps:$4 sm:$0xff]  }
  0x7f   :  { %v5062_v18 = vld [vmem:[%s7675_s1 + $0x200] ss:$8 sps:$4 sm:$0xff]   ;;  %v89_v30 = vld [vmem:[%s7676_s0 + $0x218] sm:$0xff] }
  0x80   :  { %2562 = vmatpush1.bf16.msra.mxu1 %v5056_v42  ;;  %v479_v42 = vld [vmem:[%s7676_s0 + $0xe48] sm:$0xff]  ;;  %v105_v31 = vld [vmem:[%s7676_s0 + $0x298] sm:$0xff] }
  0x81   :  { %3334 = vmatpush1.bf16.msra.mxu0 %v5059_v46  ;;  %2724 = vmatprep.subr.bf16.mxu1 %v5064_v55  ;;  %v759_v46 = vpack.c.bf16 %v487_v41, %v471_v40  ;;  %v767_v47 = vpack.c.bf16 %v495_v43, %v479_v42  ;;  %v527_v55 = vld [vmem:[%s7676_s0 + $0xfc8] sm:$0xff]  ;;  %v88_v42 = vld [vmem:[%s7676_s0 + $0x210] sm:$0xff]  ;;  %v129_v50 = vld [vmem:[%s7676_s0 + $0x358] sm:$0xff] }
  0x82   :  { %2451 = vmatmul.mubr.bf16.gmra.mrb[32].mxu1 %v662_v44  ;;  %3496 = vmatprep.subr.bf16.mxu0 %v5067_v59  ;;  %v742_v44 = vpack.c.bf16 %v454_v37, %v438_v36  ;;  %v783_v59 = vpack.c.bf16 %v527_v55, %v511_v54  ;;  %v5065_v19 = vld [vmem:[%s7675_s1 + $0x600] ss:$8 sps:$4 sm:$0xff]   ;;  %v560_v37 = vpack.c.bf16 %v80_v27, %v64_v26  ;;  %v104_v43 = vld [vmem:[%s7676_s0 + $0x290] sm:$0xff]  ;;  %v145_v51 = vld [vmem:[%s7676_s0 + $0x3d8] sm:$0xff] }
  0x83   :  { %3223 = vmatmul.mubr.bf16.gmra.mrb[32].mxu0 %v670_v45  ;;  %2460 = vmatprep.mubr.bf16.mxu1 %v679_v48  ;;  %v750_v45 = vpack.c.bf16 %v462_v39, %v446_v38  ;;  %v470_v48 = vld [vmem:[%s7676_s0 + $0xe00] sm:$0xff]  ;;  %v569_v38 = vpack.c.bf16 %v105_v31, %v89_v30  ;;  %v5080_v52 = vld [vmem:[%s7675_s1 + $0x230] ss:$8 sps:$4 sm:$0xff]   ;;  %v5097_v2 = vld [vmem:[%s7675_s1 + $0x654] ss:$8 sps:$4 sm:$0xff]  }
  0x84   :  { %3232 = vmatprep.mubr.bf16.mxu0 %v687_v49  ;;  %v486_v49 = vld [vmem:[%s7676_s0 + $0xe80] sm:$0xff]  ;;  %v5083_v53 = vld [vmem:[%s7675_s1 + $0x630] ss:$8 sps:$4 sm:$0xff]  }
  0x85   :  { %v758_v56 = vpack.c.bf16 %v486_v49, %v470_v48  ;;  %v5074_v40 = vld [vmem:[%s7675_s1 + $0x220] ss:$8 sps:$4 sm:$0xff]   ;;  %v121_v48 = vld [vmem:[%s7676_s0 + $0x318] sm:$0xff]  ;;  %v5088_v54 = vld [vmem:[%s7675_s1 + $0x244] ss:$8 sps:$4 sm:$0xff]  }
  0x86   :  { %v5077_v41 = vld [vmem:[%s7675_s1 + $0x620] ss:$8 sps:$4 sm:$0xff]   ;;  %v137_v49 = vld [vmem:[%s7676_s0 + $0x398] sm:$0xff]  ;;  %v5091_v55 = vld [vmem:[%s7675_s1 + $0x644] ss:$8 sps:$4 sm:$0xff]  }
  0x87   :  { %v193_v26 = vld [vmem:[%s7676_s0 + $0x558] sm:$0xff]  ;;  %v5112_v30 = vld [vmem:[%s7675_s1 + $0x284] ss:$8 sps:$4 sm:$0xff]  }
  0x88   :  { %v209_v27 = vld [vmem:[%s7676_s0 + $0x5d8] sm:$0xff]  ;;  %v5115_v31 = vld [vmem:[%s7675_s1 + $0x684] ss:$8 sps:$4 sm:$0xff]  }
  0x8a   :  { %2461 = vmatmul.mubr.bf16.gmra.mrb[36].mxu1 %v678_v60  ;;  %v502_v60 = vld [vmem:[%s7676_s0 + $0xf00] sm:$0xff] }
  0x8b   :  { %3233 = vmatmul.mubr.bf16.gmra.mrb[36].mxu0 %v686_v61  ;;  %2470 = vmatprep.mubr.bf16.mxu1 %v695_v62  ;;  %v518_v61 = vld [vmem:[%s7676_s0 + $0xf80] sm:$0xff] }
  0x8c   :  { %3242 = vmatprep.mubr.bf16.mxu0 %v703_v63  ;;  %v510_v62 = vld [vmem:[%s7676_s0 + $0xf40] sm:$0xff]  ;;  %v774_v4 = vpack.c.bf16 %v518_v61, %v502_v60 }
  0x8d   :  { %v526_v63 = vld [vmem:[%s7676_s0 + $0xfc0] sm:$0xff] }
  0x8e   :  { %v782_v5 = vpack.c.bf16 %v526_v63, %v510_v62  ;;  %v5086_v60 = vld [vmem:[%s7675_s1 + $0x240] ss:$8 sps:$4 sm:$0xff]   ;;  %v5094_v62 = vld [vmem:[%s7675_s1 + $0x254] ss:$8 sps:$4 sm:$0xff]  }
  0x8f   :  { %v5089_v61 = vld [vmem:[%s7675_s1 + $0x640] ss:$8 sps:$4 sm:$0xff]   ;;  %v120_v63 = vld [vmem:[%s7676_s0 + $0x310] sm:$0xff] }
  0x92   :  { %2471 = vmatmul.mubr.bf16.gmra.mrb[40].mxu1 %v694_v8  ;;  %v24_v8 = vld [vmem:[%s7676_s0 + $0x10] sm:$0xff] }
  0x93   :  { %3243 = vmatmul.mubr.bf16.gmra.mrb[40].mxu0 %v702_v9  ;;  %2480 = vmatprep.mubr.bf16.mxu1 %v711_v10  ;;  %v40_v9 = vld [vmem:[%s7676_s0 + $0x90] sm:$0xff] }
  0x94   :  { %3252 = vmatprep.mubr.bf16.mxu0 %v719_v11  ;;  %v32_v10 = vld [vmem:[%s7676_s0 + $0x50] sm:$0xff]  ;;  %v536_v16 = vpack.c.bf16 %v40_v9, %v24_v8 }
  0x95   :  { %v48_v11 = vld [vmem:[%s7676_s0 + $0xd0] sm:$0xff] }
  0x96   :  { %v544_v17 = vpack.c.bf16 %v48_v11, %v32_v10  ;;  %v5092_v8 = vld [vmem:[%s7675_s1 + $0x250] ss:$8 sps:$4 sm:$0xff]   ;;  %v5100_v10 = vld [vmem:[%s7675_s1 + $0x264] ss:$8 sps:$4 sm:$0xff]  }
  0x97   :  { %v5095_v9 = vld [vmem:[%s7675_s1 + $0x650] ss:$8 sps:$4 sm:$0xff]   ;;  %v5103_v11 = vld [vmem:[%s7675_s1 + $0x664] ss:$8 sps:$4 sm:$0xff]  }
  0x9a   :  { %2481 = vmatmul.mubr.bf16.gmra.mrb[44].mxu1 %v710_v20  ;;  %v553_v20 = vpack.c.bf16 %v73_v13, %v57_v12  ;;  %v584_v12 = vpack.c.bf16 %v136_v0, %v120_v63  ;;  %v592_v13 = vpack.c.bf16 %v144_v3, %v128_v1  ;;  %v240_v63 = vld [vmem:[%s7676_s0 + $0x6d0] sm:$0xff]  ;;  %v249_v0 = vld [vmem:[%s7676_s0 + $0x718] sm:$0xff] }
  0x9b   :  { %3253 = vmatmul.mubr.bf16.gmra.mrb[44].mxu0 %v718_v21  ;;  %2490 = vmatprep.mubr.bf16.mxu1 %v727_v22  ;;  %v561_v21 = vpack.c.bf16 %v81_v15, %v65_v14  ;;  %v5070_v22 = vld [vmem:[%s7675_s1 + $0x214] ss:$8 sps:$4 sm:$0xff]  }
  0x9c   :  { %3262 = vmatprep.mubr.bf16.mxu0 %v735_v23  ;;  %v56_v23 = vld [vmem:[%s7676_s0 + $0x110] sm:$0xff]  ;;  %v265_v1 = vld [vmem:[%s7676_s0 + $0x798] sm:$0xff] }
  0x9d   :  { %v552_v36 = vpack.c.bf16 %v72_v24, %v56_v23  ;;  %v176_v23 = vld [vmem:[%s7676_s0 + $0x4d0] sm:$0xff]  ;;  %v185_v24 = vld [vmem:[%s7676_s0 + $0x518] sm:$0xff] }
  0x9e   :  { %v273_v3 = vld [vmem:[%s7676_s0 + $0x7d8] sm:$0xff] }
  0xa2   :  { %2491 = vmatmul.mubr.bf16.gmra.mrb[48].mxu1 %v726_v32  ;;  %v97_v32 = vld [vmem:[%s7676_s0 + $0x258] sm:$0xff] }
  0xa3   :  { %3263 = vmatmul.mubr.bf16.gmra.mrb[48].mxu0 %v734_v33  ;;  %2500 = vmatprep.mubr.bf16.mxu1 %v743_v34  ;;  %v113_v33 = vld [vmem:[%s7676_s0 + $0x2d8] sm:$0xff]  ;;  %v5076_v34 = vld [vmem:[%s7675_s1 + $0x224] ss:$8 sps:$4 sm:$0xff]  }
  0xa4   :  { %3272 = vmatprep.mubr.bf16.mxu0 %v751_v35  ;;  %v5079_v35 = vld [vmem:[%s7675_s1 + $0x624] ss:$8 sps:$4 sm:$0xff]   ;;  %v577_v39 = vpack.c.bf16 %v113_v33, %v97_v32 }
  0xaa   :  { %2501 = vmatmul.mubr.bf16.gmra.mrb[52].mxu1 %v742_v44  ;;  %v96_v44 = vld [vmem:[%s7676_s0 + $0x250] sm:$0xff] }
  0xab   :  { %3273 = vmatmul.mubr.bf16.gmra.mrb[52].mxu0 %v750_v45  ;;  %2510 = vmatprep.mubr.bf16.mxu1 %v759_v46  ;;  %v5082_v45 = vld [vmem:[%s7675_s1 + $0x234] ss:$8 sps:$4 sm:$0xff]  }
  0xac   :  { %3282 = vmatprep.mubr.bf16.mxu0 %v767_v47  ;;  %v5085_v46 = vld [vmem:[%s7675_s1 + $0x634] ss:$8 sps:$4 sm:$0xff]  }
  0xad   :  { %v112_v47 = vld [vmem:[%s7676_s0 + $0x2d0] sm:$0xff] }
  0xb2   :  { %2511 = vmatmul.mubr.bf16.gmra.mrb[56].mxu1 %v758_v56  ;;  %v568_v56 = vpack.c.bf16 %v104_v43, %v88_v42  ;;  %v5121_v42 = vld [vmem:[%s7675_s1 + $0x694] ss:$8 sps:$4 sm:$0xff]  }
  0xb3   :  { %3283 = vmatmul.mubr.bf16.gmra.mrb[56].mxu0 %v766_v57  ;;  %2520 = vmatprep.mubr.bf16.mxu1 %v775_v58  ;;  %v576_v57 = vpack.c.bf16 %v112_v47, %v96_v44  ;;  %v585_v58 = vpack.c.bf16 %v137_v49, %v121_v48  ;;  %v208_v43 = vld [vmem:[%s7676_s0 + $0x5d0] sm:$0xff]  ;;  %v217_v44 = vld [vmem:[%s7676_s0 + $0x618] sm:$0xff] }
  0xb4   :  { %3292 = vmatprep.mubr.bf16.mxu0 %v783_v59  ;;  %v593_v59 = vpack.c.bf16 %v145_v51, %v129_v50  ;;  %v241_v47 = vld [vmem:[%s7676_s0 + $0x6d8] sm:$0xff]  ;;  %v5124_v50 = vld [vmem:[%s7675_s1 + $0x2a4] ss:$8 sps:$4 sm:$0xff]  }
  0xb5   :  { %v5116_v48 = vld [vmem:[%s7675_s1 + $0x290] ss:$8 sps:$4 sm:$0xff]   ;;  %v5127_v51 = vld [vmem:[%s7675_s1 + $0x6a4] ss:$8 sps:$4 sm:$0xff]  }
  0xb6   :  { %v5119_v49 = vld [vmem:[%s7675_s1 + $0x690] ss:$8 sps:$4 sm:$0xff]  }
  0xba   :  { %2521 = vmatmul.mubr.bf16.gmra.mrb[60].mxu1 %v774_v4  ;;  %v153_v4 = vld [vmem:[%s7676_s0 + $0x418] sm:$0xff] }
  0xbb   :  { %3293 = vmatmul.mubr.bf16.gmra.mrb[60].mxu0 %v782_v5  ;;  %2563 = vmatprep.mubr.bf16.mxu1 %v537_v6  ;;  %v169_v5 = vld [vmem:[%s7676_s0 + $0x498] sm:$0xff] }
  0xbc   :  { %3335 = vmatprep.mubr.bf16.mxu0 %v545_v7  ;;  %v161_v6 = vld [vmem:[%s7676_s0 + $0x458] sm:$0xff]  ;;  %v601_v14 = vpack.c.bf16 %v169_v5, %v153_v4 }
  0xbd   :  { %v177_v7 = vld [vmem:[%s7676_s0 + $0x4d8] sm:$0xff] }
  0xbe   :  { %v609_v15 = vpack.c.bf16 %v177_v7, %v161_v6  ;;  %v5128_v4 = vld [vmem:[%s7675_s1 + $0x2b0] ss:$8 sps:$4 sm:$0xff]   ;;  %v5136_v6 = vld [vmem:[%s7675_s1 + $0x2c4] ss:$8 sps:$4 sm:$0xff]  }
  0xbf   :  { %v5131_v5 = vld [vmem:[%s7675_s1 + $0x6b0] ss:$8 sps:$4 sm:$0xff]   ;;  %v5139_v7 = vld [vmem:[%s7675_s1 + $0x6c4] ss:$8 sps:$4 sm:$0xff]  }
  0xc2   :  { %2564 = vmatmul.mubr.bf16.vlgmr.msra.gmra.mrb[0].mxu1 %v536_v16  ;;  %v5098_v16 = vld [vmem:[%s7675_s1 + $0x260] ss:$8 sps:$4 sm:$0xff]  }
  0xc3   :  { %3336 = vmatmul.mubr.bf16.vlgmr.msra.gmra.mrb[0].mxu0 %v544_v17  ;;  %2725 = vmatpush1.bf16.msra.mxu1 %v5062_v18  ;;  %v5101_v17 = vld [vmem:[%s7675_s1 + $0x660] ss:$8 sps:$4 sm:$0xff]   ;;  %v152_v18 = vld [vmem:[%s7676_s0 + $0x410] sm:$0xff] }
  0xc4   :  { %3497 = vmatpush1.bf16.msra.mxu0 %v5065_v19  ;;  %2573 = vmatprep.mubr.bf16.mxu1 %v553_v20  ;;  %v168_v19 = vld [vmem:[%s7676_s0 + $0x490] sm:$0xff] }
  0xc5   :  { %3345 = vmatprep.mubr.bf16.mxu0 %v561_v21  ;;  %2726 = vmatprep.subr.bf16.mxu1 %v5070_v22  ;;  %v160_v20 = vld [vmem:[%s7676_s0 + $0x450] sm:$0xff]  ;;  %v600_v32 = vpack.c.bf16 %v168_v19, %v152_v18 }
  0xc6   :  { %3498 = vmatprep.subr.bf16.mxu0 %v5073_v28  ;;  %v5106_v21 = vld [vmem:[%s7675_s1 + $0x274] ss:$8 sps:$4 sm:$0xff]   ;;  %v5104_v28 = vld [vmem:[%s7675_s1 + $0x270] ss:$8 sps:$4 sm:$0xff]   ;;  %v608_v33 = vpack.c.bf16 %v176_v23, %v160_v20 }
  0xc7   :  { %2727 = vmatpush1.bf16.msra.mxu1 %v5068_v25  ;;  %v5109_v22 = vld [vmem:[%s7675_s1 + $0x674] ss:$8 sps:$4 sm:$0xff]  }
  0xc8   :  { %3499 = vmatpush1.bf16.msra.mxu0 %v5071_v29  ;;  %2728 = vmatprep.subr.bf16.mxu1 %v5076_v34  ;;  %v201_v25 = vld [vmem:[%s7676_s0 + $0x598] sm:$0xff]  ;;  %v272_v19 = vld [vmem:[%s7676_s0 + $0x7d0] sm:$0xff] }
  0xc9   :  { %3500 = vmatprep.subr.bf16.mxu0 %v5079_v35  ;;  %v5107_v29 = vld [vmem:[%s7675_s1 + $0x670] ss:$8 sps:$4 sm:$0xff]   ;;  %v617_v34 = vpack.c.bf16 %v201_v25, %v185_v24  ;;  %v625_v35 = vpack.c.bf16 %v209_v27, %v193_v26  ;;  %v5145_v18 = vld [vmem:[%s7675_s1 + $0x6d4] ss:$8 sps:$4 sm:$0xff]   ;;  %v5148_v26 = vld [vmem:[%s7675_s1 + $0x2e4] ss:$8 sps:$4 sm:$0xff]  }
  0xca   :  { %2574 = vmatmul.mubr.bf16.gmra.mrb[4].mxu1 %v552_v36  ;;  %v5110_v36 = vld [vmem:[%s7675_s1 + $0x280] ss:$8 sps:$4 sm:$0xff]   ;;  %v281_v20 = vld [vmem:[%s7676_s0 + $0x818] sm:$0xff]  ;;  %v5151_v27 = vld [vmem:[%s7675_s1 + $0x6e4] ss:$8 sps:$4 sm:$0xff]  }
  0xcb   :  { %3346 = vmatmul.mubr.bf16.gmra.mrb[4].mxu0 %v560_v37  ;;  %2583 = vmatprep.mubr.bf16.mxu1 %v569_v38  ;;  %v5113_v37 = vld [vmem:[%s7675_s1 + $0x680] ss:$8 sps:$4 sm:$0xff]   ;;  %v5118_v38 = vld [vmem:[%s7675_s1 + $0x294] ss:$8 sps:$4 sm:$0xff]   ;;  %v5140_v24 = vld [vmem:[%s7675_s1 + $0x2d0] ss:$8 sps:$4 sm:$0xff]  }
  0xcc   :  { %3355 = vmatprep.mubr.bf16.mxu0 %v577_v39  ;;  %2729 = vmatpush1.bf16.msra.mxu1 %v5074_v40  ;;  %v184_v39 = vld [vmem:[%s7676_s0 + $0x510] sm:$0xff]  ;;  %v305_v23 = vld [vmem:[%s7676_s0 + $0x8d8] sm:$0xff] }
  0xcd   :  { %3501 = vmatpush1.bf16.msra.mxu0 %v5077_v41  ;;  %2730 = vmatprep.subr.bf16.mxu1 %v5082_v45  ;;  %v200_v40 = vld [vmem:[%s7676_s0 + $0x590] sm:$0xff]  ;;  %v233_v45 = vld [vmem:[%s7676_s0 + $0x698] sm:$0xff] }
  0xce   :  { %3502 = vmatprep.subr.bf16.mxu0 %v5085_v46  ;;  %v192_v41 = vld [vmem:[%s7676_s0 + $0x550] sm:$0xff]  ;;  %v225_v46 = vld [vmem:[%s7676_s0 + $0x658] sm:$0xff] }
  0xcf   :  { %v5143_v25 = vld [vmem:[%s7675_s1 + $0x6d0] ss:$8 sps:$4 sm:$0xff]  }
  0xd0   :  { %2731 = vmatpush1.bf16.msra.mxu1 %v5080_v52  ;;  %v616_v52 = vpack.c.bf16 %v200_v40, %v184_v39  ;;  %v304_v39 = vld [vmem:[%s7676_s0 + $0x8d0] sm:$0xff]  ;;  %v313_v40 = vld [vmem:[%s7676_s0 + $0x918] sm:$0xff] }
  0xd1   :  { %3503 = vmatpush1.bf16.msra.mxu0 %v5083_v53  ;;  %2732 = vmatprep.subr.bf16.mxu1 %v5088_v54  ;;  %v624_v53 = vpack.c.bf16 %v208_v43, %v192_v41  ;;  %v633_v54 = vpack.c.bf16 %v233_v45, %v217_v44  ;;  %v329_v41 = vld [vmem:[%s7676_s0 + $0x998] sm:$0xff] }
  0xd2   :  { %3504 = vmatprep.subr.bf16.mxu0 %v5091_v55  ;;  %2584 = vmatmul.mubr.bf16.gmra.mrb[8].mxu1 %v568_v56  ;;  %v641_v55 = vpack.c.bf16 %v241_v47, %v225_v46  ;;  %v5122_v56 = vld [vmem:[%s7675_s1 + $0x2a0] ss:$8 sps:$4 sm:$0xff]   ;;  %v337_v43 = vld [vmem:[%s7676_s0 + $0x9d8] sm:$0xff]  ;;  %v5160_v46 = vld [vmem:[%s7675_s1 + $0x304] ss:$8 sps:$4 sm:$0xff]  }
  0xd3   :  { %3356 = vmatmul.mubr.bf16.gmra.mrb[8].mxu0 %v576_v57  ;;  %2593 = vmatprep.mubr.bf16.mxu1 %v585_v58  ;;  %v5125_v57 = vld [vmem:[%s7675_s1 + $0x6a0] ss:$8 sps:$4 sm:$0xff]   ;;  %v216_v58 = vld [vmem:[%s7676_s0 + $0x610] sm:$0xff]  ;;  %v5163_v47 = vld [vmem:[%s7675_s1 + $0x704] ss:$8 sps:$4 sm:$0xff]  }
  0xd4   :  { %3365 = vmatprep.mubr.bf16.mxu0 %v593_v59  ;;  %2733 = vmatpush1.bf16.msra.mxu1 %v5086_v60  ;;  %v232_v59 = vld [vmem:[%s7676_s0 + $0x690] sm:$0xff] }
  0xd5   :  { %3505 = vmatpush1.bf16.msra.mxu0 %v5089_v61  ;;  %2734 = vmatprep.subr.bf16.mxu1 %v5094_v62  ;;  %v224_v60 = vld [vmem:[%s7676_s0 + $0x650] sm:$0xff] }
  0xd6   :  { %3506 = vmatprep.subr.bf16.mxu0 %v5097_v2  ;;  %v5130_v61 = vld [vmem:[%s7675_s1 + $0x2b4] ss:$8 sps:$4 sm:$0xff]   ;;  %v5152_v44 = vld [vmem:[%s7675_s1 + $0x2f0] ss:$8 sps:$4 sm:$0xff]  }
  0xd7   :  { %v5133_v62 = vld [vmem:[%s7675_s1 + $0x6b4] ss:$8 sps:$4 sm:$0xff]   ;;  %v5155_v45 = vld [vmem:[%s7675_s1 + $0x6f0] ss:$8 sps:$4 sm:$0xff]  }
  0xd8   :  { %2735 = vmatpush1.bf16.msra.mxu1 %v5092_v8  ;;  %v257_v2 = vld [vmem:[%s7676_s0 + $0x758] sm:$0xff]  ;;  %v632_v8 = vpack.c.bf16 %v232_v59, %v216_v58 }
  0xd9   :  { %3507 = vmatpush1.bf16.msra.mxu0 %v5095_v9  ;;  %2736 = vmatprep.subr.bf16.mxu1 %v5100_v10  ;;  %v640_v9 = vpack.c.bf16 %v240_v63, %v224_v60  ;;  %v649_v10 = vpack.c.bf16 %v265_v1, %v249_v0  ;;  %v353_v58 = vld [vmem:[%s7676_s0 + $0xa58] sm:$0xff]  ;;  %v344_v0 = vld [vmem:[%s7676_s0 + $0xa10] sm:$0xff] }
  0xda   :  { %3508 = vmatprep.subr.bf16.mxu0 %v5103_v11  ;;  %2594 = vmatmul.mubr.bf16.gmra.mrb[12].mxu1 %v584_v12  ;;  %v657_v11 = vpack.c.bf16 %v273_v3, %v257_v2  ;;  %v5134_v12 = vld [vmem:[%s7675_s1 + $0x2c0] ss:$8 sps:$4 sm:$0xff]   ;;  %v369_v59 = vld [vmem:[%s7676_s0 + $0xad8] sm:$0xff]  ;;  %v360_v1 = vld [vmem:[%s7676_s0 + $0xa90] sm:$0xff] }
  0xdb   :  { %3366 = vmatmul.mubr.bf16.gmra.mrb[12].mxu0 %v592_v13  ;;  %2603 = vmatprep.mubr.bf16.mxu1 %v601_v14  ;;  %v5137_v13 = vld [vmem:[%s7675_s1 + $0x6c0] ss:$8 sps:$4 sm:$0xff]   ;;  %v5142_v14 = vld [vmem:[%s7675_s1 + $0x2d4] ss:$8 sps:$4 sm:$0xff]   ;;  %v705_v63 = vpack.c.bf16 %v369_v59, %v353_v58 }
  0xdc   :  { %3375 = vmatprep.mubr.bf16.mxu0 %v609_v15  ;;  %2737 = vmatpush1.bf16.msra.mxu1 %v5098_v16  ;;  %v248_v15 = vld [vmem:[%s7676_s0 + $0x710] sm:$0xff] }
  0xdd   :  { %3509 = vmatpush1.bf16.msra.mxu0 %v5101_v17  ;;  %2738 = vmatprep.subr.bf16.mxu1 %v5106_v21  ;;  %v264_v16 = vld [vmem:[%s7676_s0 + $0x790] sm:$0xff]  ;;  %v297_v21 = vld [vmem:[%s7676_s0 + $0x898] sm:$0xff] }
  0xde   :  { %3510 = vmatprep.subr.bf16.mxu0 %v5109_v22  ;;  %v256_v17 = vld [vmem:[%s7676_s0 + $0x750] sm:$0xff]  ;;  %v289_v22 = vld [vmem:[%s7676_s0 + $0x858] sm:$0xff] }
  0xdf   :  { %v352_v2 = vld [vmem:[%s7676_s0 + $0xa50] sm:$0xff] }
  0xe0   :  { %2739 = vmatpush1.bf16.msra.mxu1 %v5104_v28  ;;  %v648_v28 = vpack.c.bf16 %v264_v16, %v248_v15  ;;  %v368_v3 = vld [vmem:[%s7676_s0 + $0xad0] sm:$0xff]  ;;  %v409_v16 = vld [vmem:[%s7676_s0 + $0xc18] sm:$0xff] }
  0xe1   :  { %3511 = vmatpush1.bf16.msra.mxu0 %v5107_v29  ;;  %2740 = vmatprep.subr.bf16.mxu1 %v5112_v30  ;;  %v656_v29 = vpack.c.bf16 %v272_v19, %v256_v17  ;;  %v665_v30 = vpack.c.bf16 %v297_v21, %v281_v20  ;;  %v400_v15 = vld [vmem:[%s7676_s0 + $0xbd0] sm:$0xff]  ;;  %v425_v17 = vld [vmem:[%s7676_s0 + $0xc98] sm:$0xff] }
  0xe2   :  { %3512 = vmatprep.subr.bf16.mxu0 %v5115_v31  ;;  %2604 = vmatmul.mubr.bf16.gmra.mrb[16].mxu1 %v600_v32  ;;  %v673_v31 = vpack.c.bf16 %v305_v23, %v289_v22  ;;  %v5146_v32 = vld [vmem:[%s7675_s1 + $0x2e0] ss:$8 sps:$4 sm:$0xff]   ;;  %v433_v19 = vld [vmem:[%s7676_s0 + $0xcd8] sm:$0xff]  ;;  %v729_v22 = vpack.c.bf16 %v425_v17, %v409_v16 }
  0xe3   :  { %3376 = vmatmul.mubr.bf16.gmra.mrb[16].mxu0 %v608_v33  ;;  %2613 = vmatprep.mubr.bf16.mxu1 %v617_v34  ;;  %v5149_v33 = vld [vmem:[%s7675_s1 + $0x6e0] ss:$8 sps:$4 sm:$0xff]   ;;  %v280_v34 = vld [vmem:[%s7676_s0 + $0x810] sm:$0xff] }
  0xe4   :  { %3385 = vmatprep.mubr.bf16.mxu0 %v625_v35  ;;  %2741 = vmatpush1.bf16.msra.mxu1 %v5110_v36  ;;  %v296_v35 = vld [vmem:[%s7676_s0 + $0x890] sm:$0xff] }
  0xe5   :  { %3513 = vmatpush1.bf16.msra.mxu0 %v5113_v37  ;;  %2742 = vmatprep.subr.bf16.mxu1 %v5118_v38  ;;  %v288_v36 = vld [vmem:[%s7676_s0 + $0x850] sm:$0xff] }
  0xe6   :  { %3514 = vmatprep.subr.bf16.mxu0 %v5121_v42  ;;  %v5154_v37 = vld [vmem:[%s7675_s1 + $0x2f4] ss:$8 sps:$4 sm:$0xff]  }
  0xe7   :  { %v5157_v38 = vld [vmem:[%s7675_s1 + $0x6f4] ss:$8 sps:$4 sm:$0xff]  }
  0xe8   :  { %2743 = vmatpush1.bf16.msra.mxu1 %v5116_v48  ;;  %v321_v42 = vld [vmem:[%s7676_s0 + $0x958] sm:$0xff]  ;;  %v664_v48 = vpack.c.bf16 %v296_v35, %v280_v34 }
  0xe9   :  { %3515 = vmatpush1.bf16.msra.mxu0 %v5119_v49  ;;  %2744 = vmatprep.subr.bf16.mxu1 %v5124_v50  ;;  %v672_v49 = vpack.c.bf16 %v304_v39, %v288_v36  ;;  %v681_v50 = vpack.c.bf16 %v329_v41, %v313_v40  ;;  %v440_v36 = vld [vmem:[%s7676_s0 + $0xd10] sm:$0xff]  ;;  %v473_v40 = vld [vmem:[%s7676_s0 + $0xe18] sm:$0xff] }
  0xea   :  { %3516 = vmatprep.subr.bf16.mxu0 %v5127_v51  ;;  %2614 = vmatmul.mubr.bf16.gmra.mrb[20].mxu1 %v616_v52  ;;  %v689_v51 = vpack.c.bf16 %v337_v43, %v321_v42  ;;  %v312_v52 = vld [vmem:[%s7676_s0 + $0x910] sm:$0xff]  ;;  %v489_v41 = vld [vmem:[%s7676_s0 + $0xe98] sm:$0xff] }
  0xeb   :  { %3386 = vmatmul.mubr.bf16.gmra.mrb[20].mxu0 %v624_v53  ;;  %2623 = vmatprep.mubr.bf16.mxu1 %v633_v54  ;;  %v328_v53 = vld [vmem:[%s7676_s0 + $0x990] sm:$0xff]  ;;  %v481_v42 = vld [vmem:[%s7676_s0 + $0xe58] sm:$0xff] }
  0xec   :  { %3395 = vmatprep.mubr.bf16.mxu0 %v641_v55  ;;  %2745 = vmatpush1.bf16.msra.mxu1 %v5122_v56  ;;  %v320_v54 = vld [vmem:[%s7676_s0 + $0x950] sm:$0xff]  ;;  %v345_v56 = vld [vmem:[%s7676_s0 + $0xa18] sm:$0xff]  ;;  %v680_v60 = vpack.c.bf16 %v328_v53, %v312_v52 }
  0xed   :  { %3517 = vmatpush1.bf16.msra.mxu0 %v5125_v57  ;;  %2746 = vmatprep.subr.bf16.mxu1 %v5130_v61  ;;  %v336_v55 = vld [vmem:[%s7676_s0 + $0x9d0] sm:$0xff]  ;;  %v361_v57 = vld [vmem:[%s7676_s0 + $0xa98] sm:$0xff] }
  0xee   :  { %3518 = vmatprep.subr.bf16.mxu0 %v5133_v62  ;;  %v688_v61 = vpack.c.bf16 %v336_v55, %v320_v54  ;;  %v697_v62 = vpack.c.bf16 %v361_v57, %v345_v56  ;;  %v464_v39 = vld [vmem:[%s7676_s0 + $0xdd0] sm:$0xff]  ;;  %v497_v43 = vld [vmem:[%s7676_s0 + $0xed8] sm:$0xff] }
  0xef   :  { %v505_v52 = vld [vmem:[%s7676_s0 + $0xf18] sm:$0xff] }
  0xf0   :  { %2747 = vmatpush1.bf16.msra.mxu1 %v5128_v4  ;;  %v377_v4 = vld [vmem:[%s7676_s0 + $0xb18] sm:$0xff] }
  0xf1   :  { %3519 = vmatpush1.bf16.msra.mxu0 %v5131_v5  ;;  %2748 = vmatprep.subr.bf16.mxu1 %v5136_v6  ;;  %v393_v5 = vld [vmem:[%s7676_s0 + $0xb98] sm:$0xff] }
  0xf2   :  { %3520 = vmatprep.subr.bf16.mxu0 %v5139_v7  ;;  %2624 = vmatmul.mubr.bf16.gmra.mrb[24].mxu1 %v632_v8  ;;  %v385_v6 = vld [vmem:[%s7676_s0 + $0xb58] sm:$0xff]  ;;  %v696_v8 = vpack.c.bf16 %v360_v1, %v344_v0  ;;  %v27_v0 = vld [vmem:[%s7676_s0 + $0x28] sm:$0xff] }
  0xf3   :  { %3396 = vmatmul.mubr.bf16.gmra.mrb[24].mxu0 %v640_v9  ;;  %2633 = vmatprep.mubr.bf16.mxu1 %v649_v10  ;;  %v401_v7 = vld [vmem:[%s7676_s0 + $0xbd8] sm:$0xff]  ;;  %v704_v9 = vpack.c.bf16 %v368_v3, %v352_v2  ;;  %v713_v10 = vpack.c.bf16 %v393_v5, %v377_v4  ;;  %v43_v1 = vld [vmem:[%s7676_s0 + $0xa8] sm:$0xff] }
  0xf4   :  { %3405 = vmatprep.mubr.bf16.mxu0 %v657_v11  ;;  %2749 = vmatpush1.bf16.msra.mxu1 %v5134_v12  ;;  %v721_v11 = vpack.c.bf16 %v401_v7, %v385_v6  ;;  %v376_v12 = vld [vmem:[%s7676_s0 + $0xb10] sm:$0xff]  ;;  %v521_v53 = vld [vmem:[%s7676_s0 + $0xf98] sm:$0xff]  ;;  %v35_v2 = vld [vmem:[%s7676_s0 + $0x68] sm:$0xff]  ;;  %v539_v6 = vpack.c.bf16 %v43_v1, %v27_v0 }
  0xf5   :  { %3521 = vmatpush1.bf16.msra.mxu0 %v5137_v13  ;;  %2750 = vmatprep.subr.bf16.mxu1 %v5142_v14  ;;  %v392_v13 = vld [vmem:[%s7676_s0 + $0xb90] sm:$0xff]  ;;  %v513_v54 = vld [vmem:[%s7676_s0 + $0xf58] sm:$0xff]  ;;  %v777_v58 = vpack.c.bf16 %v521_v53, %v505_v52  ;;  %v51_v3 = vld [vmem:[%s7676_s0 + $0xe8] sm:$0xff] }
  0xf6   :  { %3522 = vmatprep.subr.bf16.mxu0 %v5145_v18  ;;  %v384_v14 = vld [vmem:[%s7676_s0 + $0xb50] sm:$0xff]  ;;  %v417_v18 = vld [vmem:[%s7676_s0 + $0xc58] sm:$0xff]  ;;  %v712_v20 = vpack.c.bf16 %v392_v13, %v376_v12  ;;  %v547_v7 = vpack.c.bf16 %v51_v3, %v35_v2  ;;  %v59_v12 = vld [vmem:[%s7676_s0 + $0x128] sm:$0xff] }
  0xf7   :  { %v720_v21 = vpack.c.bf16 %v400_v15, %v384_v14  ;;  %v737_v23 = vpack.c.bf16 %v433_v19, %v417_v18  ;;  %v529_v55 = vld [vmem:[%s7676_s0 + $0xfd8] sm:$0xff]  ;;  %v75_v13 = vld [vmem:[%s7676_s0 + $0x1a8] sm:$0xff]  ;;  %v138_v1 = vld [vmem:[%s7676_s0 + $0x3a0] sm:$0xff] }
  0xf8   :  { %2751 = vmatpush1.bf16.msra.mxu1 %v5140_v24  ;;  %v408_v24 = vld [vmem:[%s7676_s0 + $0xc10] sm:$0xff]  ;;  %v785_v59 = vpack.c.bf16 %v529_v55, %v513_v54  ;;  %v67_v14 = vld [vmem:[%s7676_s0 + $0x168] sm:$0xff]  ;;  %v130_v2 = vld [vmem:[%s7676_s0 + $0x360] sm:$0xff] }
  0xf9   :  { %3523 = vmatpush1.bf16.msra.mxu0 %v5143_v25  ;;  %2752 = vmatprep.subr.bf16.mxu1 %v5148_v26  ;;  %v424_v25 = vld [vmem:[%s7676_s0 + $0xc90] sm:$0xff]  ;;  %v83_v15 = vld [vmem:[%s7676_s0 + $0x1e8] sm:$0xff]  ;;  %v146_v3 = vld [vmem:[%s7676_s0 + $0x3e0] sm:$0xff] }
  0xfa   :  { %3524 = vmatprep.subr.bf16.mxu0 %v5151_v27  ;;  %2634 = vmatmul.mubr.bf16.gmra.mrb[28].mxu1 %v648_v28  ;;  %v416_v26 = vld [vmem:[%s7676_s0 + $0xc50] sm:$0xff]  ;;  %v441_v28 = vld [vmem:[%s7676_s0 + $0xd18] sm:$0xff]  ;;  %v5158_v18 = vld [vmem:[%s7675_s1 + $0x300] ss:$8 sps:$4 sm:$0xff]  }
  0xfb   :  { %3406 = vmatmul.mubr.bf16.gmra.mrb[28].mxu0 %v656_v29  ;;  %2643 = vmatprep.mubr.bf16.mxu1 %v665_v30  ;;  %v432_v27 = vld [vmem:[%s7676_s0 + $0xcd0] sm:$0xff]  ;;  %v457_v29 = vld [vmem:[%s7676_s0 + $0xd98] sm:$0xff]  ;;  %v5161_v19 = vld [vmem:[%s7675_s1 + $0x700] ss:$8 sps:$4 sm:$0xff]  }
  0xfc   :  { %3415 = vmatprep.mubr.bf16.mxu0 %v673_v31  ;;  %2753 = vmatpush1.bf16.msra.mxu1 %v5146_v32  ;;  %v449_v30 = vld [vmem:[%s7676_s0 + $0xd58] sm:$0xff]  ;;  %v728_v32 = vpack.c.bf16 %v424_v25, %v408_v24  ;;  %v745_v34 = vpack.c.bf16 %v457_v29, %v441_v28  ;;  %v82_v28 = vld [vmem:[%s7676_s0 + $0x1e0] sm:$0xff] }
  0xfd   :  { %3525 = vmatpush1.bf16.msra.mxu0 %v5149_v33  ;;  %2754 = vmatprep.subr.bf16.mxu1 %v5154_v37  ;;  %v465_v31 = vld [vmem:[%s7676_s0 + $0xdd8] sm:$0xff]  ;;  %v736_v33 = vpack.c.bf16 %v432_v27, %v416_v26  ;;  %v456_v37 = vld [vmem:[%s7676_s0 + $0xd90] sm:$0xff]  ;;  %v66_v27 = vld [vmem:[%s7676_s0 + $0x160] sm:$0xff] }
  0xfe   :  { %3526 = vmatprep.subr.bf16.mxu0 %v5157_v38  ;;  %v753_v35 = vpack.c.bf16 %v465_v31, %v449_v30  ;;  %v448_v38 = vld [vmem:[%s7676_s0 + $0xd50] sm:$0xff]  ;;  %v91_v30 = vld [vmem:[%s7676_s0 + $0x228] sm:$0xff] }
  0xff   :  { %v5164_v24 = vld [vmem:[%s7675_s1 + $0x310] ss:$8 sps:$4 sm:$0xff]   ;;  %v5166_v25 = vld [vmem:[%s7675_s1 + $0x314] ss:$8 sps:$4 sm:$0xff]   ;;  %v107_v31 = vld [vmem:[%s7676_s0 + $0x2a8] sm:$0xff] }
 0x100   :  { %2755 = vmatpush1.bf16.msra.mxu1 %v5152_v44  ;;  %v744_v44 = vpack.c.bf16 %v456_v37, %v440_v36  ;;  %v5169_v26 = vld [vmem:[%s7675_s1 + $0x714] ss:$8 sps:$4 sm:$0xff]   ;;  %v5167_v29 = vld [vmem:[%s7675_s1 + $0x710] ss:$8 sps:$4 sm:$0xff]   ;;  %v562_v37 = vpack.c.bf16 %v82_v28, %v66_v27  ;;  %v5184_v54 = vld [vmem:[%s7675_s1 + $0x344] ss:$8 sps:$4 sm:$0xff]  }
 0x101   :  { %3527 = vmatpush1.bf16.msra.mxu0 %v5155_v45  ;;  %2917 = vmatprep.subr.bf16.mxu1 %v5160_v46  ;;  %v752_v45 = vpack.c.bf16 %v464_v39, %v448_v38  ;;  %v761_v46 = vpack.c.bf16 %v489_v41, %v473_v40  ;;  %v571_v38 = vpack.c.bf16 %v107_v31, %v91_v30  ;;  %v5170_v40 = vld [vmem:[%s7675_s1 + $0x320] ss:$8 sps:$4 sm:$0xff]   ;;  %v5176_v52 = vld [vmem:[%s7675_s1 + $0x330] ss:$8 sps:$4 sm:$0xff]   ;;  %v5187_v55 = vld [vmem:[%s7675_s1 + $0x744] ss:$8 sps:$4 sm:$0xff]  }
 0x102   :  { %3689 = vmatprep.subr.bf16.mxu0 %v5163_v47  ;;  %2644 = vmatmul.mubr.bf16.gmra.mrb[32].mxu1 %v664_v48  ;;  %v769_v47 = vpack.c.bf16 %v497_v43, %v481_v42  ;;  %v472_v48 = vld [vmem:[%s7676_s0 + $0xe10] sm:$0xff]  ;;  %v5173_v41 = vld [vmem:[%s7675_s1 + $0x720] ss:$8 sps:$4 sm:$0xff]   ;;  %v5208_v30 = vld [vmem:[%s7675_s1 + $0x384] ss:$8 sps:$4 sm:$0xff]  }
 0x103   :  { %3416 = vmatmul.mubr.bf16.gmra.mrb[32].mxu0 %v672_v49  ;;  %2653 = vmatprep.mubr.bf16.mxu1 %v681_v50  ;;  %v488_v49 = vld [vmem:[%s7676_s0 + $0xe90] sm:$0xff]  ;;  %v90_v42 = vld [vmem:[%s7676_s0 + $0x220] sm:$0xff]  ;;  %v211_v27 = vld [vmem:[%s7676_s0 + $0x5e8] sm:$0xff] }
 0x104   :  { %3425 = vmatprep.mubr.bf16.mxu0 %v689_v51  ;;  %v480_v50 = vld [vmem:[%s7676_s0 + $0xe50] sm:$0xff]  ;;  %v760_v56 = vpack.c.bf16 %v488_v49, %v472_v48  ;;  %v123_v48 = vld [vmem:[%s7676_s0 + $0x328] sm:$0xff] }
 0x105   :  { %v496_v51 = vld [vmem:[%s7676_s0 + $0xed0] sm:$0xff]  ;;  %v139_v49 = vld [vmem:[%s7676_s0 + $0x3a8] sm:$0xff] }
 0x106   :  { %v768_v57 = vpack.c.bf16 %v496_v51, %v480_v50  ;;  %v5178_v43 = vld [vmem:[%s7675_s1 + $0x334] ss:$8 sps:$4 sm:$0xff]   ;;  %v131_v50 = vld [vmem:[%s7676_s0 + $0x368] sm:$0xff]  ;;  %v5179_v53 = vld [vmem:[%s7675_s1 + $0x730] ss:$8 sps:$4 sm:$0xff]  }
 0x107   :  { %v147_v51 = vld [vmem:[%s7676_s0 + $0x3e8] sm:$0xff]  ;;  %v5193_v0 = vld [vmem:[%s7675_s1 + $0x754] ss:$8 sps:$4 sm:$0xff]   ;;  %v5200_v28 = vld [vmem:[%s7675_s1 + $0x370] ss:$8 sps:$4 sm:$0xff]  }
 0x108   :  { %v5211_v31 = vld [vmem:[%s7675_s1 + $0x784] ss:$8 sps:$4 sm:$0xff]  }
 0x10a   :  { %2654 = vmatmul.mubr.bf16.gmra.mrb[36].mxu1 %v680_v60  ;;  %v504_v60 = vld [vmem:[%s7676_s0 + $0xf10] sm:$0xff] }
 0x10b   :  { %3426 = vmatmul.mubr.bf16.gmra.mrb[36].mxu0 %v688_v61  ;;  %2663 = vmatprep.mubr.bf16.mxu1 %v697_v62  ;;  %v520_v61 = vld [vmem:[%s7676_s0 + $0xf90] sm:$0xff] }
 0x10c   :  { %3435 = vmatprep.mubr.bf16.mxu0 %v705_v63  ;;  %v512_v62 = vld [vmem:[%s7676_s0 + $0xf50] sm:$0xff]  ;;  %v776_v4 = vpack.c.bf16 %v520_v61, %v504_v60  ;;  %v5182_v60 = vld [vmem:[%s7675_s1 + $0x340] ss:$8 sps:$4 sm:$0xff]  }
 0x10d   :  { %v528_v63 = vld [vmem:[%s7676_s0 + $0xfd0] sm:$0xff]  ;;  %v5185_v61 = vld [vmem:[%s7675_s1 + $0x740] ss:$8 sps:$4 sm:$0xff]  }
 0x10e   :  { %v784_v5 = vpack.c.bf16 %v528_v63, %v512_v62  ;;  %v122_v62 = vld [vmem:[%s7676_s0 + $0x320] sm:$0xff]  ;;  %v5190_v63 = vld [vmem:[%s7675_s1 + $0x354] ss:$8 sps:$4 sm:$0xff]  }
 0x112   :  { %2664 = vmatmul.mubr.bf16.gmra.mrb[40].mxu1 %v696_v8  ;;  %v26_v8 = vld [vmem:[%s7676_s0 + $0x20] sm:$0xff] }
 0x113   :  { %3436 = vmatmul.mubr.bf16.gmra.mrb[40].mxu0 %v704_v9  ;;  %2673 = vmatprep.mubr.bf16.mxu1 %v713_v10  ;;  %v42_v9 = vld [vmem:[%s7676_s0 + $0xa0] sm:$0xff] }
 0x114   :  { %3445 = vmatprep.mubr.bf16.mxu0 %v721_v11  ;;  %v34_v10 = vld [vmem:[%s7676_s0 + $0x60] sm:$0xff]  ;;  %v538_v16 = vpack.c.bf16 %v42_v9, %v26_v8  ;;  %v5188_v8 = vld [vmem:[%s7675_s1 + $0x350] ss:$8 sps:$4 sm:$0xff]  }
 0x115   :  { %v50_v11 = vld [vmem:[%s7676_s0 + $0xe0] sm:$0xff]  ;;  %v5191_v9 = vld [vmem:[%s7675_s1 + $0x750] ss:$8 sps:$4 sm:$0xff]  }
 0x116   :  { %v546_v17 = vpack.c.bf16 %v50_v11, %v34_v10  ;;  %v5196_v10 = vld [vmem:[%s7675_s1 + $0x364] ss:$8 sps:$4 sm:$0xff]  }
 0x117   :  { %v5199_v11 = vld [vmem:[%s7675_s1 + $0x764] ss:$8 sps:$4 sm:$0xff]  }
 0x11a   :  { %2674 = vmatmul.mubr.bf16.gmra.mrb[44].mxu1 %v712_v20  ;;  %v555_v20 = vpack.c.bf16 %v75_v13, %v59_v12  ;;  %v586_v12 = vpack.c.bf16 %v138_v1, %v122_v62  ;;  %v594_v13 = vpack.c.bf16 %v146_v3, %v130_v2  ;;  %v226_v62 = vld [vmem:[%s7676_s0 + $0x660] sm:$0xff]  ;;  %v267_v1 = vld [vmem:[%s7676_s0 + $0x7a8] sm:$0xff] }
 0x11b   :  { %3446 = vmatmul.mubr.bf16.gmra.mrb[44].mxu0 %v720_v21  ;;  %2683 = vmatprep.mubr.bf16.mxu1 %v729_v22  ;;  %v563_v21 = vpack.c.bf16 %v83_v15, %v67_v14  ;;  %v58_v22 = vld [vmem:[%s7676_s0 + $0x120] sm:$0xff]  ;;  %v259_v2 = vld [vmem:[%s7676_s0 + $0x768] sm:$0xff] }
 0x11c   :  { %3455 = vmatprep.mubr.bf16.mxu0 %v737_v23  ;;  %v74_v23 = vld [vmem:[%s7676_s0 + $0x1a0] sm:$0xff]  ;;  %v275_v3 = vld [vmem:[%s7676_s0 + $0x7e8] sm:$0xff] }
 0x11d   :  { %v554_v36 = vpack.c.bf16 %v74_v23, %v58_v22  ;;  %v162_v22 = vld [vmem:[%s7676_s0 + $0x460] sm:$0xff] }
 0x11e   :  { %v178_v23 = vld [vmem:[%s7676_s0 + $0x4e0] sm:$0xff] }
 0x122   :  { %2684 = vmatmul.mubr.bf16.gmra.mrb[48].mxu1 %v728_v32  ;;  %v99_v32 = vld [vmem:[%s7676_s0 + $0x268] sm:$0xff] }
 0x123   :  { %3456 = vmatmul.mubr.bf16.gmra.mrb[48].mxu0 %v736_v33  ;;  %2693 = vmatprep.mubr.bf16.mxu1 %v745_v34  ;;  %v115_v33 = vld [vmem:[%s7676_s0 + $0x2e8] sm:$0xff] }
 0x124   :  { %3465 = vmatprep.mubr.bf16.mxu0 %v753_v35  ;;  %v5172_v34 = vld [vmem:[%s7675_s1 + $0x324] ss:$8 sps:$4 sm:$0xff]   ;;  %v579_v39 = vpack.c.bf16 %v115_v33, %v99_v32  ;;  %v610_v33 = vpack.c.bf16 %v178_v23, %v162_v22 }
 0x125   :  { %v5175_v35 = vld [vmem:[%s7675_s1 + $0x724] ss:$8 sps:$4 sm:$0xff]  }
 0x126   :  { %v291_v22 = vld [vmem:[%s7676_s0 + $0x868] sm:$0xff] }
 0x127   :  { %v307_v23 = vld [vmem:[%s7676_s0 + $0x8e8] sm:$0xff] }
 0x12a   :  { %2694 = vmatmul.mubr.bf16.gmra.mrb[52].mxu1 %v744_v44  ;;  %v5181_v44 = vld [vmem:[%s7675_s1 + $0x734] ss:$8 sps:$4 sm:$0xff]  }
 0x12b   :  { %3466 = vmatmul.mubr.bf16.gmra.mrb[52].mxu0 %v752_v45  ;;  %2703 = vmatprep.mubr.bf16.mxu1 %v761_v46  ;;  %v106_v45 = vld [vmem:[%s7676_s0 + $0x2a0] sm:$0xff] }
 0x12c   :  { %3475 = vmatprep.mubr.bf16.mxu0 %v769_v47  ;;  %v98_v46 = vld [vmem:[%s7676_s0 + $0x260] sm:$0xff] }
 0x12d   :  { %v114_v47 = vld [vmem:[%s7676_s0 + $0x2e0] sm:$0xff] }
 0x132   :  { %2704 = vmatmul.mubr.bf16.gmra.mrb[56].mxu1 %v760_v56  ;;  %v570_v56 = vpack.c.bf16 %v106_v45, %v90_v42  ;;  %v194_v42 = vld [vmem:[%s7676_s0 + $0x560] sm:$0xff]  ;;  %v235_v45 = vld [vmem:[%s7676_s0 + $0x6a8] sm:$0xff] }
 0x133   :  { %3476 = vmatmul.mubr.bf16.gmra.mrb[56].mxu0 %v768_v57  ;;  %2713 = vmatprep.mubr.bf16.mxu1 %v777_v58  ;;  %v578_v57 = vpack.c.bf16 %v114_v47, %v98_v46  ;;  %v587_v58 = vpack.c.bf16 %v139_v49, %v123_v48  ;;  %v227_v46 = vld [vmem:[%s7676_s0 + $0x668] sm:$0xff]  ;;  %v5212_v48 = vld [vmem:[%s7675_s1 + $0x390] ss:$8 sps:$4 sm:$0xff]  }
 0x134   :  { %3485 = vmatprep.mubr.bf16.mxu0 %v785_v59  ;;  %v595_v59 = vpack.c.bf16 %v147_v51, %v131_v50  ;;  %v243_v47 = vld [vmem:[%s7676_s0 + $0x6e8] sm:$0xff]  ;;  %v5215_v49 = vld [vmem:[%s7675_s1 + $0x790] ss:$8 sps:$4 sm:$0xff]  }
 0x135   :  { %v5220_v50 = vld [vmem:[%s7675_s1 + $0x3a4] ss:$8 sps:$4 sm:$0xff]  }
 0x136   :  { %v5223_v51 = vld [vmem:[%s7675_s1 + $0x7a4] ss:$8 sps:$4 sm:$0xff]  }
 0x13a   :  { %2714 = vmatmul.mubr.bf16.gmra.mrb[60].mxu1 %v776_v4  ;;  %v155_v4 = vld [vmem:[%s7676_s0 + $0x428] sm:$0xff] }
 0x13b   :  { %3486 = vmatmul.mubr.bf16.gmra.mrb[60].mxu0 %v784_v5  ;;  %2756 = vmatprep.mubr.bf16.mxu1 %v539_v6  ;;  %v171_v5 = vld [vmem:[%s7676_s0 + $0x4a8] sm:$0xff] }
 0x13c   :  { %3528 = vmatprep.mubr.bf16.mxu0 %v547_v7  ;;  %v163_v6 = vld [vmem:[%s7676_s0 + $0x468] sm:$0xff]  ;;  %v603_v14 = vpack.c.bf16 %v171_v5, %v155_v4  ;;  %v5224_v4 = vld [vmem:[%s7675_s1 + $0x3b0] ss:$8 sps:$4 sm:$0xff]  }
 0x13d   :  { %v179_v7 = vld [vmem:[%s7676_s0 + $0x4e8] sm:$0xff]  ;;  %v5227_v5 = vld [vmem:[%s7675_s1 + $0x7b0] ss:$8 sps:$4 sm:$0xff]  }
 0x13e   :  { %v611_v15 = vpack.c.bf16 %v179_v7, %v163_v6  ;;  %v5232_v6 = vld [vmem:[%s7675_s1 + $0x3c4] ss:$8 sps:$4 sm:$0xff]  }
 0x13f   :  { %v5235_v7 = vld [vmem:[%s7675_s1 + $0x7c4] ss:$8 sps:$4 sm:$0xff]  }
 0x142   :  { %2757 = vmatmul.mubr.bf16.vlgmr.msra.gmra.mrb[0].mxu1 %v538_v16  ;;  %v5194_v16 = vld [vmem:[%s7675_s1 + $0x360] ss:$8 sps:$4 sm:$0xff]  }
 0x143   :  { %3529 = vmatmul.mubr.bf16.vlgmr.msra.gmra.mrb[0].mxu0 %v546_v17  ;;  %2918 = vmatpush1.bf16.msra.mxu1 %v5158_v18  ;;  %v5197_v17 = vld [vmem:[%s7675_s1 + $0x760] ss:$8 sps:$4 sm:$0xff]  }
 0x144   :  { %3690 = vmatpush1.bf16.msra.mxu0 %v5161_v19  ;;  %2766 = vmatprep.mubr.bf16.mxu1 %v555_v20  ;;  %v154_v18 = vld [vmem:[%s7676_s0 + $0x420] sm:$0xff]  ;;  %v5202_v19 = vld [vmem:[%s7675_s1 + $0x374] ss:$8 sps:$4 sm:$0xff]  }
 0x145   :  { %3538 = vmatprep.mubr.bf16.mxu0 %v563_v21  ;;  %2919 = vmatprep.subr.bf16.mxu1 %v5166_v25  ;;  %v5205_v20 = vld [vmem:[%s7675_s1 + $0x774] ss:$8 sps:$4 sm:$0xff]   ;;  %v170_v21 = vld [vmem:[%s7676_s0 + $0x4a0] sm:$0xff]  ;;  %v203_v25 = vld [vmem:[%s7676_s0 + $0x5a8] sm:$0xff] }
 0x146   :  { %3691 = vmatprep.subr.bf16.mxu0 %v5169_v26  ;;  %v195_v26 = vld [vmem:[%s7676_s0 + $0x568] sm:$0xff]  ;;  %v602_v32 = vpack.c.bf16 %v170_v21, %v154_v18  ;;  %v258_v18 = vld [vmem:[%s7676_s0 + $0x760] sm:$0xff] }
 0x147   :  { %2920 = vmatpush1.bf16.msra.mxu1 %v5164_v24  ;;  %v187_v24 = vld [vmem:[%s7676_s0 + $0x528] sm:$0xff] }
 0x148   :  { %3692 = vmatpush1.bf16.msra.mxu0 %v5167_v29  ;;  %2921 = vmatprep.subr.bf16.mxu1 %v5172_v34  ;;  %v5203_v29 = vld [vmem:[%s7675_s1 + $0x770] ss:$8 sps:$4 sm:$0xff]   ;;  %v619_v34 = vpack.c.bf16 %v203_v25, %v187_v24  ;;  %v299_v21 = vld [vmem:[%s7676_s0 + $0x8a8] sm:$0xff] }
 0x149   :  { %3693 = vmatprep.subr.bf16.mxu0 %v5175_v35  ;;  %v627_v35 = vpack.c.bf16 %v211_v27, %v195_v26  ;;  %v5236_v24 = vld [vmem:[%s7675_s1 + $0x3d0] ss:$8 sps:$4 sm:$0xff]   ;;  %v5244_v26 = vld [vmem:[%s7675_s1 + $0x3e4] ss:$8 sps:$4 sm:$0xff]  }
 0x14a   :  { %2767 = vmatmul.mubr.bf16.gmra.mrb[4].mxu1 %v554_v36  ;;  %v5206_v36 = vld [vmem:[%s7675_s1 + $0x380] ss:$8 sps:$4 sm:$0xff]   ;;  %v5239_v25 = vld [vmem:[%s7675_s1 + $0x7d0] ss:$8 sps:$4 sm:$0xff]   ;;  %v5247_v27 = vld [vmem:[%s7675_s1 + $0x7e4] ss:$8 sps:$4 sm:$0xff]  }
 0x14b   :  { %3539 = vmatmul.mubr.bf16.gmra.mrb[4].mxu0 %v562_v37  ;;  %2776 = vmatprep.mubr.bf16.mxu1 %v571_v38  ;;  %v5209_v37 = vld [vmem:[%s7675_s1 + $0x780] ss:$8 sps:$4 sm:$0xff]  }
 0x14c   :  { %3548 = vmatprep.mubr.bf16.mxu0 %v579_v39  ;;  %2922 = vmatpush1.bf16.msra.mxu1 %v5170_v40  ;;  %v186_v38 = vld [vmem:[%s7676_s0 + $0x520] sm:$0xff]  ;;  %v5214_v39 = vld [vmem:[%s7675_s1 + $0x394] ss:$8 sps:$4 sm:$0xff]  }
 0x14d   :  { %3694 = vmatpush1.bf16.msra.mxu0 %v5173_v41  ;;  %2923 = vmatprep.subr.bf16.mxu1 %v5178_v43  ;;  %v5217_v40 = vld [vmem:[%s7675_s1 + $0x794] ss:$8 sps:$4 sm:$0xff]   ;;  %v202_v41 = vld [vmem:[%s7676_s0 + $0x5a0] sm:$0xff] }
 0x14e   :  { %3695 = vmatprep.subr.bf16.mxu0 %v5181_v44  ;;  %v210_v43 = vld [vmem:[%s7676_s0 + $0x5e0] sm:$0xff]  ;;  %v219_v44 = vld [vmem:[%s7676_s0 + $0x628] sm:$0xff] }
 0x150   :  { %2924 = vmatpush1.bf16.msra.mxu1 %v5176_v52  ;;  %v618_v52 = vpack.c.bf16 %v202_v41, %v186_v38  ;;  %v290_v38 = vld [vmem:[%s7676_s0 + $0x860] sm:$0xff]  ;;  %v331_v41 = vld [vmem:[%s7676_s0 + $0x9a8] sm:$0xff] }
 0x151   :  { %3696 = vmatpush1.bf16.msra.mxu0 %v5179_v53  ;;  %2925 = vmatprep.subr.bf16.mxu1 %v5184_v54  ;;  %v626_v53 = vpack.c.bf16 %v210_v43, %v194_v42  ;;  %v635_v54 = vpack.c.bf16 %v235_v45, %v219_v44  ;;  %v323_v42 = vld [vmem:[%s7676_s0 + $0x968] sm:$0xff]  ;;  %v5248_v44 = vld [vmem:[%s7675_s1 + $0x3f0] ss:$8 sps:$4 sm:$0xff]  }
 0x152   :  { %3697 = vmatprep.subr.bf16.mxu0 %v5187_v55  ;;  %2777 = vmatmul.mubr.bf16.gmra.mrb[8].mxu1 %v570_v56  ;;  %v643_v55 = vpack.c.bf16 %v243_v47, %v227_v46  ;;  %v5218_v56 = vld [vmem:[%s7675_s1 + $0x3a0] ss:$8 sps:$4 sm:$0xff]   ;;  %v5251_v45 = vld [vmem:[%s7675_s1 + $0x7f0] ss:$8 sps:$4 sm:$0xff]  }
 0x153   :  { %3549 = vmatmul.mubr.bf16.gmra.mrb[8].mxu0 %v578_v57  ;;  %2786 = vmatprep.mubr.bf16.mxu1 %v587_v58  ;;  %v5221_v57 = vld [vmem:[%s7675_s1 + $0x7a0] ss:$8 sps:$4 sm:$0xff]  }
 0x154   :  { %3558 = vmatprep.mubr.bf16.mxu0 %v595_v59  ;;  %2926 = vmatpush1.bf16.msra.mxu1 %v5182_v60  ;;  %v218_v58 = vld [vmem:[%s7676_s0 + $0x620] sm:$0xff]  ;;  %v5226_v59 = vld [vmem:[%s7675_s1 + $0x3b4] ss:$8 sps:$4 sm:$0xff]   ;;  %v339_v43 = vld [vmem:[%s7676_s0 + $0x9e8] sm:$0xff] }
 0x155   :  { %3698 = vmatpush1.bf16.msra.mxu0 %v5185_v61  ;;  %2927 = vmatprep.subr.bf16.mxu1 %v5190_v63  ;;  %v5229_v60 = vld [vmem:[%s7675_s1 + $0x7b4] ss:$8 sps:$4 sm:$0xff]   ;;  %v234_v61 = vld [vmem:[%s7676_s0 + $0x6a0] sm:$0xff] }
 0x156   :  { %3699 = vmatprep.subr.bf16.mxu0 %v5193_v0  ;;  %v242_v63 = vld [vmem:[%s7676_s0 + $0x6e0] sm:$0xff]  ;;  %v251_v0 = vld [vmem:[%s7676_s0 + $0x728] sm:$0xff] }
 0x158   :  { %2928 = vmatpush1.bf16.msra.mxu1 %v5188_v8  ;;  %v634_v8 = vpack.c.bf16 %v234_v61, %v218_v58 }
 0x159   :  { %3700 = vmatpush1.bf16.msra.mxu0 %v5191_v9  ;;  %2929 = vmatprep.subr.bf16.mxu1 %v5196_v10  ;;  %v642_v9 = vpack.c.bf16 %v242_v63, %v226_v62  ;;  %v651_v10 = vpack.c.bf16 %v267_v1, %v251_v0  ;;  %v346_v62 = vld [vmem:[%s7676_s0 + $0xa20] sm:$0xff] }
 0x15a   :  { %3701 = vmatprep.subr.bf16.mxu0 %v5199_v11  ;;  %2787 = vmatmul.mubr.bf16.gmra.mrb[12].mxu1 %v586_v12  ;;  %v659_v11 = vpack.c.bf16 %v275_v3, %v259_v2  ;;  %v5230_v12 = vld [vmem:[%s7675_s1 + $0x3c0] ss:$8 sps:$4 sm:$0xff]  }
 0x15b   :  { %3559 = vmatmul.mubr.bf16.gmra.mrb[12].mxu0 %v594_v13  ;;  %2796 = vmatprep.mubr.bf16.mxu1 %v603_v14  ;;  %v5233_v13 = vld [vmem:[%s7675_s1 + $0x7c0] ss:$8 sps:$4 sm:$0xff]  }
 0x15c   :  { %3568 = vmatprep.mubr.bf16.mxu0 %v611_v15  ;;  %2930 = vmatpush1.bf16.msra.mxu1 %v5194_v16  ;;  %v250_v14 = vld [vmem:[%s7676_s0 + $0x720] sm:$0xff]  ;;  %v5238_v15 = vld [vmem:[%s7675_s1 + $0x3d4] ss:$8 sps:$4 sm:$0xff]   ;;  %v379_v2 = vld [vmem:[%s7676_s0 + $0xb28] sm:$0xff] }
 0x15d   :  { %3702 = vmatpush1.bf16.msra.mxu0 %v5197_v17  ;;  %2931 = vmatprep.subr.bf16.mxu1 %v5202_v19  ;;  %v5241_v16 = vld [vmem:[%s7675_s1 + $0x7d4] ss:$8 sps:$4 sm:$0xff]   ;;  %v266_v17 = vld [vmem:[%s7676_s0 + $0x7a0] sm:$0xff]  ;;  %v395_v3 = vld [vmem:[%s7676_s0 + $0xba8] sm:$0xff] }
 0x15e   :  { %3703 = vmatprep.subr.bf16.mxu0 %v5205_v20  ;;  %v274_v19 = vld [vmem:[%s7676_s0 + $0x7e0] sm:$0xff]  ;;  %v283_v20 = vld [vmem:[%s7676_s0 + $0x828] sm:$0xff] }
 0x15f   :  { %v362_v63 = vld [vmem:[%s7676_s0 + $0xaa0] sm:$0xff] }
 0x160   :  { %2932 = vmatpush1.bf16.msra.mxu1 %v5200_v28  ;;  %v650_v28 = vpack.c.bf16 %v266_v17, %v250_v14  ;;  %v354_v0 = vld [vmem:[%s7676_s0 + $0xa60] sm:$0xff]  ;;  %v411_v14 = vld [vmem:[%s7676_s0 + $0xc28] sm:$0xff] }
 0x161   :  { %3704 = vmatpush1.bf16.msra.mxu0 %v5203_v29  ;;  %2933 = vmatprep.subr.bf16.mxu1 %v5208_v30  ;;  %v658_v29 = vpack.c.bf16 %v274_v19, %v258_v18  ;;  %v667_v30 = vpack.c.bf16 %v299_v21, %v283_v20  ;;  %v370_v1 = vld [vmem:[%s7676_s0 + $0xae0] sm:$0xff]  ;;  %v435_v17 = vld [vmem:[%s7676_s0 + $0xce8] sm:$0xff] }
 0x162   :  { %3705 = vmatprep.subr.bf16.mxu0 %v5211_v31  ;;  %2797 = vmatmul.mubr.bf16.gmra.mrb[16].mxu1 %v602_v32  ;;  %v675_v31 = vpack.c.bf16 %v307_v23, %v291_v22  ;;  %v5242_v32 = vld [vmem:[%s7675_s1 + $0x3e0] ss:$8 sps:$4 sm:$0xff]  }
 0x163   :  { %3569 = vmatmul.mubr.bf16.gmra.mrb[16].mxu0 %v610_v33  ;;  %2806 = vmatprep.mubr.bf16.mxu1 %v619_v34  ;;  %v5245_v33 = vld [vmem:[%s7675_s1 + $0x7e0] ss:$8 sps:$4 sm:$0xff]  }
 0x164   :  { %3578 = vmatprep.mubr.bf16.mxu0 %v627_v35  ;;  %2934 = vmatpush1.bf16.msra.mxu1 %v5206_v36  ;;  %v282_v34 = vld [vmem:[%s7676_s0 + $0x820] sm:$0xff]  ;;  %v5250_v35 = vld [vmem:[%s7675_s1 + $0x3f4] ss:$8 sps:$4 sm:$0xff]  }
 0x165   :  { %3706 = vmatpush1.bf16.msra.mxu0 %v5209_v37  ;;  %2935 = vmatprep.subr.bf16.mxu1 %v5214_v39  ;;  %v5253_v36 = vld [vmem:[%s7675_s1 + $0x7f4] ss:$8 sps:$4 sm:$0xff]   ;;  %v298_v37 = vld [vmem:[%s7676_s0 + $0x8a0] sm:$0xff] }
 0x166   :  { %3707 = vmatprep.subr.bf16.mxu0 %v5217_v40  ;;  %v306_v39 = vld [vmem:[%s7676_s0 + $0x8e0] sm:$0xff]  ;;  %v315_v40 = vld [vmem:[%s7676_s0 + $0x928] sm:$0xff]  ;;  %v666_v46 = vpack.c.bf16 %v298_v37, %v282_v34 }
 0x167   :  { %v674_v47 = vpack.c.bf16 %v306_v39, %v290_v38  ;;  %v410_v22 = vld [vmem:[%s7676_s0 + $0xc20] sm:$0xff]  ;;  %v475_v38 = vld [vmem:[%s7676_s0 + $0xe28] sm:$0xff] }
 0x168   :  { %2936 = vmatpush1.bf16.msra.mxu1 %v5212_v48  ;;  %v683_v48 = vpack.c.bf16 %v331_v41, %v315_v40  ;;  %v426_v23 = vld [vmem:[%s7676_s0 + $0xca0] sm:$0xff]  ;;  %v491_v39 = vld [vmem:[%s7676_s0 + $0xea8] sm:$0xff] }
 0x169   :  { %3708 = vmatpush1.bf16.msra.mxu0 %v5215_v49  ;;  %2937 = vmatprep.subr.bf16.mxu1 %v5220_v50  ;;  %v691_v49 = vpack.c.bf16 %v339_v43, %v323_v42  ;;  %v314_v50 = vld [vmem:[%s7676_s0 + $0x920] sm:$0xff]  ;;  %v483_v40 = vld [vmem:[%s7676_s0 + $0xe68] sm:$0xff] }
 0x16a   :  { %3709 = vmatprep.subr.bf16.mxu0 %v5223_v51  ;;  %2807 = vmatmul.mubr.bf16.gmra.mrb[20].mxu1 %v618_v52  ;;  %v330_v51 = vld [vmem:[%s7676_s0 + $0x9a0] sm:$0xff]  ;;  %v499_v41 = vld [vmem:[%s7676_s0 + $0xee8] sm:$0xff] }
 0x16b   :  { %3579 = vmatmul.mubr.bf16.gmra.mrb[20].mxu0 %v626_v53  ;;  %2816 = vmatprep.mubr.bf16.mxu1 %v635_v54  ;;  %v322_v52 = vld [vmem:[%s7676_s0 + $0x960] sm:$0xff]  ;;  %v347_v54 = vld [vmem:[%s7676_s0 + $0xa28] sm:$0xff]  ;;  %v682_v58 = vpack.c.bf16 %v330_v51, %v314_v50 }
 0x16c   :  { %3588 = vmatprep.mubr.bf16.mxu0 %v643_v55  ;;  %2938 = vmatpush1.bf16.msra.mxu1 %v5218_v56  ;;  %v338_v53 = vld [vmem:[%s7676_s0 + $0x9e0] sm:$0xff]  ;;  %v363_v55 = vld [vmem:[%s7676_s0 + $0xaa8] sm:$0xff] }
 0x16d   :  { %3710 = vmatpush1.bf16.msra.mxu0 %v5221_v57  ;;  %2939 = vmatprep.subr.bf16.mxu1 %v5226_v59  ;;  %v355_v56 = vld [vmem:[%s7676_s0 + $0xa68] sm:$0xff]  ;;  %v690_v59 = vpack.c.bf16 %v338_v53, %v322_v52  ;;  %v442_v34 = vld [vmem:[%s7676_s0 + $0xd20] sm:$0xff] }
 0x16e   :  { %3711 = vmatprep.subr.bf16.mxu0 %v5229_v60  ;;  %v371_v57 = vld [vmem:[%s7676_s0 + $0xae8] sm:$0xff]  ;;  %v699_v60 = vpack.c.bf16 %v363_v55, %v347_v54  ;;  %v466_v37 = vld [vmem:[%s7676_s0 + $0xde0] sm:$0xff] }
 0x16f   :  { %v707_v61 = vpack.c.bf16 %v371_v57, %v355_v56  ;;  %v507_v50 = vld [vmem:[%s7676_s0 + $0xf28] sm:$0xff] }
 0x170   :  { %2940 = vmatpush1.bf16.msra.mxu1 %v5224_v4  ;;  %v387_v4 = vld [vmem:[%s7676_s0 + $0xb68] sm:$0xff] }
 0x171   :  { %3712 = vmatpush1.bf16.msra.mxu0 %v5227_v5  ;;  %2941 = vmatprep.subr.bf16.mxu1 %v5232_v6  ;;  %v403_v5 = vld [vmem:[%s7676_s0 + $0xbe8] sm:$0xff]  ;;  %v698_v6 = vpack.c.bf16 %v362_v63, %v346_v62  ;;  %v29_v62 = vld [vmem:[%s7676_s0 + $0x38] sm:$0xff] }
 0x172   :  { %3713 = vmatprep.subr.bf16.mxu0 %v5235_v7  ;;  %2817 = vmatmul.mubr.bf16.gmra.mrb[24].mxu1 %v634_v8  ;;  %v706_v7 = vpack.c.bf16 %v370_v1, %v354_v0  ;;  %v715_v8 = vpack.c.bf16 %v395_v3, %v379_v2  ;;  %v523_v51 = vld [vmem:[%s7676_s0 + $0xfa8] sm:$0xff]  ;;  %v45_v63 = vld [vmem:[%s7676_s0 + $0xb8] sm:$0xff] }
 0x173   :  { %3589 = vmatmul.mubr.bf16.gmra.mrb[24].mxu0 %v642_v9  ;;  %2826 = vmatprep.mubr.bf16.mxu1 %v651_v10  ;;  %v723_v9 = vpack.c.bf16 %v403_v5, %v387_v4  ;;  %v378_v10 = vld [vmem:[%s7676_s0 + $0xb20] sm:$0xff]  ;;  %v515_v52 = vld [vmem:[%s7676_s0 + $0xf68] sm:$0xff]  ;;  %v779_v56 = vpack.c.bf16 %v523_v51, %v507_v50  ;;  %v37_v0 = vld [vmem:[%s7676_s0 + $0x78] sm:$0xff]  ;;  %v541_v4 = vpack.c.bf16 %v45_v63, %v29_v62 }
 0x174   :  { %3598 = vmatprep.mubr.bf16.mxu0 %v659_v11  ;;  %2942 = vmatpush1.bf16.msra.mxu1 %v5230_v12  ;;  %v394_v11 = vld [vmem:[%s7676_s0 + $0xba0] sm:$0xff]  ;;  %v531_v53 = vld [vmem:[%s7676_s0 + $0xfe8] sm:$0xff]  ;;  %v53_v1 = vld [vmem:[%s7676_s0 + $0xf8] sm:$0xff] }
 0x175   :  { %3714 = vmatpush1.bf16.msra.mxu0 %v5233_v13  ;;  %2943 = vmatprep.subr.bf16.mxu1 %v5238_v15  ;;  %v386_v12 = vld [vmem:[%s7676_s0 + $0xb60] sm:$0xff]  ;;  %v427_v15 = vld [vmem:[%s7676_s0 + $0xca8] sm:$0xff]  ;;  %v714_v18 = vpack.c.bf16 %v394_v11, %v378_v10  ;;  %v787_v57 = vpack.c.bf16 %v531_v53, %v515_v52  ;;  %v549_v5 = vpack.c.bf16 %v53_v1, %v37_v0  ;;  %v61_v10 = vld [vmem:[%s7676_s0 + $0x138] sm:$0xff] }
 0x176   :  { %3715 = vmatprep.subr.bf16.mxu0 %v5241_v16  ;;  %v402_v13 = vld [vmem:[%s7676_s0 + $0xbe0] sm:$0xff]  ;;  %v419_v16 = vld [vmem:[%s7676_s0 + $0xc68] sm:$0xff]  ;;  %v731_v20 = vpack.c.bf16 %v427_v15, %v411_v14  ;;  %v77_v11 = vld [vmem:[%s7676_s0 + $0x1b8] sm:$0xff] }
 0x177   :  { %v722_v19 = vpack.c.bf16 %v402_v13, %v386_v12  ;;  %v739_v21 = vpack.c.bf16 %v435_v17, %v419_v16  ;;  %v69_v12 = vld [vmem:[%s7676_s0 + $0x178] sm:$0xff]  ;;  %v557_v16 = vpack.c.bf16 %v77_v11, %v61_v10 }
 0x178   :  { %2944 = vmatpush1.bf16.msra.mxu1 %v5236_v24  ;;  %v418_v24 = vld [vmem:[%s7676_s0 + $0xc60] sm:$0xff]  ;;  %v85_v13 = vld [vmem:[%s7676_s0 + $0x1f8] sm:$0xff] }
 0x179   :  { %3716 = vmatpush1.bf16.msra.mxu0 %v5239_v25  ;;  %2945 = vmatprep.subr.bf16.mxu1 %v5244_v26  ;;  %v434_v25 = vld [vmem:[%s7676_s0 + $0xce0] sm:$0xff]  ;;  %v443_v26 = vld [vmem:[%s7676_s0 + $0xd28] sm:$0xff]  ;;  %v565_v17 = vpack.c.bf16 %v85_v13, %v69_v12 }
 0x17a   :  { %3717 = vmatprep.subr.bf16.mxu0 %v5247_v27  ;;  %2827 = vmatmul.mubr.bf16.gmra.mrb[28].mxu1 %v650_v28  ;;  %v459_v27 = vld [vmem:[%s7676_s0 + $0xda8] sm:$0xff] }
 0x17b   :  { %3599 = vmatmul.mubr.bf16.gmra.mrb[28].mxu0 %v658_v29  ;;  %2836 = vmatprep.mubr.bf16.mxu1 %v667_v30  ;;  %v451_v28 = vld [vmem:[%s7676_s0 + $0xd68] sm:$0xff]  ;;  %v730_v30 = vpack.c.bf16 %v426_v23, %v410_v22  ;;  %v93_v22 = vld [vmem:[%s7676_s0 + $0x238] sm:$0xff] }
 0x17c   :  { %3608 = vmatprep.mubr.bf16.mxu0 %v675_v31  ;;  %2946 = vmatpush1.bf16.msra.mxu1 %v5242_v32  ;;  %v467_v29 = vld [vmem:[%s7676_s0 + $0xde8] sm:$0xff]  ;;  %v738_v31 = vpack.c.bf16 %v434_v25, %v418_v24  ;;  %v747_v32 = vpack.c.bf16 %v459_v27, %v443_v26  ;;  %v109_v23 = vld [vmem:[%s7676_s0 + $0x2b8] sm:$0xff] }
 0x17d   :  { %3718 = vmatpush1.bf16.msra.mxu0 %v5245_v33  ;;  %2947 = vmatprep.subr.bf16.mxu1 %v5250_v35  ;;  %v755_v33 = vpack.c.bf16 %v467_v29, %v451_v28  ;;  %v458_v35 = vld [vmem:[%s7676_s0 + $0xda0] sm:$0xff]  ;;  %v101_v24 = vld [vmem:[%s7676_s0 + $0x278] sm:$0xff]  ;;  %v573_v28 = vpack.c.bf16 %v109_v23, %v93_v22 }
 0x17e   :  { %3719 = vmatprep.subr.bf16.mxu0 %v5253_v36  ;;  %v450_v36 = vld [vmem:[%s7676_s0 + $0xd60] sm:$0xff]  ;;  %v746_v42 = vpack.c.bf16 %v458_v35, %v442_v34  ;;  %v117_v25 = vld [vmem:[%s7676_s0 + $0x2f8] sm:$0xff] }
 0x17f   :  { %v754_v43 = vpack.c.bf16 %v466_v37, %v450_v36  ;;  %v581_v29 = vpack.c.bf16 %v117_v25, %v101_v24  ;;  %v125_v34 = vld [vmem:[%s7676_s0 + $0x338] sm:$0xff] }
 0x180   :  { %2948 = vmatpush1.bf16.msra.mxu1 %v5248_v44  ;;  %v763_v44 = vpack.c.bf16 %v491_v39, %v475_v38  ;;  %v141_v35 = vld [vmem:[%s7676_s0 + $0x3b8] sm:$0xff] }
 0x181   :  { %3720 = vmatpush1.bf16.msra.mxu0 %v5251_v45  ;;  %v771_v45 = vpack.c.bf16 %v499_v41, %v483_v40  ;;  %v133_v36 = vld [vmem:[%s7676_s0 + $0x378] sm:$0xff]  ;;  %v589_v40 = vpack.c.bf16 %v141_v35, %v125_v34 }
 0x182   :  { %2837 = vmatmul.mubr.bf16.gmra.mrb[32].mxu1 %v666_v46  ;;  %v474_v46 = vld [vmem:[%s7676_s0 + $0xe20] sm:$0xff]  ;;  %v149_v37 = vld [vmem:[%s7676_s0 + $0x3f8] sm:$0xff] }
 0x183   :  { %3609 = vmatmul.mubr.bf16.gmra.mrb[32].mxu0 %v674_v47  ;;  %2846 = vmatprep.mubr.bf16.mxu1 %v683_v48  ;;  %v490_v47 = vld [vmem:[%s7676_s0 + $0xea0] sm:$0xff]  ;;  %v597_v41 = vpack.c.bf16 %v149_v37, %v133_v36 }
 0x184   :  { %3618 = vmatprep.mubr.bf16.mxu0 %v691_v49  ;;  %v482_v48 = vld [vmem:[%s7676_s0 + $0xe60] sm:$0xff]  ;;  %v762_v54 = vpack.c.bf16 %v490_v47, %v474_v46  ;;  %v157_v46 = vld [vmem:[%s7676_s0 + $0x438] sm:$0xff] }
 0x185   :  { %v498_v49 = vld [vmem:[%s7676_s0 + $0xee0] sm:$0xff]  ;;  %v173_v47 = vld [vmem:[%s7676_s0 + $0x4b8] sm:$0xff] }
 0x186   :  { %v770_v55 = vpack.c.bf16 %v498_v49, %v482_v48  ;;  %v165_v48 = vld [vmem:[%s7676_s0 + $0x478] sm:$0xff]  ;;  %v605_v52 = vpack.c.bf16 %v173_v47, %v157_v46 }
 0x187   :  { %v181_v49 = vld [vmem:[%s7676_s0 + $0x4f8] sm:$0xff] }
 0x188   :  { %v613_v53 = vpack.c.bf16 %v181_v49, %v165_v48 }
 0x18a   :  { %2847 = vmatmul.mubr.bf16.gmra.mrb[36].mxu1 %v682_v58  ;;  %v506_v58 = vld [vmem:[%s7676_s0 + $0xf20] sm:$0xff] }
 0x18b   :  { %3619 = vmatmul.mubr.bf16.gmra.mrb[36].mxu0 %v690_v59  ;;  %2856 = vmatprep.mubr.bf16.mxu1 %v699_v60  ;;  %v522_v59 = vld [vmem:[%s7676_s0 + $0xfa0] sm:$0xff] }
 0x18c   :  { %3628 = vmatprep.mubr.bf16.mxu0 %v707_v61  ;;  %v514_v60 = vld [vmem:[%s7676_s0 + $0xf60] sm:$0xff]  ;;  %v778_v2 = vpack.c.bf16 %v522_v59, %v506_v58  ;;  %v189_v58 = vld [vmem:[%s7676_s0 + $0x538] sm:$0xff] }
 0x18d   :  { %v530_v61 = vld [vmem:[%s7676_s0 + $0xfe0] sm:$0xff]  ;;  %v205_v59 = vld [vmem:[%s7676_s0 + $0x5b8] sm:$0xff] }
 0x18e   :  { %v786_v3 = vpack.c.bf16 %v530_v61, %v514_v60  ;;  %v197_v60 = vld [vmem:[%s7676_s0 + $0x578] sm:$0xff]  ;;  %v621_v0 = vpack.c.bf16 %v205_v59, %v189_v58 }
 0x18f   :  { %v213_v61 = vld [vmem:[%s7676_s0 + $0x5f8] sm:$0xff] }
 0x190   :  { %v629_v1 = vpack.c.bf16 %v213_v61, %v197_v60 }
 0x192   :  { %2857 = vmatmul.mubr.bf16.gmra.mrb[40].mxu1 %v698_v6  ;;  %v28_v6 = vld [vmem:[%s7676_s0 + $0x30] sm:$0xff] }
 0x193   :  { %3629 = vmatmul.mubr.bf16.gmra.mrb[40].mxu0 %v706_v7  ;;  %2866 = vmatprep.mubr.bf16.mxu1 %v715_v8  ;;  %v44_v7 = vld [vmem:[%s7676_s0 + $0xb0] sm:$0xff] }
 0x194   :  { %3638 = vmatprep.mubr.bf16.mxu0 %v723_v9  ;;  %v36_v8 = vld [vmem:[%s7676_s0 + $0x70] sm:$0xff]  ;;  %v540_v14 = vpack.c.bf16 %v44_v7, %v28_v6  ;;  %v221_v6 = vld [vmem:[%s7676_s0 + $0x638] sm:$0xff] }
 0x195   :  { %v52_v9 = vld [vmem:[%s7676_s0 + $0xf0] sm:$0xff]  ;;  %v237_v7 = vld [vmem:[%s7676_s0 + $0x6b8] sm:$0xff] }
 0x196   :  { %v548_v15 = vpack.c.bf16 %v52_v9, %v36_v8  ;;  %v229_v8 = vld [vmem:[%s7676_s0 + $0x678] sm:$0xff]  ;;  %v637_v12 = vpack.c.bf16 %v237_v7, %v221_v6 }
 0x197   :  { %v245_v9 = vld [vmem:[%s7676_s0 + $0x6f8] sm:$0xff] }
 0x198   :  { %v645_v13 = vpack.c.bf16 %v245_v9, %v229_v8 }
 0x19a   :  { %2867 = vmatmul.mubr.bf16.gmra.mrb[44].mxu1 %v714_v18  ;;  %v60_v18 = vld [vmem:[%s7676_s0 + $0x130] sm:$0xff] }
 0x19b   :  { %3639 = vmatmul.mubr.bf16.gmra.mrb[44].mxu0 %v722_v19  ;;  %2876 = vmatprep.mubr.bf16.mxu1 %v731_v20  ;;  %v76_v19 = vld [vmem:[%s7676_s0 + $0x1b0] sm:$0xff] }
 0x19c   :  { %3648 = vmatprep.mubr.bf16.mxu0 %v739_v21  ;;  %v68_v20 = vld [vmem:[%s7676_s0 + $0x170] sm:$0xff]  ;;  %v556_v26 = vpack.c.bf16 %v76_v19, %v60_v18  ;;  %v253_v18 = vld [vmem:[%s7676_s0 + $0x738] sm:$0xff] }
 0x19d   :  { %v84_v21 = vld [vmem:[%s7676_s0 + $0x1f0] sm:$0xff]  ;;  %v269_v19 = vld [vmem:[%s7676_s0 + $0x7b8] sm:$0xff] }
 0x19e   :  { %v564_v27 = vpack.c.bf16 %v84_v21, %v68_v20  ;;  %v261_v20 = vld [vmem:[%s7676_s0 + $0x778] sm:$0xff]  ;;  %v653_v24 = vpack.c.bf16 %v269_v19, %v253_v18 }
 0x19f   :  { %v277_v21 = vld [vmem:[%s7676_s0 + $0x7f8] sm:$0xff] }
 0x1a0   :  { %v661_v25 = vpack.c.bf16 %v277_v21, %v261_v20 }
 0x1a2   :  { %2877 = vmatmul.mubr.bf16.gmra.mrb[48].mxu1 %v730_v30  ;;  %v92_v30 = vld [vmem:[%s7676_s0 + $0x230] sm:$0xff] }
 0x1a3   :  { %3649 = vmatmul.mubr.bf16.gmra.mrb[48].mxu0 %v738_v31  ;;  %2886 = vmatprep.mubr.bf16.mxu1 %v747_v32  ;;  %v108_v31 = vld [vmem:[%s7676_s0 + $0x2b0] sm:$0xff] }
 0x1a4   :  { %3658 = vmatprep.mubr.bf16.mxu0 %v755_v33  ;;  %v100_v32 = vld [vmem:[%s7676_s0 + $0x270] sm:$0xff]  ;;  %v572_v38 = vpack.c.bf16 %v108_v31, %v92_v30  ;;  %v285_v30 = vld [vmem:[%s7676_s0 + $0x838] sm:$0xff] }
 0x1a5   :  { %v116_v33 = vld [vmem:[%s7676_s0 + $0x2f0] sm:$0xff]  ;;  %v301_v31 = vld [vmem:[%s7676_s0 + $0x8b8] sm:$0xff] }
 0x1a6   :  { %v580_v39 = vpack.c.bf16 %v116_v33, %v100_v32  ;;  %v293_v32 = vld [vmem:[%s7676_s0 + $0x878] sm:$0xff]  ;;  %v669_v36 = vpack.c.bf16 %v301_v31, %v285_v30 }
 0x1a7   :  { %v309_v33 = vld [vmem:[%s7676_s0 + $0x8f8] sm:$0xff] }
 0x1a8   :  { %v677_v37 = vpack.c.bf16 %v309_v33, %v293_v32 }
 0x1aa   :  { %2887 = vmatmul.mubr.bf16.gmra.mrb[52].mxu1 %v746_v42  ;;  %v124_v42 = vld [vmem:[%s7676_s0 + $0x330] sm:$0xff] }
 0x1ab   :  { %3659 = vmatmul.mubr.bf16.gmra.mrb[52].mxu0 %v754_v43  ;;  %2896 = vmatprep.mubr.bf16.mxu1 %v763_v44  ;;  %v140_v43 = vld [vmem:[%s7676_s0 + $0x3b0] sm:$0xff] }
 0x1ac   :  { %3668 = vmatprep.mubr.bf16.mxu0 %v771_v45  ;;  %v132_v44 = vld [vmem:[%s7676_s0 + $0x370] sm:$0xff]  ;;  %v588_v50 = vpack.c.bf16 %v140_v43, %v124_v42  ;;  %v317_v42 = vld [vmem:[%s7676_s0 + $0x938] sm:$0xff] }
 0x1ad   :  { %v148_v45 = vld [vmem:[%s7676_s0 + $0x3f0] sm:$0xff]  ;;  %v333_v43 = vld [vmem:[%s7676_s0 + $0x9b8] sm:$0xff] }
 0x1ae   :  { %v596_v51 = vpack.c.bf16 %v148_v45, %v132_v44  ;;  %v325_v44 = vld [vmem:[%s7676_s0 + $0x978] sm:$0xff]  ;;  %v685_v48 = vpack.c.bf16 %v333_v43, %v317_v42 }
 0x1af   :  { %v341_v45 = vld [vmem:[%s7676_s0 + $0x9f8] sm:$0xff] }
 0x1b0   :  { %v693_v49 = vpack.c.bf16 %v341_v45, %v325_v44 }
 0x1b2   :  { %2897 = vmatmul.mubr.bf16.gmra.mrb[56].mxu1 %v762_v54  ;;  %v156_v54 = vld [vmem:[%s7676_s0 + $0x430] sm:$0xff] }
 0x1b3   :  { %3669 = vmatmul.mubr.bf16.gmra.mrb[56].mxu0 %v770_v55  ;;  %2906 = vmatprep.mubr.bf16.mxu1 %v779_v56  ;;  %v172_v55 = vld [vmem:[%s7676_s0 + $0x4b0] sm:$0xff] }
 0x1b4   :  { %3678 = vmatprep.mubr.bf16.mxu0 %v787_v57  ;;  %v164_v56 = vld [vmem:[%s7676_s0 + $0x470] sm:$0xff]  ;;  %v604_v62 = vpack.c.bf16 %v172_v55, %v156_v54  ;;  %v349_v54 = vld [vmem:[%s7676_s0 + $0xa38] sm:$0xff] }
 0x1b5   :  { %v180_v57 = vld [vmem:[%s7676_s0 + $0x4f0] sm:$0xff]  ;;  %v365_v55 = vld [vmem:[%s7676_s0 + $0xab8] sm:$0xff] }
 0x1b6   :  { %v612_v63 = vpack.c.bf16 %v180_v57, %v164_v56  ;;  %v357_v56 = vld [vmem:[%s7676_s0 + $0xa78] sm:$0xff]  ;;  %v701_v60 = vpack.c.bf16 %v365_v55, %v349_v54 }
 0x1b7   :  { %v373_v57 = vld [vmem:[%s7676_s0 + $0xaf8] sm:$0xff] }
 0x1b8   :  { %v709_v61 = vpack.c.bf16 %v373_v57, %v357_v56 }
 0x1ba   :  { %2907 = vmatmul.mubr.bf16.gmra.mrb[60].mxu1 %v778_v2  ;;  %v188_v2 = vld [vmem:[%s7676_s0 + $0x530] sm:$0xff] }
 0x1bb   :  { %3679 = vmatmul.mubr.bf16.gmra.mrb[60].mxu0 %v786_v3  ;;  %2949 = vmatprep.mubr.bf16.mxu1 %v541_v4  ;;  %v204_v3 = vld [vmem:[%s7676_s0 + $0x5b0] sm:$0xff] }
 0x1bc   :  { %3721 = vmatprep.mubr.bf16.mxu0 %v549_v5  ;;  %v196_v4 = vld [vmem:[%s7676_s0 + $0x570] sm:$0xff]  ;;  %v620_v10 = vpack.c.bf16 %v204_v3, %v188_v2  ;;  %v381_v2 = vld [vmem:[%s7676_s0 + $0xb38] sm:$0xff] }
 0x1bd   :  { %v212_v5 = vld [vmem:[%s7676_s0 + $0x5f0] sm:$0xff]  ;;  %v397_v3 = vld [vmem:[%s7676_s0 + $0xbb8] sm:$0xff] }
 0x1be   :  { %v628_v11 = vpack.c.bf16 %v212_v5, %v196_v4  ;;  %v389_v4 = vld [vmem:[%s7676_s0 + $0xb78] sm:$0xff]  ;;  %v717_v8 = vpack.c.bf16 %v397_v3, %v381_v2  ;;  %v1046_v3 = vld [vmem:[%s7677_s2] sm:$0x3] }
 0x1bf   :  { %v405_v5 = vld [vmem:[%s7676_s0 + $0xbf8] sm:$0xff] }
 0x1c0   :  { %v725_v9 = vpack.c.bf16 %v405_v5, %v389_v4 }
 0x1c2   :  { %2950 = vmatmul.mubr.bf16.vlgmr.msra.gmra.mrb[0].mxu1 %v540_v14  ;;  %v220_v14 = vld [vmem:[%s7676_s0 + $0x630] sm:$0xff] }
 0x1c3   :  { %3722 = vmatmul.mubr.bf16.vlgmr.msra.gmra.mrb[0].mxu0 %v548_v15  ;;  %2959 = vmatprep.mubr.bf16.mxu1 %v557_v16  ;;  %v236_v15 = vld [vmem:[%s7676_s0 + $0x6b0] sm:$0xff] }
 0x1c4   :  { %3731 = vmatprep.mubr.bf16.mxu0 %v565_v17  ;;  %v228_v16 = vld [vmem:[%s7676_s0 + $0x670] sm:$0xff]  ;;  %v636_v22 = vpack.c.bf16 %v236_v15, %v220_v14  ;;  %v413_v14 = vld [vmem:[%s7676_s0 + $0xc38] sm:$0xff] }
 0x1c5   :  { %v244_v17 = vld [vmem:[%s7676_s0 + $0x6f0] sm:$0xff]  ;;  %v429_v15 = vld [vmem:[%s7676_s0 + $0xcb8] sm:$0xff] }
 0x1c6   :  { %v644_v23 = vpack.c.bf16 %v244_v17, %v228_v16  ;;  %v421_v16 = vld [vmem:[%s7676_s0 + $0xc78] sm:$0xff]  ;;  %v733_v20 = vpack.c.bf16 %v429_v15, %v413_v14 }
 0x1c7   :  { %v437_v17 = vld [vmem:[%s7676_s0 + $0xcf8] sm:$0xff] }
 0x1c8   :  { %v741_v21 = vpack.c.bf16 %v437_v17, %v421_v16 }
 0x1ca   :  { %2960 = vmatmul.mubr.bf16.gmra.mrb[4].mxu1 %v556_v26  ;;  %v252_v26 = vld [vmem:[%s7676_s0 + $0x730] sm:$0xff] }
 0x1cb   :  { %3732 = vmatmul.mubr.bf16.gmra.mrb[4].mxu0 %v564_v27  ;;  %2969 = vmatprep.mubr.bf16.mxu1 %v573_v28  ;;  %v268_v27 = vld [vmem:[%s7676_s0 + $0x7b0] sm:$0xff] }
 0x1cc   :  { %3741 = vmatprep.mubr.bf16.mxu0 %v581_v29  ;;  %v260_v28 = vld [vmem:[%s7676_s0 + $0x770] sm:$0xff]  ;;  %v652_v34 = vpack.c.bf16 %v268_v27, %v252_v26  ;;  %v445_v26 = vld [vmem:[%s7676_s0 + $0xd38] sm:$0xff] }
 0x1cd   :  { %v276_v29 = vld [vmem:[%s7676_s0 + $0x7f0] sm:$0xff]  ;;  %v461_v27 = vld [vmem:[%s7676_s0 + $0xdb8] sm:$0xff] }
 0x1ce   :  { %v660_v35 = vpack.c.bf16 %v276_v29, %v260_v28  ;;  %v453_v28 = vld [vmem:[%s7676_s0 + $0xd78] sm:$0xff]  ;;  %v749_v32 = vpack.c.bf16 %v461_v27, %v445_v26 }
 0x1cf   :  { %v469_v29 = vld [vmem:[%s7676_s0 + $0xdf8] sm:$0xff] }
 0x1d0   :  { %v757_v33 = vpack.c.bf16 %v469_v29, %v453_v28 }
 0x1d2   :  { %2970 = vmatmul.mubr.bf16.gmra.mrb[8].mxu1 %v572_v38  ;;  %v284_v38 = vld [vmem:[%s7676_s0 + $0x830] sm:$0xff] }
 0x1d3   :  { %3742 = vmatmul.mubr.bf16.gmra.mrb[8].mxu0 %v580_v39  ;;  %2979 = vmatprep.mubr.bf16.mxu1 %v589_v40  ;;  %v300_v39 = vld [vmem:[%s7676_s0 + $0x8b0] sm:$0xff] }
 0x1d4   :  { %3751 = vmatprep.mubr.bf16.mxu0 %v597_v41  ;;  %v292_v40 = vld [vmem:[%s7676_s0 + $0x870] sm:$0xff]  ;;  %v668_v46 = vpack.c.bf16 %v300_v39, %v284_v38  ;;  %v477_v38 = vld [vmem:[%s7676_s0 + $0xe38] sm:$0xff] }
 0x1d5   :  { %v308_v41 = vld [vmem:[%s7676_s0 + $0x8f0] sm:$0xff]  ;;  %v493_v39 = vld [vmem:[%s7676_s0 + $0xeb8] sm:$0xff] }
 0x1d6   :  { %v676_v47 = vpack.c.bf16 %v308_v41, %v292_v40  ;;  %v485_v40 = vld [vmem:[%s7676_s0 + $0xe78] sm:$0xff]  ;;  %v765_v44 = vpack.c.bf16 %v493_v39, %v477_v38 }
 0x1d7   :  { %v501_v41 = vld [vmem:[%s7676_s0 + $0xef8] sm:$0xff] }
 0x1d8   :  { %v773_v45 = vpack.c.bf16 %v501_v41, %v485_v40 }
 0x1da   :  { %2980 = vmatmul.mubr.bf16.gmra.mrb[12].mxu1 %v588_v50  ;;  %v316_v50 = vld [vmem:[%s7676_s0 + $0x930] sm:$0xff] }
 0x1db   :  { %3752 = vmatmul.mubr.bf16.gmra.mrb[12].mxu0 %v596_v51  ;;  %2989 = vmatprep.mubr.bf16.mxu1 %v605_v52  ;;  %v332_v51 = vld [vmem:[%s7676_s0 + $0x9b0] sm:$0xff] }
 0x1dc   :  { %3761 = vmatprep.mubr.bf16.mxu0 %v613_v53  ;;  %v324_v52 = vld [vmem:[%s7676_s0 + $0x970] sm:$0xff]  ;;  %v684_v58 = vpack.c.bf16 %v332_v51, %v316_v50  ;;  %v509_v50 = vld [vmem:[%s7676_s0 + $0xf38] sm:$0xff] }
 0x1dd   :  { %v340_v53 = vld [vmem:[%s7676_s0 + $0x9f0] sm:$0xff]  ;;  %v525_v51 = vld [vmem:[%s7676_s0 + $0xfb8] sm:$0xff] }
 0x1de   :  { %v692_v59 = vpack.c.bf16 %v340_v53, %v324_v52  ;;  %v517_v52 = vld [vmem:[%s7676_s0 + $0xf78] sm:$0xff]  ;;  %v781_v56 = vpack.c.bf16 %v525_v51, %v509_v50 }
 0x1df   :  { %v533_v53 = vld [vmem:[%s7676_s0 + $0xff8] sm:$0xff] }
 0x1e0   :  { %v789_v57 = vpack.c.bf16 %v533_v53, %v517_v52 }
 0x1e2   :  { %2990 = vmatmul.mubr.bf16.gmra.mrb[16].mxu1 %v604_v62  ;;  %v348_v62 = vld [vmem:[%s7676_s0 + $0xa30] sm:$0xff] }
 0x1e3   :  { %3762 = vmatmul.mubr.bf16.gmra.mrb[16].mxu0 %v612_v63  ;;  %2999 = vmatprep.mubr.bf16.mxu1 %v621_v0  ;;  %v364_v63 = vld [vmem:[%s7676_s0 + $0xab0] sm:$0xff] }
 0x1e4   :  { %3771 = vmatprep.mubr.bf16.mxu0 %v629_v1  ;;  %v356_v0 = vld [vmem:[%s7676_s0 + $0xa70] sm:$0xff]  ;;  %v700_v6 = vpack.c.bf16 %v364_v63, %v348_v62 }
 0x1e5   :  { %v372_v1 = vld [vmem:[%s7676_s0 + $0xaf0] sm:$0xff] }
 0x1e6   :  { %v708_v7 = vpack.c.bf16 %v372_v1, %v356_v0  ;;  %v1048_v0 = vlaneseq }
 0x1e8   :  { %v1049_v1 = vshrl.u32 %v1048_v0, 7 }
 0x1ea   :  { %3000 = vmatmul.mubr.bf16.gmra.mrb[20].mxu1 %v620_v10  ;;  %v380_v10 = vld [vmem:[%s7676_s0 + $0xb30] sm:$0xff]  ;;  %v1050_v2 = vsub.s32 0, %v1049_v1  ;;  %v1054_v4 = vsub.s32 1, %v1049_v1 }
 0x1eb   :  { %3772 = vmatmul.mubr.bf16.gmra.mrb[20].mxu0 %v628_v11  ;;  %3009 = vmatprep.mubr.bf16.mxu1 %v637_v12  ;;  %v396_v11 = vld [vmem:[%s7676_s0 + $0xbb0] sm:$0xff] }
 0x1ec   :  { %3781 = vmatprep.mubr.bf16.mxu0 %v645_v13  ;;  %v388_v12 = vld [vmem:[%s7676_s0 + $0xb70] sm:$0xff]  ;;  %v716_v18 = vpack.c.bf16 %v396_v11, %v380_v10  ;;  %v7592_v5 = vrot.slane %v1046_v3, %v1050_v2 }
 0x1ed   :  { %v404_v13 = vld [vmem:[%s7676_s0 + $0xbf0] sm:$0xff] }
 0x1ee   :  { %v724_v19 = vpack.c.bf16 %v404_v13, %v388_v12 }
 0x1f2   :  { %3010 = vmatmul.mubr.bf16.gmra.mrb[24].mxu1 %v636_v22  ;;  %v412_v22 = vld [vmem:[%s7676_s0 + $0xc30] sm:$0xff] }
 0x1f3   :  { %3782 = vmatmul.mubr.bf16.gmra.mrb[24].mxu0 %v644_v23  ;;  %3019 = vmatprep.mubr.bf16.mxu1 %v653_v24  ;;  %v428_v23 = vld [vmem:[%s7676_s0 + $0xcb0] sm:$0xff] }
 0x1f4   :  { %3791 = vmatprep.mubr.bf16.mxu0 %v661_v25  ;;  %v420_v24 = vld [vmem:[%s7676_s0 + $0xc70] sm:$0xff]  ;;  %v732_v30 = vpack.c.bf16 %v428_v23, %v412_v22  ;;  %v3947_v23 = vld [vmem:[%s7678_s3 + $0x8] sm:$0xff] }
 0x1f5   :  { %v436_v25 = vld [vmem:[%s7676_s0 + $0xcf0] sm:$0xff] }
 0x1f6   :  { %v740_v31 = vpack.c.bf16 %v436_v25, %v420_v24 }
 0x1fa   :  { %3020 = vmatmul.mubr.bf16.gmra.mrb[28].mxu1 %v652_v34  ;;  %v444_v34 = vld [vmem:[%s7676_s0 + $0xd30] sm:$0xff] }
 0x1fb   :  { %3792 = vmatmul.mubr.bf16.gmra.mrb[28].mxu0 %v660_v35  ;;  %3029 = vmatprep.mubr.bf16.mxu1 %v669_v36  ;;  %v460_v35 = vld [vmem:[%s7676_s0 + $0xdb0] sm:$0xff] }
 0x1fc   :  { %3801 = vmatprep.mubr.bf16.mxu0 %v677_v37  ;;  %v452_v36 = vld [vmem:[%s7676_s0 + $0xd70] sm:$0xff]  ;;  %v748_v42 = vpack.c.bf16 %v460_v35, %v444_v34 }
 0x1fd   :  { %v468_v37 = vld [vmem:[%s7676_s0 + $0xdf0] sm:$0xff] }
 0x1fe   :  { %v756_v43 = vpack.c.bf16 %v468_v37, %v452_v36 }
 0x202   :  { %3030 = vmatmul.mubr.bf16.gmra.mrb[32].mxu1 %v668_v46  ;;  %v476_v46 = vld [vmem:[%s7676_s0 + $0xe30] sm:$0xff] }
 0x203   :  { %3802 = vmatmul.mubr.bf16.gmra.mrb[32].mxu0 %v676_v47  ;;  %3039 = vmatprep.mubr.bf16.mxu1 %v685_v48  ;;  %v492_v47 = vld [vmem:[%s7676_s0 + $0xeb0] sm:$0xff] }
 0x204   :  { %3811 = vmatprep.mubr.bf16.mxu0 %v693_v49  ;;  %v484_v48 = vld [vmem:[%s7676_s0 + $0xe70] sm:$0xff]  ;;  %v764_v54 = vpack.c.bf16 %v492_v47, %v476_v46  ;;  %v10_v46 = vstv %s7679_s4 }
 0x205   :  { %v500_v49 = vld [vmem:[%s7676_s0 + $0xef0] sm:$0xff]  ;;  %11 = vst [vmem:[#allocation2] sm:$0x1] %v10_v46 }
 0x206   :  { %v772_v55 = vpack.c.bf16 %v500_v49, %v484_v48 }
 0x20a   :  { %3040 = vmatmul.mubr.bf16.gmra.mrb[36].mxu1 %v684_v58  ;;  %v508_v58 = vld [vmem:[%s7676_s0 + $0xf30] sm:$0xff] }
 0x20b   :  { %3812 = vmatmul.mubr.bf16.gmra.mrb[36].mxu0 %v692_v59  ;;  %3049 = vmatprep.mubr.bf16.mxu1 %v701_v60  ;;  %v524_v59 = vld [vmem:[%s7676_s0 + $0xfb0] sm:$0xff] }
 0x20c   :  { %3821 = vmatprep.mubr.bf16.mxu0 %v709_v61  ;;  %v516_v60 = vld [vmem:[%s7676_s0 + $0xf70] sm:$0xff]  ;;  %v780_v62 = vpack.c.bf16 %v524_v59, %v508_v58 }
 0x20d   :  { %v532_v61 = vld [vmem:[%s7676_s0 + $0xff0] sm:$0xff] }
 0x20e   :  { %v788_v63 = vpack.c.bf16 %v532_v61, %v516_v60 }
 0x212   :  { %3050 = vmatmul.mubr.bf16.gmra.mrb[40].mxu1 %v700_v6  ;;  %v7594_v6 = vrot.slane %v1046_v3, %v1054_v4 }
 0x213   :  { %3822 = vmatmul.mubr.bf16.gmra.mrb[40].mxu0 %v708_v7  ;;  %3059 = vmatprep.mubr.bf16.mxu1 %v717_v8 }
 0x214   :  { %3831 = vmatprep.mubr.bf16.mxu0 %v725_v9 }
 0x21a   :  { %3060 = vmatmul.mubr.bf16.gmra.mrb[44].mxu1 %v716_v18 }
 0x21b   :  { %3832 = vmatmul.mubr.bf16.gmra.mrb[44].mxu0 %v724_v19  ;;  %3069 = vmatprep.mubr.bf16.mxu1 %v733_v20 }
 0x21c   :  { %3841 = vmatprep.mubr.bf16.mxu0 %v741_v21 }
 0x222   :  { %3070 = vmatmul.mubr.bf16.gmra.mrb[48].mxu1 %v732_v30 }
 0x223   :  { %3842 = vmatmul.mubr.bf16.gmra.mrb[48].mxu0 %v740_v31  ;;  %3079 = vmatprep.mubr.bf16.mxu1 %v749_v32 }
 0x224   :  { %3851 = vmatprep.mubr.bf16.mxu0 %v757_v33 }
 0x22a   :  { %3080 = vmatmul.mubr.bf16.gmra.mrb[52].mxu1 %v748_v42 }
 0x22b   :  { %3852 = vmatmul.mubr.bf16.gmra.mrb[52].mxu0 %v756_v43  ;;  %3089 = vmatprep.mubr.bf16.mxu1 %v765_v44 }
 0x22c   :  { %3861 = vmatprep.mubr.bf16.mxu0 %v773_v45  ;;  %v5254_v45 = vmov 0  }
 0x22d   :  { %4869 = vset.pattern.permute.xlu0 %v5254_v45 }
 0x232   :  { %3090 = vmatmul.mubr.bf16.gmra.mrb[56].mxu1 %v764_v54 }
 0x233   :  { %3862 = vmatmul.mubr.bf16.gmra.mrb[56].mxu0 %v772_v55  ;;  %3099 = vmatprep.mubr.bf16.mxu1 %v781_v56 }
 0x234   :  { %3871 = vmatprep.mubr.bf16.mxu0 %v789_v57 }
 0x23a   :  { %3100 = vmatmul.mubr.bf16.gmra.mrb[60].mxu1 %v780_v62 }
 0x23b   :  { %3872 = vmatmul.mubr.bf16.gmra.mrb[60].mxu0 %v788_v63  ;;  %4022 = vmatprep.mubr.f32.mxu1 %v3947_v23 }
 0x295   :  { %v2951_v7 = vpop.f32.mrb[0].mxu1 }
 0x296   :  { %v3723_v8 = vpop.f32.mrb[0].mxu0  ;;  %v4356_v9 = vadd.f32 %v2951_v7, %v7592_v5  ;;  %v2953_v10 = vpop.f32.mrb[1].mxu1  ;;  %v4291_v7 = vld [vmem:[#allocation2] ss:$0 sm:$0xff] }
 0x297   :  { %v3725_v11 = vpop.f32.mrb[1].mxu0  ;;  %v4358_v12 = vadd.f32 %v2953_v10, %v7594_v6  ;;  %v2955_v13 = vpop.f32.mrb[2].mxu1  ;;  %3955 = vperm.xlu0 %4869, %v4291_v7  }
 0x298   :  { %v3727_v14 = vpop.f32.mrb[2].mxu0  ;;  %v4357_v15 = vadd.f32 %v4356_v9, %v3723_v8  ;;  %v4360_v16 = vadd.f32 %v2955_v13, %v7592_v5  ;;  %v2957_v17 = vpop.f32.mrb[3].mxu1 }
 0x299   :  { %v3729_v18 = vpop.f32.mrb[3].mxu0  ;;  %v4359_v19 = vadd.f32 %v4358_v12, %v3725_v11  ;;  %v4362_v20 = vadd.f32 %v2957_v17, %v7594_v6 }
 0x29a   :  { %v4361_v21 = vadd.f32 %v4360_v16, %v3727_v14  ;;  %v3882_v24 = vmax.f32 %v4357_v15, 0.0 }
 0x29b   :  { %v4363_v22 = vadd.f32 %v4362_v20, %v3729_v18  ;;  %v3883_v26 = vmax.f32 %v4359_v19, 0.0 }
 0x29c   :  { %v3884_v25 = vmax.f32 %v4361_v21, 0.0 }
 0x29d   :  { %v3885_v27 = vmax.f32 %v4363_v22, 0.0  ;;  %v2961_v28 = vpop.f32.mrb[4].mxu1 }
 0x29e   :  { %v3733_v29 = vpop.f32.mrb[4].mxu0  ;;  %v4294_v30 = vpack.c.bf16 %v3884_v25, %v3882_v24  ;;  %v4364_v31 = vadd.f32 %v2961_v28, %v7592_v5  ;;  %v2963_v32 = vpop.f32.mrb[5].mxu1 }
 0x29f   :  { %v3735_v33 = vpop.f32.mrb[5].mxu0  ;;  %v4292_v34 = vpack.c.bf16 %v3885_v27, %v3883_v26  ;;  %v4366_v35 = vadd.f32 %v2963_v32, %v7594_v6  ;;  %v2965_v36 = vpop.f32.mrb[6].mxu1 }
 0x2a0   :  { %v3737_v37 = vpop.f32.mrb[6].mxu0  ;;  %v4365_v38 = vadd.f32 %v4364_v31, %v3733_v29  ;;  %v4368_v39 = vadd.f32 %v2965_v36, %v7592_v5  ;;  %v2967_v40 = vpop.f32.mrb[7].mxu1 }
 0x2a1   :  { %v3739_v41 = vpop.f32.mrb[7].mxu0  ;;  %v4367_v42 = vadd.f32 %v4366_v35, %v3735_v33  ;;  %v4370_v43 = vadd.f32 %v2967_v40, %v7594_v6  ;;  %4293 = vmatprep.subr.bf16.mxu1 %v4292_v34 }
 0x2a2   :  { %v4369_v44 = vadd.f32 %v4368_v39, %v3737_v37  ;;  %4295 = vmatpush1.bf16.xpose.msra.mxu1 %v4294_v30  ;;  %v3886_v48 = vmax.f32 %v4365_v38, 0.0 }
 0x2a3   :  { %v4371_v47 = vadd.f32 %v4370_v43, %v3739_v41  ;;  %v3887_v50 = vmax.f32 %v4367_v42, 0.0 }
 0x2a4   :  { %v3888_v49 = vmax.f32 %v4369_v44, 0.0 }
 0x2a5   :  { %v3889_v51 = vmax.f32 %v4371_v47, 0.0  ;;  %v2971_v52 = vpop.f32.mrb[8].mxu1 }
 0x2a6   :  { %v3743_v53 = vpop.f32.mrb[8].mxu0  ;;  %v4298_v54 = vpack.c.bf16 %v3888_v49, %v3886_v48  ;;  %v4372_v55 = vadd.f32 %v2971_v52, %v7592_v5  ;;  %v2973_v56 = vpop.f32.mrb[9].mxu1 }
 0x2a7   :  { %v3745_v57 = vpop.f32.mrb[9].mxu0  ;;  %v4296_v58 = vpack.c.bf16 %v3889_v51, %v3887_v50  ;;  %v4374_v59 = vadd.f32 %v2973_v56, %v7594_v6  ;;  %v2975_v60 = vpop.f32.mrb[10].mxu1 }
 0x2a8   :  { %v3747_v61 = vpop.f32.mrb[10].mxu0  ;;  %v4373_v62 = vadd.f32 %v4372_v55, %v3743_v53  ;;  %v4376_v63 = vadd.f32 %v2975_v60, %v7592_v5  ;;  %v2977_v0 = vpop.f32.mrb[11].mxu1 }
 0x2a9   :  { %v3749_v1 = vpop.f32.mrb[11].mxu0  ;;  %v4375_v2 = vadd.f32 %v4374_v59, %v3745_v57  ;;  %v4378_v3 = vadd.f32 %v2977_v0, %v7594_v6  ;;  %4297 = vmatprep.subr.bf16.mxu1 %v4296_v58 }
 0x2aa   :  { %v4377_v4 = vadd.f32 %v4376_v63, %v3747_v61  ;;  %4299 = vmatpush1.bf16.xpose.msra.mxu1 %v4298_v54  ;;  %v3890_v9 = vmax.f32 %v4373_v62, 0.0 }
 0x2ab   :  { %v4379_v8 = vadd.f32 %v4378_v3, %v3749_v1  ;;  %v3891_v11 = vmax.f32 %v4375_v2, 0.0 }
 0x2ac   :  { %v3892_v10 = vmax.f32 %v4377_v4, 0.0 }
 0x2ad   :  { %v3893_v12 = vmax.f32 %v4379_v8, 0.0  ;;  %v2981_v13 = vpop.f32.mrb[12].mxu1 }
 0x2ae   :  { %v3753_v14 = vpop.f32.mrb[12].mxu0  ;;  %v4302_v15 = vpack.c.bf16 %v3892_v10, %v3890_v9  ;;  %v4380_v16 = vadd.f32 %v2981_v13, %v7592_v5  ;;  %v2983_v17 = vpop.f32.mrb[13].mxu1 }
 0x2af   :  { %v3755_v18 = vpop.f32.mrb[13].mxu0  ;;  %v4300_v19 = vpack.c.bf16 %v3893_v12, %v3891_v11  ;;  %v4382_v20 = vadd.f32 %v2983_v17, %v7594_v6  ;;  %v2985_v21 = vpop.f32.mrb[14].mxu1 }
 0x2b0   :  { %v3757_v22 = vpop.f32.mrb[14].mxu0  ;;  %v4381_v23 = vadd.f32 %v4380_v16, %v3753_v14  ;;  %v4384_v24 = vadd.f32 %v2985_v21, %v7592_v5  ;;  %v2987_v25 = vpop.f32.mrb[15].mxu1 }
 0x2b1   :  { %v3759_v26 = vpop.f32.mrb[15].mxu0  ;;  %v4383_v27 = vadd.f32 %v4382_v20, %v3755_v18  ;;  %v4386_v28 = vadd.f32 %v2987_v25, %v7594_v6  ;;  %4301 = vmatprep.subr.bf16.mxu1 %v4300_v19 }
 0x2b2   :  { %v4385_v29 = vadd.f32 %v4384_v24, %v3757_v22  ;;  %4303 = vmatpush1.bf16.xpose.msra.mxu1 %v4302_v15  ;;  %v3894_v31 = vmax.f32 %v4381_v23, 0.0 }
 0x2b3   :  { %v4387_v30 = vadd.f32 %v4386_v28, %v3759_v26  ;;  %v3895_v33 = vmax.f32 %v4383_v27, 0.0 }
 0x2b4   :  { %v3896_v32 = vmax.f32 %v4385_v29, 0.0 }
 0x2b5   :  { %v3897_v34 = vmax.f32 %v4387_v30, 0.0  ;;  %v2991_v35 = vpop.f32.mrb[16].mxu1 }
 0x2b6   :  { %v3763_v36 = vpop.f32.mrb[16].mxu0  ;;  %v4306_v37 = vpack.c.bf16 %v3896_v32, %v3894_v31  ;;  %v4388_v38 = vadd.f32 %v2991_v35, %v7592_v5  ;;  %v2993_v39 = vpop.f32.mrb[17].mxu1 }
 0x2b7   :  { %v3765_v40 = vpop.f32.mrb[17].mxu0  ;;  %v4304_v41 = vpack.c.bf16 %v3897_v34, %v3895_v33  ;;  %v4390_v42 = vadd.f32 %v2993_v39, %v7594_v6  ;;  %v2995_v43 = vpop.f32.mrb[18].mxu1 }
 0x2b8   :  { %v3767_v44 = vpop.f32.mrb[18].mxu0  ;;  %v4389_v45 = vadd.f32 %v4388_v38, %v3763_v36  ;;  %v4392_v46 = vadd.f32 %v2995_v43, %v7592_v5  ;;  %v2997_v47 = vpop.f32.mrb[19].mxu1 }
 0x2b9   :  { %v3769_v48 = vpop.f32.mrb[19].mxu0  ;;  %v4391_v49 = vadd.f32 %v4390_v42, %v3765_v40  ;;  %v4394_v50 = vadd.f32 %v2997_v47, %v7594_v6  ;;  %4305 = vmatprep.subr.bf16.mxu1 %v4304_v41 }
 0x2ba   :  { %v4393_v51 = vadd.f32 %v4392_v46, %v3767_v44  ;;  %4307 = vmatpush1.bf16.xpose.msra.mxu1 %v4306_v37  ;;  %v3898_v53 = vmax.f32 %v4389_v45, 0.0 }
 0x2bb   :  { %v4395_v52 = vadd.f32 %v4394_v50, %v3769_v48  ;;  %v3899_v55 = vmax.f32 %v4391_v49, 0.0 }
 0x2bc   :  { %v3900_v54 = vmax.f32 %v4393_v51, 0.0 }
 0x2bd   :  { %v3901_v56 = vmax.f32 %v4395_v52, 0.0  ;;  %v3001_v57 = vpop.f32.mrb[20].mxu1 }
 0x2be   :  { %v3773_v58 = vpop.f32.mrb[20].mxu0  ;;  %v4310_v59 = vpack.c.bf16 %v3900_v54, %v3898_v53  ;;  %v4396_v60 = vadd.f32 %v3001_v57, %v7592_v5  ;;  %v3003_v61 = vpop.f32.mrb[21].mxu1 }
 0x2bf   :  { %v3775_v62 = vpop.f32.mrb[21].mxu0  ;;  %v4308_v63 = vpack.c.bf16 %v3901_v56, %v3899_v55  ;;  %v4398_v0 = vadd.f32 %v3003_v61, %v7594_v6  ;;  %v3005_v1 = vpop.f32.mrb[22].mxu1 }
 0x2c0   :  { %v3777_v2 = vpop.f32.mrb[22].mxu0  ;;  %v4397_v3 = vadd.f32 %v4396_v60, %v3773_v58  ;;  %v4400_v4 = vadd.f32 %v3005_v1, %v7592_v5  ;;  %v3007_v7 = vpop.f32.mrb[23].mxu1 }
 0x2c1   :  { %v3779_v8 = vpop.f32.mrb[23].mxu0  ;;  %v4399_v9 = vadd.f32 %v4398_v0, %v3775_v62  ;;  %v4402_v10 = vadd.f32 %v3007_v7, %v7594_v6  ;;  %4309 = vmatprep.subr.bf16.mxu1 %v4308_v63 }
 0x2c2   :  { %v4401_v11 = vadd.f32 %v4400_v4, %v3777_v2  ;;  %4311 = vmatpush1.bf16.xpose.msra.mxu1 %v4310_v59  ;;  %v3902_v13 = vmax.f32 %v4397_v3, 0.0 }
 0x2c3   :  { %v4403_v12 = vadd.f32 %v4402_v10, %v3779_v8  ;;  %v3903_v15 = vmax.f32 %v4399_v9, 0.0 }
 0x2c4   :  { %v3904_v14 = vmax.f32 %v4401_v11, 0.0 }
 0x2c5   :  { %v3905_v16 = vmax.f32 %v4403_v12, 0.0  ;;  %v3011_v17 = vpop.f32.mrb[24].mxu1 }
 0x2c6   :  { %v3783_v18 = vpop.f32.mrb[24].mxu0  ;;  %v4314_v19 = vpack.c.bf16 %v3904_v14, %v3902_v13  ;;  %v4404_v20 = vadd.f32 %v3011_v17, %v7592_v5  ;;  %v3013_v21 = vpop.f32.mrb[25].mxu1 }
 0x2c7   :  { %v3785_v22 = vpop.f32.mrb[25].mxu0  ;;  %v4312_v23 = vpack.c.bf16 %v3905_v16, %v3903_v15  ;;  %v4406_v24 = vadd.f32 %v3013_v21, %v7594_v6  ;;  %v3015_v25 = vpop.f32.mrb[26].mxu1 }
 0x2c8   :  { %v3787_v26 = vpop.f32.mrb[26].mxu0  ;;  %v4405_v27 = vadd.f32 %v4404_v20, %v3783_v18  ;;  %v4408_v28 = vadd.f32 %v3015_v25, %v7592_v5  ;;  %v3017_v29 = vpop.f32.mrb[27].mxu1 }
 0x2c9   :  { %v3789_v30 = vpop.f32.mrb[27].mxu0  ;;  %v4407_v31 = vadd.f32 %v4406_v24, %v3785_v22  ;;  %v4410_v32 = vadd.f32 %v3017_v29, %v7594_v6  ;;  %4313 = vmatprep.subr.bf16.mxu1 %v4312_v23 }
 0x2ca   :  { %v4409_v33 = vadd.f32 %v4408_v28, %v3787_v26  ;;  %4315 = vmatpush1.bf16.xpose.msra.mxu1 %v4314_v19  ;;  %v3906_v35 = vmax.f32 %v4405_v27, 0.0 }
 0x2cb   :  { %v4411_v34 = vadd.f32 %v4410_v32, %v3789_v30  ;;  %v3907_v37 = vmax.f32 %v4407_v31, 0.0 }
 0x2cc   :  { %v3908_v36 = vmax.f32 %v4409_v33, 0.0 }
 0x2cd   :  { %v3909_v38 = vmax.f32 %v4411_v34, 0.0  ;;  %v3021_v39 = vpop.f32.mrb[28].mxu1 }
 0x2ce   :  { %v3793_v40 = vpop.f32.mrb[28].mxu0  ;;  %v4318_v41 = vpack.c.bf16 %v3908_v36, %v3906_v35  ;;  %v4412_v42 = vadd.f32 %v3021_v39, %v7592_v5  ;;  %v3023_v43 = vpop.f32.mrb[29].mxu1 }
 0x2cf   :  { %v3795_v44 = vpop.f32.mrb[29].mxu0  ;;  %v4316_v45 = vpack.c.bf16 %v3909_v38, %v3907_v37  ;;  %v4414_v46 = vadd.f32 %v3023_v43, %v7594_v6  ;;  %v3025_v47 = vpop.f32.mrb[30].mxu1 }
 0x2d0   :  { %v3797_v48 = vpop.f32.mrb[30].mxu0  ;;  %v4413_v49 = vadd.f32 %v4412_v42, %v3793_v40  ;;  %v4416_v50 = vadd.f32 %v3025_v47, %v7592_v5  ;;  %v3027_v51 = vpop.f32.mrb[31].mxu1 }
 0x2d1   :  { %v3799_v52 = vpop.f32.mrb[31].mxu0  ;;  %v4415_v53 = vadd.f32 %v4414_v46, %v3795_v44  ;;  %v4418_v54 = vadd.f32 %v3027_v51, %v7594_v6  ;;  %4317 = vmatprep.subr.bf16.mxu1 %v4316_v45 }
 0x2d2   :  { %v4417_v55 = vadd.f32 %v4416_v50, %v3797_v48  ;;  %4319 = vmatpush1.bf16.xpose.msra.mxu1 %v4318_v41  ;;  %v3910_v57 = vmax.f32 %v4413_v49, 0.0 }
 0x2d3   :  { %v4419_v56 = vadd.f32 %v4418_v54, %v3799_v52  ;;  %v3911_v59 = vmax.f32 %v4415_v53, 0.0 }
 0x2d4   :  { %v3912_v58 = vmax.f32 %v4417_v55, 0.0 }
 0x2d5   :  { %v3913_v60 = vmax.f32 %v4419_v56, 0.0  ;;  %v3031_v61 = vpop.f32.mrb[32].mxu1 }
 0x2d6   :  { %v3803_v62 = vpop.f32.mrb[32].mxu0  ;;  %v4322_v63 = vpack.c.bf16 %v3912_v58, %v3910_v57  ;;  %v4420_v0 = vadd.f32 %v3031_v61, %v7592_v5  ;;  %v3033_v1 = vpop.f32.mrb[33].mxu1 }
 0x2d7   :  { %v3805_v2 = vpop.f32.mrb[33].mxu0  ;;  %v4320_v3 = vpack.c.bf16 %v3913_v60, %v3911_v59  ;;  %v4422_v4 = vadd.f32 %v3033_v1, %v7594_v6  ;;  %v3035_v7 = vpop.f32.mrb[34].mxu1 }
 0x2d8   :  { %v3807_v8 = vpop.f32.mrb[34].mxu0  ;;  %v4421_v9 = vadd.f32 %v4420_v0, %v3803_v62  ;;  %v4424_v10 = vadd.f32 %v3035_v7, %v7592_v5  ;;  %v3037_v11 = vpop.f32.mrb[35].mxu1 }
 0x2d9   :  { %v3809_v12 = vpop.f32.mrb[35].mxu0  ;;  %v4423_v13 = vadd.f32 %v4422_v4, %v3805_v2  ;;  %v4426_v14 = vadd.f32 %v3037_v11, %v7594_v6  ;;  %4321 = vmatprep.subr.bf16.mxu1 %v4320_v3 }
 0x2da   :  { %v4425_v15 = vadd.f32 %v4424_v10, %v3807_v8  ;;  %4323 = vmatpush1.bf16.xpose.msra.mxu1 %v4322_v63  ;;  %v3914_v17 = vmax.f32 %v4421_v9, 0.0 }
 0x2db   :  { %v4427_v16 = vadd.f32 %v4426_v14, %v3809_v12  ;;  %v3915_v19 = vmax.f32 %v4423_v13, 0.0 }
 0x2dc   :  { %v3916_v18 = vmax.f32 %v4425_v15, 0.0 }
 0x2dd   :  { %v3917_v20 = vmax.f32 %v4427_v16, 0.0  ;;  %v3041_v21 = vpop.f32.mrb[36].mxu1 }
 0x2de   :  { %v3813_v22 = vpop.f32.mrb[36].mxu0  ;;  %v4326_v23 = vpack.c.bf16 %v3916_v18, %v3914_v17  ;;  %v4428_v24 = vadd.f32 %v3041_v21, %v7592_v5  ;;  %v3043_v25 = vpop.f32.mrb[37].mxu1 }
 0x2df   :  { %v3815_v26 = vpop.f32.mrb[37].mxu0  ;;  %v4324_v27 = vpack.c.bf16 %v3917_v20, %v3915_v19  ;;  %v4430_v28 = vadd.f32 %v3043_v25, %v7594_v6  ;;  %v3045_v29 = vpop.f32.mrb[38].mxu1 }
 0x2e0   :  { %v3817_v30 = vpop.f32.mrb[38].mxu0  ;;  %v4429_v31 = vadd.f32 %v4428_v24, %v3813_v22  ;;  %v4432_v32 = vadd.f32 %v3045_v29, %v7592_v5  ;;  %v3047_v33 = vpop.f32.mrb[39].mxu1 }
 0x2e1   :  { %v3819_v34 = vpop.f32.mrb[39].mxu0  ;;  %v4431_v35 = vadd.f32 %v4430_v28, %v3815_v26  ;;  %v4434_v36 = vadd.f32 %v3047_v33, %v7594_v6  ;;  %4325 = vmatprep.subr.bf16.mxu1 %v4324_v27 }
 0x2e2   :  { %v4433_v37 = vadd.f32 %v4432_v32, %v3817_v30  ;;  %4327 = vmatpush1.bf16.xpose.msra.mxu1 %v4326_v23  ;;  %v3918_v39 = vmax.f32 %v4429_v31, 0.0 }
 0x2e3   :  { %v4435_v38 = vadd.f32 %v4434_v36, %v3819_v34  ;;  %v3919_v41 = vmax.f32 %v4431_v35, 0.0 }
 0x2e4   :  { %v3920_v40 = vmax.f32 %v4433_v37, 0.0 }
 0x2e5   :  { %v3921_v42 = vmax.f32 %v4435_v38, 0.0  ;;  %v3051_v43 = vpop.f32.mrb[40].mxu1 }
 0x2e6   :  { %v3823_v44 = vpop.f32.mrb[40].mxu0  ;;  %v4330_v45 = vpack.c.bf16 %v3920_v40, %v3918_v39  ;;  %v4436_v46 = vadd.f32 %v3051_v43, %v7592_v5  ;;  %v3053_v47 = vpop.f32.mrb[41].mxu1 }
 0x2e7   :  { %v3825_v48 = vpop.f32.mrb[41].mxu0  ;;  %v4328_v49 = vpack.c.bf16 %v3921_v42, %v3919_v41  ;;  %v4438_v50 = vadd.f32 %v3053_v47, %v7594_v6  ;;  %v3055_v51 = vpop.f32.mrb[42].mxu1 }
 0x2e8   :  { %v3827_v52 = vpop.f32.mrb[42].mxu0  ;;  %v4437_v53 = vadd.f32 %v4436_v46, %v3823_v44  ;;  %v4440_v54 = vadd.f32 %v3055_v51, %v7592_v5  ;;  %v3057_v55 = vpop.f32.mrb[43].mxu1 }
 0x2e9   :  { %v3829_v56 = vpop.f32.mrb[43].mxu0  ;;  %v4439_v57 = vadd.f32 %v4438_v50, %v3825_v48  ;;  %v4442_v58 = vadd.f32 %v3057_v55, %v7594_v6  ;;  %4329 = vmatprep.subr.bf16.mxu1 %v4328_v49 }
 0x2ea   :  { %v4441_v59 = vadd.f32 %v4440_v54, %v3827_v52  ;;  %4331 = vmatpush1.bf16.xpose.msra.mxu1 %v4330_v45  ;;  %v3922_v61 = vmax.f32 %v4437_v53, 0.0 }
 0x2eb   :  { %v4443_v60 = vadd.f32 %v4442_v58, %v3829_v56  ;;  %v3923_v63 = vmax.f32 %v4439_v57, 0.0 }
 0x2ec   :  { %v3924_v62 = vmax.f32 %v4441_v59, 0.0 }
 0x2ed   :  { %v3925_v0 = vmax.f32 %v4443_v60, 0.0  ;;  %v3061_v1 = vpop.f32.mrb[44].mxu1 }
 0x2ee   :  { %v3833_v2 = vpop.f32.mrb[44].mxu0  ;;  %v4334_v3 = vpack.c.bf16 %v3924_v62, %v3922_v61  ;;  %v4444_v4 = vadd.f32 %v3061_v1, %v7592_v5  ;;  %v3063_v7 = vpop.f32.mrb[45].mxu1 }
 0x2ef   :  { %v3835_v8 = vpop.f32.mrb[45].mxu0  ;;  %v4332_v9 = vpack.c.bf16 %v3925_v0, %v3923_v63  ;;  %v4446_v10 = vadd.f32 %v3063_v7, %v7594_v6  ;;  %v3065_v11 = vpop.f32.mrb[46].mxu1 }
 0x2f0   :  { %v3837_v12 = vpop.f32.mrb[46].mxu0  ;;  %v4445_v13 = vadd.f32 %v4444_v4, %v3833_v2  ;;  %v4448_v14 = vadd.f32 %v3065_v11, %v7592_v5  ;;  %v3067_v15 = vpop.f32.mrb[47].mxu1 }
 0x2f1   :  { %v3839_v16 = vpop.f32.mrb[47].mxu0  ;;  %v4447_v17 = vadd.f32 %v4446_v10, %v3835_v8  ;;  %v4450_v18 = vadd.f32 %v3067_v15, %v7594_v6  ;;  %4333 = vmatprep.subr.bf16.mxu1 %v4332_v9 }
 0x2f2   :  { %v4449_v19 = vadd.f32 %v4448_v14, %v3837_v12  ;;  %4335 = vmatpush1.bf16.xpose.msra.mxu1 %v4334_v3  ;;  %v3926_v21 = vmax.f32 %v4445_v13, 0.0 }
 0x2f3   :  { %v4451_v20 = vadd.f32 %v4450_v18, %v3839_v16  ;;  %v3927_v23 = vmax.f32 %v4447_v17, 0.0 }
 0x2f4   :  { %v3928_v22 = vmax.f32 %v4449_v19, 0.0 }
 0x2f5   :  { %v3929_v24 = vmax.f32 %v4451_v20, 0.0  ;;  %v3071_v25 = vpop.f32.mrb[48].mxu1 }
 0x2f6   :  { %v3843_v26 = vpop.f32.mrb[48].mxu0  ;;  %v4338_v27 = vpack.c.bf16 %v3928_v22, %v3926_v21  ;;  %v4452_v28 = vadd.f32 %v3071_v25, %v7592_v5  ;;  %v3073_v29 = vpop.f32.mrb[49].mxu1 }
 0x2f7   :  { %v3845_v30 = vpop.f32.mrb[49].mxu0  ;;  %v4336_v31 = vpack.c.bf16 %v3929_v24, %v3927_v23  ;;  %v4454_v32 = vadd.f32 %v3073_v29, %v7594_v6  ;;  %v3075_v33 = vpop.f32.mrb[50].mxu1 }
 0x2f8   :  { %v3847_v34 = vpop.f32.mrb[50].mxu0  ;;  %v4453_v35 = vadd.f32 %v4452_v28, %v3843_v26  ;;  %v4456_v36 = vadd.f32 %v3075_v33, %v7592_v5  ;;  %v3077_v37 = vpop.f32.mrb[51].mxu1 }
 0x2f9   :  { %v3849_v38 = vpop.f32.mrb[51].mxu0  ;;  %v4455_v39 = vadd.f32 %v4454_v32, %v3845_v30  ;;  %v4458_v40 = vadd.f32 %v3077_v37, %v7594_v6  ;;  %4337 = vmatprep.subr.bf16.mxu1 %v4336_v31 }
 0x2fa   :  { %v4457_v41 = vadd.f32 %v4456_v36, %v3847_v34  ;;  %4339 = vmatpush1.bf16.xpose.msra.mxu1 %v4338_v27  ;;  %v3930_v43 = vmax.f32 %v4453_v35, 0.0 }
 0x2fb   :  { %v4459_v42 = vadd.f32 %v4458_v40, %v3849_v38  ;;  %v3931_v45 = vmax.f32 %v4455_v39, 0.0 }
 0x2fc   :  { %v3932_v44 = vmax.f32 %v4457_v41, 0.0 }
 0x2fd   :  { %v3933_v46 = vmax.f32 %v4459_v42, 0.0  ;;  %v3081_v47 = vpop.f32.mrb[52].mxu1 }
 0x2fe   :  { %v3853_v48 = vpop.f32.mrb[52].mxu0  ;;  %v4342_v49 = vpack.c.bf16 %v3932_v44, %v3930_v43  ;;  %v4460_v50 = vadd.f32 %v3081_v47, %v7592_v5  ;;  %v3083_v51 = vpop.f32.mrb[53].mxu1 }
 0x2ff   :  { %v3855_v52 = vpop.f32.mrb[53].mxu0  ;;  %v4340_v53 = vpack.c.bf16 %v3933_v46, %v3931_v45  ;;  %v4462_v54 = vadd.f32 %v3083_v51, %v7594_v6  ;;  %v3085_v55 = vpop.f32.mrb[54].mxu1 }
 0x300   :  { %v3857_v56 = vpop.f32.mrb[54].mxu0  ;;  %v4461_v57 = vadd.f32 %v4460_v50, %v3853_v48  ;;  %v4464_v58 = vadd.f32 %v3085_v55, %v7592_v5  ;;  %v3087_v59 = vpop.f32.mrb[55].mxu1 }
 0x301   :  { %v3859_v60 = vpop.f32.mrb[55].mxu0  ;;  %v4463_v61 = vadd.f32 %v4462_v54, %v3855_v52  ;;  %v4466_v62 = vadd.f32 %v3087_v59, %v7594_v6  ;;  %4341 = vmatprep.subr.bf16.mxu1 %v4340_v53 }
 0x302   :  { %v4465_v63 = vadd.f32 %v4464_v58, %v3857_v56  ;;  %4343 = vmatpush1.bf16.xpose.msra.mxu1 %v4342_v49  ;;  %v3934_v1 = vmax.f32 %v4461_v57, 0.0 }
 0x303   :  { %v4467_v0 = vadd.f32 %v4466_v62, %v3859_v60  ;;  %v3935_v3 = vmax.f32 %v4463_v61, 0.0 }
 0x304   :  { %v3936_v2 = vmax.f32 %v4465_v63, 0.0 }
 0x305   :  { %v3937_v4 = vmax.f32 %v4467_v0, 0.0  ;;  %v3091_v7 = vpop.f32.mrb[56].mxu1 }
 0x306   :  { %v3863_v8 = vpop.f32.mrb[56].mxu0  ;;  %v4346_v9 = vpack.c.bf16 %v3936_v2, %v3934_v1  ;;  %v4468_v10 = vadd.f32 %v3091_v7, %v7592_v5  ;;  %v3093_v11 = vpop.f32.mrb[57].mxu1 }
 0x307   :  { %v3865_v12 = vpop.f32.mrb[57].mxu0  ;;  %v4344_v13 = vpack.c.bf16 %v3937_v4, %v3935_v3  ;;  %v4470_v14 = vadd.f32 %v3093_v11, %v7594_v6  ;;  %v3095_v15 = vpop.f32.mrb[58].mxu1 }
 0x308   :  { %v3867_v16 = vpop.f32.mrb[58].mxu0  ;;  %v4469_v17 = vadd.f32 %v4468_v10, %v3863_v8  ;;  %v4472_v18 = vadd.f32 %v3095_v15, %v7592_v5  ;;  %v3097_v19 = vpop.f32.mrb[59].mxu1 }
 0x309   :  { %v3869_v20 = vpop.f32.mrb[59].mxu0  ;;  %v4471_v21 = vadd.f32 %v4470_v14, %v3865_v12  ;;  %v4474_v22 = vadd.f32 %v3097_v19, %v7594_v6  ;;  %4345 = vmatprep.subr.bf16.mxu1 %v4344_v13 }
 0x30a   :  { %v4473_v23 = vadd.f32 %v4472_v18, %v3867_v16  ;;  %4347 = vmatpush1.bf16.xpose.msra.mxu1 %v4346_v9  ;;  %v3938_v25 = vmax.f32 %v4469_v17, 0.0 }
 0x30b   :  { %v4475_v24 = vadd.f32 %v4474_v22, %v3869_v20  ;;  %v3939_v27 = vmax.f32 %v4471_v21, 0.0 }
 0x30c   :  { %v3940_v26 = vmax.f32 %v4473_v23, 0.0 }
 0x30d   :  { %v3941_v28 = vmax.f32 %v4475_v24, 0.0  ;;  %v3101_v29 = vpop.f32.mrb[60].mxu1 }
 0x30e   :  { %v3873_v30 = vpop.f32.mrb[60].mxu0  ;;  %v4350_v31 = vpack.c.bf16 %v3940_v26, %v3938_v25  ;;  %v4476_v32 = vadd.f32 %v3101_v29, %v7592_v5  ;;  %v3103_v33 = vpop.f32.mrb[61].mxu1 }
 0x30f   :  { %v3875_v34 = vpop.f32.mrb[61].mxu0  ;;  %v4348_v35 = vpack.c.bf16 %v3941_v28, %v3939_v27  ;;  %v4478_v36 = vadd.f32 %v3103_v33, %v7594_v6  ;;  %v3105_v37 = vpop.f32.mrb[62].mxu1 }
 0x310   :  { %v3877_v38 = vpop.f32.mrb[62].mxu0  ;;  %v4477_v39 = vadd.f32 %v4476_v32, %v3873_v30  ;;  %v4480_v40 = vadd.f32 %v3105_v37, %v7592_v5  ;;  %v3107_v41 = vpop.f32.mrb[63].mxu1  ;;  %v3946_v5 = vld [vmem:[%s7678_s3] sm:$0xff] }
 0x311   :  { %v3879_v42 = vpop.f32.mrb[63].mxu0  ;;  %v4479_v43 = vadd.f32 %v4478_v36, %v3875_v34  ;;  %v4482_v44 = vadd.f32 %v3107_v41, %v7594_v6  ;;  %4349 = vmatprep.subr.bf16.mxu1 %v4348_v35 }
 0x312   :  { %v4481_v45 = vadd.f32 %v4480_v40, %v3877_v38  ;;  %4351 = vmatpush1.bf16.xpose.msra.mxu1 %v4350_v31  ;;  %v3942_v47 = vmax.f32 %v4477_v39, 0.0 }
 0x313   :  { %v4483_v46 = vadd.f32 %v4482_v44, %v3879_v42  ;;  %v3943_v49 = vmax.f32 %v4479_v43, 0.0 }
 0x314   :  { %v3944_v48 = vmax.f32 %v4481_v45, 0.0 }
 0x315   :  { %v3945_v50 = vmax.f32 %v4483_v46, 0.0 }
 0x316   :  { %v4354_v51 = vpack.c.bf16 %v3944_v48, %v3942_v47  ;;  %v3956_v53 = vpop.permute.xlu0 %3955 }
 0x317   :  { %v4352_v52 = vpack.c.bf16 %v3945_v50, %v3943_v49 }
 0x319   :  { %4353 = vmatprep.subr.bf16.mxu1 %v4352_v52 }
 0x31a   :  { %4355 = vmatpush1.bf16.xpose.msra.mxu1 %v4354_v51 }
 0x321   :  { %4023 = vmatmul.mubr.f32.vlgmr.msra.gmra.mrb[64].mxu1 %v3946_v5 }
 0x3f4   :  { %v4024_v54 = vpop.f32.mrb[64].mxu1 }
 0x3f5   :  { %v4025_v6 = vadd.f32 %v4024_v54, %v3956_v53  ;;  %v4026_v55 = vpop.f32.mrb[65].mxu1 }
 0x3f6   :  { %v4027_v56 = vadd.f32 %v4026_v55, %v3956_v53 }
 0x3f7   :  { %4029 = vst [vmem:[%s7680_s5] sm:$0xff] %v4025_v6 }
 0x3f8   :  { %4030 = vst [vmem:[%s7680_s5 + $0x8] sm:$0xff] %v4027_v56 }

</bundles_post_ra>
